<compile_context>
chip_gen: v7x
topology: tpu7x:2x2x1
jax: 0.10.0
libtpu: 0.0.40
codegen_flags: <defaults>
</compile_context>

<pallas_src>
import jax
import jax.numpy as jnp
from jax import lax
from jax.experimental import pallas as pl
from jax.experimental.pallas import tpu as pltpu


def _round_up(x: int, m: int) -> int:
    return ((x + m - 1) // m) * m


# ----------------------------- Pallas kernels ------------------------------

def _conv_relu_pool_kernel(p_ref, w_ref, b_ref, o_ref):
    # p_ref: (4, BM, K)  im2col patches, one slab per 2x2-pool phase; rows = (image, pixel)
    # w_ref: (K, Cp)     lane-padded (Cp = 128k) conv weights
    # b_ref: (1, Cp)     lane-padded bias
    # o_ref: (BM, Cp)    lane-dense pooled output block
    w = w_ref[...]
    y0 = jnp.dot(p_ref[0], w, preferred_element_type=jnp.float32)
    y1 = jnp.dot(p_ref[1], w, preferred_element_type=jnp.float32)
    y2 = jnp.dot(p_ref[2], w, preferred_element_type=jnp.float32)
    y3 = jnp.dot(p_ref[3], w, preferred_element_type=jnp.float32)
    # fused 2x2 max-pool over the four phases, then a single bias + ReLU
    # (relu(max_i x_i + b) == max_i relu(x_i + b) since both are monotone)
    pooled = jnp.maximum(jnp.maximum(y0, y1), jnp.maximum(y2, y3))
    o_ref[...] = jnp.maximum(pooled + b_ref[...], 0.0).astype(o_ref.dtype)


def _linear_kernel(x_ref, w_ref, b_ref, o_ref):
    # x_ref: (B, D), w_ref: (D, Np), b_ref: (1, Np), o_ref: (B, Np)  (Np lane-padded to 128)
    o_ref[...] = (jnp.dot(x_ref[...], w_ref[...], preferred_element_type=jnp.float32)
                  + b_ref[...]).astype(o_ref.dtype)


# ------------------------------ layer wrappers ------------------------------

def _images_per_step(batch: int, max_images: int = 8) -> int:
    # keep >=2 grid steps when possible (v7x has 2 TensorCores), cap the tile for VMEM
    if batch <= 1:
        return 1
    return max(1, min(max_images, batch // 2))


def conv_relu_pool(x_nhwc, w, b, *, KH=5, KW=5, pad=2, images_per_step=None):
    """Conv2d(kernel=5, stride=1, padding=2) + ReLU + MaxPool2d(2), NHWC in/out."""
    B, H, W, Cin = x_nhwc.shape
    Cout = w.shape[-1]
    Ho, Wo = H // 2, W // 2
    K = KH * KW * Cin
    M = Ho * Wo
    Mp = _round_up(M, 8)                    # sublane-aligned rows per image
    Cp = _round_up(max(Cout, 128), 128)     # lane-dense output channels

    if images_per_step is None:
        images_per_step = _images_per_step(B)
    Bp = _round_up(B, images_per_step)

    # ---- glue (XLA): zero-pad + im2col; feature order = (kh, kw, cin) matches w.reshape ----
    xp = jnp.pad(x_nhwc, ((0, Bp - B), (pad, pad), (pad, pad), (0, 0)))
    pieces = [xp[:, kh:kh + H, kw:kw + W, :] for kh in range(KH) for kw in range(KW)]
    patches = jnp.concatenate(pieces, axis=-1)                  # (Bp, H, W, K)

    # phase-split for the fused 2x2 max-pool; rows within a phase ordered (image, pixel),
    # pixel count padded to Mp so every block boundary is 8-sublane aligned
    quads = []
    for dh in range(2):
        for dw in range(2):
            q = patches[:, dh::2, dw::2, :].reshape(Bp, M, K)
            q = jnp.pad(q, ((0, 0), (0, Mp - M), (0, 0)))
            quads.append(q.reshape(Bp * Mp, K))
    p4 = jnp.stack(quads, axis=0)                               # (4, Bp*Mp, K)

    wp = jnp.pad(w.reshape(K, Cout).astype(jnp.float32), ((0, 0), (0, Cp - Cout)))
    bp = jnp.pad(b.astype(jnp.float32).reshape(1, Cout), ((0, 0), (0, Cp - Cout)))

    BM = images_per_step * Mp
    grid = (Bp // images_per_step,)

    out = pl.pallas_call(
        _conv_relu_pool_kernel,
        out_shape=jax.ShapeDtypeStruct((Bp * Mp, Cp), jnp.float32),
        grid=grid,
        in_specs=[pl.BlockSpec((4, BM, K), lambda i: (0, i, 0)),
                  pl.BlockSpec((K, Cp), lambda i: (0, 0)),
                  pl.BlockSpec((1, Cp), lambda i: (0, 0))],
        out_specs=pl.BlockSpec((BM, Cp), lambda i: (i, 0)),
        compiler_params=pltpu.CompilerParams(dimension_semantics=("parallel",)),
    )(p4, wp, bp)

    out = out.reshape(Bp, Mp, Cp)[:B, :M, :Cout]
    return out.reshape(B, Ho, Wo, Cout)


def linear(x, w, b):
    """x: (B, D), w: (D, N), b: (N,) -> (B, N); N is lane-padded to 128 inside the kernel."""
    B, D = x.shape
    N = w.shape[-1]
    Np = _round_up(max(N, 128), 128)
    wp = jnp.pad(w.astype(jnp.float32), ((0, 0), (0, Np - N)))
    bp = jnp.pad(b.astype(jnp.float32).reshape(1, N), ((0, 0), (0, Np - N)))
    out = pl.pallas_call(
        _linear_kernel,
        out_shape=jax.ShapeDtypeStruct((B, Np), jnp.float32),
        grid=(1,),
        in_specs=[pl.BlockSpec((B, D), lambda i: (0, 0)),
                  pl.BlockSpec((D, Np), lambda i: (0, 0)),
                  pl.BlockSpec((1, Np), lambda i: (0, 0))],
        out_specs=pl.BlockSpec((B, Np), lambda i: (0, 0)),
    )(x, wp, bp)
    return out[:, :N]


# ------------------------------ full forward --------------------------------

def cnn_forward(x_nchw, params):
    w1, b1, w2, b2, wfc, bfc = params
    x = jnp.transpose(x_nchw, (0, 2, 3, 1))               # NCHW -> NHWC (Cin=1, cheap)
    x = conv_relu_pool(x, w1, b1)                         # (B, 14, 14, 16)
    x = conv_relu_pool(x, w2, b2)                         # (B, 7, 7, 32)
    B, Ho, Wo, C = x.shape
    # PyTorch's x.view(B, -1) flattens in (C, H, W) order; instead of transposing the
    # activations at runtime, permute the FC weight rows once (weight-side, tiny).
    wfc_hwc = wfc.reshape(C, Ho, Wo, -1).transpose(1, 2, 0, 3).reshape(Ho * Wo * C, -1)
    feat = x.reshape(B, Ho * Wo * C)
    return linear(feat, wfc_hwc, bfc)                     # (B, 10)


# ------------------------- deterministic parameters -------------------------

def init_params(key):
    k1, k2, k3, k4, k5, k6 = jax.random.split(key, 6)
    # conv weights stored as (KH, KW, Cin, Cout); PyTorch equivalent is (Cout, Cin, KH, KW)
    w1 = jax.random.normal(k1, (5, 5, 1, 16), jnp.float32) * (1.0 / (5 * 5 * 1) ** 0.5)
    b1 = jax.random.normal(k2, (16,), jnp.float32) * 0.01
    w2 = jax.random.normal(k3, (5, 5, 16, 32), jnp.float32) * (1.0 / (5 * 5 * 16) ** 0.5)
    b2 = jax.random.normal(k4, (32,), jnp.float32) * 0.01
    wfc = jax.random.normal(k5, (32 * 7 * 7, 10), jnp.float32) * (1.0 / (32 * 7 * 7) ** 0.5)
    bfc = jax.random.normal(k6, (10,), jnp.float32) * 0.01
    return (w1, b1, w2, b2, wfc, bfc)


# --------------------------- pure-JAX reference ------------------------------

def reference_forward(x_nchw, params):
    w1, b1, w2, b2, wfc, bfc = params

    def conv_block(x, w, b):
        w_oihw = jnp.transpose(w, (3, 2, 0, 1))
        y = lax.conv_general_dilated(x, w_oihw, (1, 1), ((2, 2), (2, 2)),
                                     dimension_numbers=("NCHW", "OIHW", "NCHW"),
                                     precision=lax.Precision.HIGHEST)
        y = y + b[None, :, None, None]
        y = jnp.maximum(y, 0.0)
        y = lax.reduce_window(y, -jnp.inf, lax.max, (1, 1, 2, 2), (1, 1, 2, 2), "VALID")
        return y

    y = conv_block(x_nchw, w1, b1)
    y = conv_block(y, w2, b2)
    feat = y.reshape(y.shape[0], -1)
    return jnp.dot(feat, wfc, precision=lax.Precision.HIGHEST) + bfc


# ---------------------------------- main -------------------------------------

if __name__ == "__main__":
    key = jax.random.PRNGKey(0)
    kx, kp = jax.random.split(key)
    # Linear(32*7*7, 10) implies 28x28 single-channel input
    x = jax.random.normal(kx, (2, 1, 28, 28), jnp.float32)
    params = init_params(kp)

    out = jax.jit(cnn_forward)(x, params)
    out = jax.block_until_ready(out)

    assert out.shape == (2, 10)
    ref = reference_forward(x, params)
    max_err = float(jnp.max(jnp.abs(out - ref)))
    assert max_err < 2e-2, f"mismatch vs reference, max abs err = {max_err}"

    print("KERNEL_OK")
</pallas_src>

<mosaic_0001>
module attributes {stable_mosaic.version = 11 : i64} {
  func.func @_conv_relu_pool_kernel(%arg0: i32, %arg1: memref<4x200x25xf32, #tpu.memory_space<vmem>>, %arg2: memref<25x128xf32, #tpu.memory_space<vmem>>, %arg3: memref<1x128xf32, #tpu.memory_space<vmem>>, %arg4: memref<200x128xf32, #tpu.memory_space<vmem>>) attributes {dimension_semantics = [#tpu.dimension_semantics<parallel>], iteration_bounds = array<i64: 2>, scalar_prefetch = 0 : i64, scratch_operands = 0 : i64, tpu.core_type = #tpu.core_type<tc>, window_params = [{transform_indices = @transform_0, window_bounds = array<i64: 4, 200, 25>}, {pipeline_mode = #tpu.pipeline_mode<synchronous>, transform_indices = @transform_1, window_bounds = array<i64: 25, 128>}, {pipeline_mode = #tpu.pipeline_mode<synchronous>, transform_indices = @transform_2, window_bounds = array<i64: 1, 128>}, {transform_indices = @transform_3, window_bounds = array<i64: 200, 128>}]} {
    %c0 = arith.constant 0 : index
    %c0_0 = arith.constant 0 : index
    %0 = vector.load %arg2[%c0, %c0_0] : memref<25x128xf32, #tpu.memory_space<vmem>>, vector<25x128xf32>
    %c0_1 = arith.constant 0 : index
    %c0_2 = arith.constant 0 : index
    %c0_3 = arith.constant 0 : index
    %1 = vector.load %arg1[%c0_1, %c0_2, %c0_3] : memref<4x200x25xf32, #tpu.memory_space<vmem>>, vector<1x200x25xf32>
    %2 = vector.shape_cast %1 : vector<1x200x25xf32> to vector<200x25xf32>
    %cst = arith.constant dense<0.000000e+00> : vector<200x128xf32>
    %3 = tpu.matmul %2, %0, %cst {dimension_numbers = #tpu.dot_dimension_numbers<[1], [0], [0], [1], [0, 0, 1, 1], [], []>} : vector<200x25xf32>, vector<25x128xf32>, vector<200x128xf32> -> vector<200x128xf32>
    %c1 = arith.constant 1 : index
    %c0_4 = arith.constant 0 : index
    %c0_5 = arith.constant 0 : index
    %4 = vector.load %arg1[%c1, %c0_4, %c0_5] : memref<4x200x25xf32, #tpu.memory_space<vmem>>, vector<1x200x25xf32>
    %5 = vector.shape_cast %4 : vector<1x200x25xf32> to vector<200x25xf32>
    %cst_6 = arith.constant dense<0.000000e+00> : vector<200x128xf32>
    %6 = tpu.matmul %5, %0, %cst_6 {dimension_numbers = #tpu.dot_dimension_numbers<[1], [0], [0], [1], [0, 0, 1, 1], [], []>} : vector<200x25xf32>, vector<25x128xf32>, vector<200x128xf32> -> vector<200x128xf32>
    %c2 = arith.constant 2 : index
    %c0_7 = arith.constant 0 : index
    %c0_8 = arith.constant 0 : index
    %7 = vector.load %arg1[%c2, %c0_7, %c0_8] : memref<4x200x25xf32, #tpu.memory_space<vmem>>, vector<1x200x25xf32>
    %8 = vector.shape_cast %7 : vector<1x200x25xf32> to vector<200x25xf32>
    %cst_9 = arith.constant dense<0.000000e+00> : vector<200x128xf32>
    %9 = tpu.matmul %8, %0, %cst_9 {dimension_numbers = #tpu.dot_dimension_numbers<[1], [0], [0], [1], [0, 0, 1, 1], [], []>} : vector<200x25xf32>, vector<25x128xf32>, vector<200x128xf32> -> vector<200x128xf32>
    %c3 = arith.constant 3 : index
    %c0_10 = arith.constant 0 : index
    %c0_11 = arith.constant 0 : index
    %10 = vector.load %arg1[%c3, %c0_10, %c0_11] : memref<4x200x25xf32, #tpu.memory_space<vmem>>, vector<1x200x25xf32>
    %11 = vector.shape_cast %10 : vector<1x200x25xf32> to vector<200x25xf32>
    %cst_12 = arith.constant dense<0.000000e+00> : vector<200x128xf32>
    %12 = tpu.matmul %11, %0, %cst_12 {dimension_numbers = #tpu.dot_dimension_numbers<[1], [0], [0], [1], [0, 0, 1, 1], [], []>} : vector<200x25xf32>, vector<25x128xf32>, vector<200x128xf32> -> vector<200x128xf32>
    %13 = arith.maximumf %3, %6 : vector<200x128xf32>
    %14 = arith.maximumf %9, %12 : vector<200x128xf32>
    %15 = arith.maximumf %13, %14 : vector<200x128xf32>
    %c0_13 = arith.constant 0 : index
    %c0_14 = arith.constant 0 : index
    %16 = vector.load %arg3[%c0_13, %c0_14] : memref<1x128xf32, #tpu.memory_space<vmem>>, vector<1x128xf32>
    %17 = vector.broadcast %16 : vector<1x128xf32> to vector<200x128xf32>
    %18 = arith.addf %15, %17 : vector<200x128xf32>
    %cst_15 = arith.constant 0.000000e+00 : f32
    %19 = vector.broadcast %cst_15 : f32 to vector<200x128xf32>
    %20 = arith.maximumf %18, %19 : vector<200x128xf32>
    %c0_16 = arith.constant 0 : index
    %c0_17 = arith.constant 0 : index
    %21 = vector.load %arg4[%c0_16, %c0_17] : memref<200x128xf32, #tpu.memory_space<vmem>>, vector<200x128xf32>
    tpu.vector_store %arg4[%c0_16, %c0_17], %20 {strides = array<i32>} : memref<200x128xf32, #tpu.memory_space<vmem>>, vector<200x128xf32>,
    return
  }
  func.func @transform_0(%arg0: i32) -> (i32, i32, i32) {
    %c0_i32 = arith.constant 0 : i32
    %c0_i32_0 = arith.constant 0 : i32
    %c0_i32_1 = arith.constant 0 : i32
    return %c0_i32, %arg0, %c0_i32_0 : i32, i32, i32
  }
  func.func @transform_1(%arg0: i32) -> (i32, i32) {
    %c0_i32 = arith.constant 0 : i32
    %c0_i32_0 = arith.constant 0 : i32
    %c0_i32_1 = arith.constant 0 : i32
    return %c0_i32, %c0_i32_0 : i32, i32
  }
  func.func @transform_2(%arg0: i32) -> (i32, i32) {
    %c0_i32 = arith.constant 0 : i32
    %c0_i32_0 = arith.constant 0 : i32
    %c0_i32_1 = arith.constant 0 : i32
    return %c0_i32, %c0_i32_0 : i32, i32
  }
  func.func @transform_3(%arg0: i32) -> (i32, i32) {
    %c0_i32 = arith.constant 0 : i32
    %c0_i32_0 = arith.constant 0 : i32
    return %arg0, %c0_i32 : i32, i32
  }
}

module attributes {stable_mosaic.version = 11 : i64} {
  func.func @_conv_relu_pool_kernel(%arg0: i32, %arg1: memref<4x56x400xf32, #tpu.memory_space<vmem>>, %arg2: memref<400x128xf32, #tpu.memory_space<vmem>>, %arg3: memref<1x128xf32, #tpu.memory_space<vmem>>, %arg4: memref<56x128xf32, #tpu.memory_space<vmem>>) attributes {dimension_semantics = [#tpu.dimension_semantics<parallel>], iteration_bounds = array<i64: 2>, scalar_prefetch = 0 : i64, scratch_operands = 0 : i64, tpu.core_type = #tpu.core_type<tc>, window_params = [{transform_indices = @transform_0, window_bounds = array<i64: 4, 56, 400>}, {pipeline_mode = #tpu.pipeline_mode<synchronous>, transform_indices = @transform_1, window_bounds = array<i64: 400, 128>}, {pipeline_mode = #tpu.pipeline_mode<synchronous>, transform_indices = @transform_2, window_bounds = array<i64: 1, 128>}, {transform_indices = @transform_3, window_bounds = array<i64: 56, 128>}]} {
    %c0 = arith.constant 0 : index
    %c0_0 = arith.constant 0 : index
    %0 = vector.load %arg2[%c0, %c0_0] : memref<400x128xf32, #tpu.memory_space<vmem>>, vector<400x128xf32>
    %c0_1 = arith.constant 0 : index
    %c0_2 = arith.constant 0 : index
    %c0_3 = arith.constant 0 : index
    %1 = vector.load %arg1[%c0_1, %c0_2, %c0_3] : memref<4x56x400xf32, #tpu.memory_space<vmem>>, vector<1x56x400xf32>
    %2 = vector.shape_cast %1 : vector<1x56x400xf32> to vector<56x400xf32>
    %cst = arith.constant dense<0.000000e+00> : vector<56x128xf32>
    %3 = tpu.matmul %2, %0, %cst {dimension_numbers = #tpu.dot_dimension_numbers<[1], [0], [0], [1], [0, 0, 1, 1], [], []>} : vector<56x400xf32>, vector<400x128xf32>, vector<56x128xf32> -> vector<56x128xf32>
    %c1 = arith.constant 1 : index
    %c0_4 = arith.constant 0 : index
    %c0_5 = arith.constant 0 : index
    %4 = vector.load %arg1[%c1, %c0_4, %c0_5] : memref<4x56x400xf32, #tpu.memory_space<vmem>>, vector<1x56x400xf32>
    %5 = vector.shape_cast %4 : vector<1x56x400xf32> to vector<56x400xf32>
    %cst_6 = arith.constant dense<0.000000e+00> : vector<56x128xf32>
    %6 = tpu.matmul %5, %0, %cst_6 {dimension_numbers = #tpu.dot_dimension_numbers<[1], [0], [0], [1], [0, 0, 1, 1], [], []>} : vector<56x400xf32>, vector<400x128xf32>, vector<56x128xf32> -> vector<56x128xf32>
    %c2 = arith.constant 2 : index
    %c0_7 = arith.constant 0 : index
    %c0_8 = arith.constant 0 : index
    %7 = vector.load %arg1[%c2, %c0_7, %c0_8] : memref<4x56x400xf32, #tpu.memory_space<vmem>>, vector<1x56x400xf32>
    %8 = vector.shape_cast %7 : vector<1x56x400xf32> to vector<56x400xf32>
    %cst_9 = arith.constant dense<0.000000e+00> : vector<56x128xf32>
    %9 = tpu.matmul %8, %0, %cst_9 {dimension_numbers = #tpu.dot_dimension_numbers<[1], [0], [0], [1], [0, 0, 1, 1], [], []>} : vector<56x400xf32>, vector<400x128xf32>, vector<56x128xf32> -> vector<56x128xf32>
    %c3 = arith.constant 3 : index
    %c0_10 = arith.constant 0 : index
    %c0_11 = arith.constant 0 : index
    %10 = vector.load %arg1[%c3, %c0_10, %c0_11] : memref<4x56x400xf32, #tpu.memory_space<vmem>>, vector<1x56x400xf32>
    %11 = vector.shape_cast %10 : vector<1x56x400xf32> to vector<56x400xf32>
    %cst_12 = arith.constant dense<0.000000e+00> : vector<56x128xf32>
    %12 = tpu.matmul %11, %0, %cst_12 {dimension_numbers = #tpu.dot_dimension_numbers<[1], [0], [0], [1], [0, 0, 1, 1], [], []>} : vector<56x400xf32>, vector<400x128xf32>, vector<56x128xf32> -> vector<56x128xf32>
    %13 = arith.maximumf %3, %6 : vector<56x128xf32>
    %14 = arith.maximumf %9, %12 : vector<56x128xf32>
    %15 = arith.maximumf %13, %14 : vector<56x128xf32>
    %c0_13 = arith.constant 0 : index
    %c0_14 = arith.constant 0 : index
    %16 = vector.load %arg3[%c0_13, %c0_14] : memref<1x128xf32, #tpu.memory_space<vmem>>, vector<1x128xf32>
    %17 = vector.broadcast %16 : vector<1x128xf32> to vector<56x128xf32>
    %18 = arith.addf %15, %17 : vector<56x128xf32>
    %cst_15 = arith.constant 0.000000e+00 : f32
    %19 = vector.broadcast %cst_15 : f32 to vector<56x128xf32>
    %20 = arith.maximumf %18, %19 : vector<56x128xf32>
    %c0_16 = arith.constant 0 : index
    %c0_17 = arith.constant 0 : index
    %21 = vector.load %arg4[%c0_16, %c0_17] : memref<56x128xf32, #tpu.memory_space<vmem>>, vector<56x128xf32>
    tpu.vector_store %arg4[%c0_16, %c0_17], %20 {strides = array<i32>} : memref<56x128xf32, #tpu.memory_space<vmem>>, vector<56x128xf32>,
    return
  }
  func.func @transform_0(%arg0: i32) -> (i32, i32, i32) {
    %c0_i32 = arith.constant 0 : i32
    %c0_i32_0 = arith.constant 0 : i32
    %c0_i32_1 = arith.constant 0 : i32
    return %c0_i32, %arg0, %c0_i32_0 : i32, i32, i32
  }
  func.func @transform_1(%arg0: i32) -> (i32, i32) {
    %c0_i32 = arith.constant 0 : i32
    %c0_i32_0 = arith.constant 0 : i32
    %c0_i32_1 = arith.constant 0 : i32
    return %c0_i32, %c0_i32_0 : i32, i32
  }
  func.func @transform_2(%arg0: i32) -> (i32, i32) {
    %c0_i32 = arith.constant 0 : i32
    %c0_i32_0 = arith.constant 0 : i32
    %c0_i32_1 = arith.constant 0 : i32
    return %c0_i32, %c0_i32_0 : i32, i32
  }
  func.func @transform_3(%arg0: i32) -> (i32, i32) {
    %c0_i32 = arith.constant 0 : i32
    %c0_i32_0 = arith.constant 0 : i32
    return %arg0, %c0_i32 : i32, i32
  }
}

module attributes {stable_mosaic.version = 11 : i64} {
  func.func @_linear_kernel(%arg0: i32, %arg1: memref<2x1568xf32, #tpu.memory_space<vmem>>, %arg2: memref<1568x128xf32, #tpu.memory_space<vmem>>, %arg3: memref<1x128xf32, #tpu.memory_space<vmem>>, %arg4: memref<2x128xf32, #tpu.memory_space<vmem>>) attributes {dimension_semantics = [#tpu.dimension_semantics<arbitrary>], iteration_bounds = array<i64: 1>, scalar_prefetch = 0 : i64, scratch_operands = 0 : i64, tpu.core_type = #tpu.core_type<tc>, window_params = [{pipeline_mode = #tpu.pipeline_mode<synchronous>, transform_indices = @transform_0, window_bounds = array<i64: 2, 1568>}, {pipeline_mode = #tpu.pipeline_mode<synchronous>, transform_indices = @transform_1, window_bounds = array<i64: 1568, 128>}, {pipeline_mode = #tpu.pipeline_mode<synchronous>, transform_indices = @transform_2, window_bounds = array<i64: 1, 128>}, {pipeline_mode = #tpu.pipeline_mode<synchronous>, transform_indices = @transform_3, window_bounds = array<i64: 2, 128>}]} {
    %c0 = arith.constant 0 : index
    %c0_0 = arith.constant 0 : index
    %0 = vector.load %arg1[%c0, %c0_0] : memref<2x1568xf32, #tpu.memory_space<vmem>>, vector<2x1568xf32>
    %c0_1 = arith.constant 0 : index
    %c0_2 = arith.constant 0 : index
    %1 = vector.load %arg2[%c0_1, %c0_2] : memref<1568x128xf32, #tpu.memory_space<vmem>>, vector<1568x128xf32>
    %cst = arith.constant dense<0.000000e+00> : vector<2x128xf32>
    %2 = tpu.matmul %0, %1, %cst {dimension_numbers = #tpu.dot_dimension_numbers<[1], [0], [0], [1], [0, 0, 1, 1], [], []>} : vector<2x1568xf32>, vector<1568x128xf32>, vector<2x128xf32> -> vector<2x128xf32>
    %c0_3 = arith.constant 0 : index
    %c0_4 = arith.constant 0 : index
    %3 = vector.load %arg3[%c0_3, %c0_4] : memref<1x128xf32, #tpu.memory_space<vmem>>, vector<1x128xf32>
    %4 = vector.broadcast %3 : vector<1x128xf32> to vector<2x128xf32>
    %5 = arith.addf %2, %4 : vector<2x128xf32>
    %c0_5 = arith.constant 0 : index
    %c0_6 = arith.constant 0 : index
    %6 = vector.load %arg4[%c0_5, %c0_6] : memref<2x128xf32, #tpu.memory_space<vmem>>, vector<2x128xf32>
    tpu.vector_store %arg4[%c0_5, %c0_6], %5 {strides = array<i32>} : memref<2x128xf32, #tpu.memory_space<vmem>>, vector<2x128xf32>,
    return
  }
  func.func @transform_0(%arg0: i32) -> (i32, i32) {
    %c0_i32 = arith.constant 0 : i32
    %c0_i32_0 = arith.constant 0 : i32
    %c0_i32_1 = arith.constant 0 : i32
    return %c0_i32, %c0_i32_0 : i32, i32
  }
  func.func @transform_1(%arg0: i32) -> (i32, i32) {
    %c0_i32 = arith.constant 0 : i32
    %c0_i32_0 = arith.constant 0 : i32
    %c0_i32_1 = arith.constant 0 : i32
    return %c0_i32, %c0_i32_0 : i32, i32
  }
  func.func @transform_2(%arg0: i32) -> (i32, i32) {
    %c0_i32 = arith.constant 0 : i32
    %c0_i32_0 = arith.constant 0 : i32
    %c0_i32_1 = arith.constant 0 : i32
    return %c0_i32, %c0_i32_0 : i32, i32
  }
  func.func @transform_3(%arg0: i32) -> (i32, i32) {
    %c0_i32 = arith.constant 0 : i32
    %c0_i32_0 = arith.constant 0 : i32
    %c0_i32_1 = arith.constant 0 : i32
    return %c0_i32, %c0_i32_0 : i32, i32
  }
}

</mosaic_0001>

<bundles_post_ra>
// kernel: cnn_forward.3
= control target key start
LH: loop header
LB: loop body
LE: loop exit
PB: predicated region body
PF: predicated region fallthrough
CT: control target
= control target key end

     0   :  { %s2739_s12 = smov 0   ;;  %s2741_s13 = smov 0   ;;  %s3704_s0 = inlined_call_operand.vmem [shape: f32[4,400,25], index: 0, kind: input, shape index: {}]   ;;  %s3705_s1 = inlined_call_operand.vmem [shape: f32[25,128], index: 1, kind: input, shape index: {}]   ;;  %s3706_s2 = inlined_call_operand.vmem [shape: f32[1,128], index: 2, kind: input, shape index: {}]   ;;  %s3707_s3 = inlined_call_operand.vmem [shape: f32[400,128], index: 3, kind: output, shape index: {}]  }
   0x1   :  { %s2743_s14 = smov 0  }
   0x2 LB: > { %s1995_s15 = sadd.s32 4294967295, %s2713_s14   ;;  %s2756_s16 = sadd.s32 1, %s2713_s14   ;;  %s2713_s14 = sphi %s2743_s14, %s3736_s14   ;;  %s2709_s13 = sphi %s2741_s13, %s3735_s13   ;;  %s2705_s12 = sphi %s2739_s12, %s3734_s12  }
   0x3   : > { %s17_s17 = ssub.s32 %s2713_s14, %s2756_s16  ;;  %s20_s18 = sadd.s32 1, %s2709_s13 }
   0x4   : > { %p18_p0 = scmp.eq.s32.totalorder %s17_s17, 0  ;;  %p27_p1 = scmp.ne.s32.totalorder %s2709_s13, %s2705_s12 }
   0x5   : > { %p28_p2 = scmp.eq.s32.totalorder %s2713_s14, 0  ;;  %p1998_p4 = scmp.ge.s32.totalorder %s2713_s14, 2 }
   0x6   : > { %s2765_s19 = scalar_select %p18_p0, %s2709_s13, %s20_s18  }
   0x7   : > { %p29_p3 = por %p28_p2, %p27_p1  ;;  %127 = sbr.rel (%p1998_p4) target bundleno = 69 (0x45), region = 24 }
   0xe   : > { %130 = sbr.rel (!%p29_p3) target bundleno = 69 (0x45), region = 28  ;;  %s132_s20 = sand.u32 (%p29_p3), 1, %s2709_s13  }
   0xf   : > { %s2184_s21 = smul.u32 (%p29_p3), 200, %s2713_s14 }
  0x10   : > { %s2661_s22 = smul.u32 (%p29_p3), 800, %s132_s20 }
  0x11   : > { %s2773_s25 = scalar_lea.vmem (%p29_p3), %s3704_s0, %s2184_s21 }
  0x12   : > { %v363_v0 = vld [vmem:[%s2773_s25] sm:$0xff] (%p29_p3)  ;;  %v365_v1 = vld [vmem:[%s2773_s25 + $0x8] sm:$0xff] (%p29_p3)  ;;  %v367_v2 = vld [vmem:[%s2773_s25 + $0x10] sm:$0xff] (%p29_p3)  ;;  %s2778_s26 = scalar_lea.vmem (%p29_p3), [#allocation2], %s2661_s22 }
  0x13   : > { %364 = vst [vmem:[%s2778_s26] sm:$0xff] (%p29_p3), %v363_v0  ;;  %366 = vst [vmem:[%s2778_s26 + $0x8] sm:$0xff] (%p29_p3), %v365_v1  ;;  %v369_v3 = vld [vmem:[%s2773_s25 + $0x18] sm:$0xff] (%p29_p3)  ;;  %v371_v4 = vld [vmem:[%s2773_s25 + $0x20] sm:$0xff] (%p29_p3) }
  0x14   : > { %368 = vst [vmem:[%s2778_s26 + $0x10] sm:$0xff] (%p29_p3), %v367_v2  ;;  %v373_v5 = vld [vmem:[%s2773_s25 + $0x28] sm:$0xff] (%p29_p3)  ;;  %370 = vst [vmem:[%s2778_s26 + $0x18] sm:$0xff] (%p29_p3), %v369_v3  ;;  %v375_v6 = vld [vmem:[%s2773_s25 + $0x30] sm:$0xff] (%p29_p3) }
  0x15   : > { %372 = vst [vmem:[%s2778_s26 + $0x20] sm:$0xff] %v371_v4  ;;  %374 = vst [vmem:[%s2778_s26 + $0x28] sm:$0xff] %v373_v5  ;;  %v377_v7 = vld [vmem:[%s2773_s25 + $0x38] sm:$0xff]  ;;  %v379_v8 = vld [vmem:[%s2773_s25 + $0x40] sm:$0xff] }
  0x16   : > { %376 = vst [vmem:[%s2778_s26 + $0x30] sm:$0xff] %v375_v6  ;;  %378 = vst [vmem:[%s2778_s26 + $0x38] sm:$0xff] %v377_v7  ;;  %v381_v9 = vld [vmem:[%s2773_s25 + $0x48] sm:$0xff]  ;;  %v383_v10 = vld [vmem:[%s2773_s25 + $0x50] sm:$0xff] }
  0x17   : > { %380 = vst [vmem:[%s2778_s26 + $0x40] sm:$0xff] %v379_v8  ;;  %v385_v11 = vld [vmem:[%s2773_s25 + $0x58] sm:$0xff]  ;;  %382 = vst [vmem:[%s2778_s26 + $0x48] sm:$0xff] %v381_v9  ;;  %v387_v12 = vld [vmem:[%s2773_s25 + $0x60] sm:$0xff] }
  0x18   : > { %384 = vst [vmem:[%s2778_s26 + $0x50] sm:$0xff] %v383_v10  ;;  %386 = vst [vmem:[%s2778_s26 + $0x58] sm:$0xff] %v385_v11  ;;  %v389_v13 = vld [vmem:[%s2773_s25 + $0x68] sm:$0xff]  ;;  %v391_v14 = vld [vmem:[%s2773_s25 + $0x70] sm:$0xff] }
  0x19   : > { %388 = vst [vmem:[%s2778_s26 + $0x60] sm:$0xff] %v387_v12  ;;  %390 = vst [vmem:[%s2778_s26 + $0x68] sm:$0xff] %v389_v13  ;;  %v393_v15 = vld [vmem:[%s2773_s25 + $0x78] sm:$0xff]  ;;  %v395_v16 = vld [vmem:[%s2773_s25 + $0x80] sm:$0xff] }
  0x1a   : > { %392 = vst [vmem:[%s2778_s26 + $0x70] sm:$0xff] %v391_v14  ;;  %v397_v17 = vld [vmem:[%s2773_s25 + $0x88] sm:$0xff]  ;;  %394 = vst [vmem:[%s2778_s26 + $0x78] sm:$0xff] %v393_v15  ;;  %v399_v18 = vld [vmem:[%s2773_s25 + $0x90] sm:$0xff] }
  0x1b   : > { %396 = vst [vmem:[%s2778_s26 + $0x80] sm:$0xff] %v395_v16  ;;  %398 = vst [vmem:[%s2778_s26 + $0x88] sm:$0xff] %v397_v17  ;;  %v401_v19 = vld [vmem:[%s2773_s25 + $0x98] sm:$0xff]  ;;  %v403_v20 = vld [vmem:[%s2773_s25 + $0xa0] sm:$0xff] }
  0x1c   : > { %400 = vst [vmem:[%s2778_s26 + $0x90] sm:$0xff] %v399_v18  ;;  %402 = vst [vmem:[%s2778_s26 + $0x98] sm:$0xff] %v401_v19  ;;  %v405_v21 = vld [vmem:[%s2773_s25 + $0xa8] sm:$0xff]  ;;  %v407_v22 = vld [vmem:[%s2773_s25 + $0xb0] sm:$0xff] }
  0x1d   : > { %404 = vst [vmem:[%s2778_s26 + $0xa0] sm:$0xff] %v403_v20  ;;  %v409_v23 = vld [vmem:[%s2773_s25 + $0xb8] sm:$0xff]  ;;  %406 = vst [vmem:[%s2778_s26 + $0xa8] sm:$0xff] %v405_v21  ;;  %v411_v24 = vld [vmem:[%s2773_s25 + $0xc0] sm:$0xff] }
  0x1e   : > { %408 = vst [vmem:[%s2778_s26 + $0xb0] sm:$0xff] %v407_v22  ;;  %410 = vst [vmem:[%s2778_s26 + $0xb8] sm:$0xff] %v409_v23  ;;  %v413_v25 = vld [vmem:[%s2773_s25 + $0x190] sm:$0xff]  ;;  %v415_v26 = vld [vmem:[%s2773_s25 + $0x198] sm:$0xff] }
  0x1f   : > { %412 = vst [vmem:[%s2778_s26 + $0xc0] sm:$0xff] %v411_v24  ;;  %414 = vst [vmem:[%s2778_s26 + $0xc8] sm:$0xff] %v413_v25  ;;  %v417_v27 = vld [vmem:[%s2773_s25 + $0x1a0] sm:$0xff]  ;;  %v419_v28 = vld [vmem:[%s2773_s25 + $0x1a8] sm:$0xff] }
  0x20   : > { %416 = vst [vmem:[%s2778_s26 + $0xd0] sm:$0xff] %v415_v26  ;;  %v421_v29 = vld [vmem:[%s2773_s25 + $0x1b0] sm:$0xff]  ;;  %418 = vst [vmem:[%s2778_s26 + $0xd8] sm:$0xff] %v417_v27  ;;  %v423_v30 = vld [vmem:[%s2773_s25 + $0x1b8] sm:$0xff] }
  0x21   : > { %420 = vst [vmem:[%s2778_s26 + $0xe0] sm:$0xff] %v419_v28  ;;  %422 = vst [vmem:[%s2778_s26 + $0xe8] sm:$0xff] %v421_v29  ;;  %v425_v31 = vld [vmem:[%s2773_s25 + $0x1c0] sm:$0xff]  ;;  %v427_v32 = vld [vmem:[%s2773_s25 + $0x1c8] sm:$0xff] }
  0x22   : > { %424 = vst [vmem:[%s2778_s26 + $0xf0] sm:$0xff] %v423_v30  ;;  %426 = vst [vmem:[%s2778_s26 + $0xf8] sm:$0xff] %v425_v31  ;;  %v429_v33 = vld [vmem:[%s2773_s25 + $0x1d0] sm:$0xff]  ;;  %v431_v34 = vld [vmem:[%s2773_s25 + $0x1d8] sm:$0xff] }
  0x23   : > { %428 = vst [vmem:[%s2778_s26 + $0x100] sm:$0xff] %v427_v32  ;;  %v433_v35 = vld [vmem:[%s2773_s25 + $0x1e0] sm:$0xff]  ;;  %430 = vst [vmem:[%s2778_s26 + $0x108] sm:$0xff] %v429_v33  ;;  %v435_v36 = vld [vmem:[%s2773_s25 + $0x1e8] sm:$0xff] }
  0x24   : > { %432 = vst [vmem:[%s2778_s26 + $0x110] sm:$0xff] %v431_v34  ;;  %434 = vst [vmem:[%s2778_s26 + $0x118] sm:$0xff] %v433_v35  ;;  %v437_v37 = vld [vmem:[%s2773_s25 + $0x1f0] sm:$0xff]  ;;  %v439_v38 = vld [vmem:[%s2773_s25 + $0x1f8] sm:$0xff] }
  0x25   : > { %436 = vst [vmem:[%s2778_s26 + $0x120] sm:$0xff] %v435_v36  ;;  %438 = vst [vmem:[%s2778_s26 + $0x128] sm:$0xff] %v437_v37  ;;  %v441_v39 = vld [vmem:[%s2773_s25 + $0x200] sm:$0xff]  ;;  %v443_v40 = vld [vmem:[%s2773_s25 + $0x208] sm:$0xff] }
  0x26   : > { %440 = vst [vmem:[%s2778_s26 + $0x130] sm:$0xff] %v439_v38  ;;  %v445_v41 = vld [vmem:[%s2773_s25 + $0x210] sm:$0xff]  ;;  %442 = vst [vmem:[%s2778_s26 + $0x138] sm:$0xff] %v441_v39  ;;  %v447_v42 = vld [vmem:[%s2773_s25 + $0x218] sm:$0xff] }
  0x27   : > { %444 = vst [vmem:[%s2778_s26 + $0x140] sm:$0xff] %v443_v40  ;;  %446 = vst [vmem:[%s2778_s26 + $0x148] sm:$0xff] %v445_v41  ;;  %v449_v43 = vld [vmem:[%s2773_s25 + $0x220] sm:$0xff]  ;;  %v451_v44 = vld [vmem:[%s2773_s25 + $0x228] sm:$0xff] }
  0x28   : > { %448 = vst [vmem:[%s2778_s26 + $0x150] sm:$0xff] %v447_v42  ;;  %450 = vst [vmem:[%s2778_s26 + $0x158] sm:$0xff] %v449_v43  ;;  %v453_v45 = vld [vmem:[%s2773_s25 + $0x230] sm:$0xff]  ;;  %v455_v46 = vld [vmem:[%s2773_s25 + $0x238] sm:$0xff] }
  0x29   : > { %452 = vst [vmem:[%s2778_s26 + $0x160] sm:$0xff] %v451_v44  ;;  %v457_v47 = vld [vmem:[%s2773_s25 + $0x240] sm:$0xff]  ;;  %454 = vst [vmem:[%s2778_s26 + $0x168] sm:$0xff] %v453_v45  ;;  %v459_v48 = vld [vmem:[%s2773_s25 + $0x248] sm:$0xff] }
  0x2a   : > { %456 = vst [vmem:[%s2778_s26 + $0x170] sm:$0xff] %v455_v46  ;;  %458 = vst [vmem:[%s2778_s26 + $0x178] sm:$0xff] %v457_v47  ;;  %v461_v49 = vld [vmem:[%s2773_s25 + $0x250] sm:$0xff]  ;;  %v463_v50 = vld [vmem:[%s2773_s25 + $0x320] sm:$0xff] }
  0x2b   : > { %460 = vst [vmem:[%s2778_s26 + $0x180] sm:$0xff] %v459_v48  ;;  %462 = vst [vmem:[%s2778_s26 + $0x188] sm:$0xff] %v461_v49  ;;  %v465_v51 = vld [vmem:[%s2773_s25 + $0x328] sm:$0xff]  ;;  %v467_v52 = vld [vmem:[%s2773_s25 + $0x330] sm:$0xff] }
  0x2c   : > { %464 = vst [vmem:[%s2778_s26 + $0x190] sm:$0xff] %v463_v50  ;;  %v469_v53 = vld [vmem:[%s2773_s25 + $0x338] sm:$0xff]  ;;  %466 = vst [vmem:[%s2778_s26 + $0x198] sm:$0xff] %v465_v51  ;;  %v471_v54 = vld [vmem:[%s2773_s25 + $0x340] sm:$0xff] }
  0x2d   : > { %468 = vst [vmem:[%s2778_s26 + $0x1a0] sm:$0xff] %v467_v52  ;;  %470 = vst [vmem:[%s2778_s26 + $0x1a8] sm:$0xff] %v469_v53  ;;  %v473_v55 = vld [vmem:[%s2773_s25 + $0x348] sm:$0xff]  ;;  %v475_v56 = vld [vmem:[%s2773_s25 + $0x350] sm:$0xff] }
  0x2e   : > { %472 = vst [vmem:[%s2778_s26 + $0x1b0] sm:$0xff] %v471_v54  ;;  %474 = vst [vmem:[%s2778_s26 + $0x1b8] sm:$0xff] %v473_v55  ;;  %v477_v57 = vld [vmem:[%s2773_s25 + $0x358] sm:$0xff]  ;;  %v479_v58 = vld [vmem:[%s2773_s25 + $0x360] sm:$0xff] }
  0x2f   : > { %476 = vst [vmem:[%s2778_s26 + $0x1c0] sm:$0xff] %v475_v56  ;;  %v481_v59 = vld [vmem:[%s2773_s25 + $0x368] sm:$0xff]  ;;  %478 = vst [vmem:[%s2778_s26 + $0x1c8] sm:$0xff] %v477_v57  ;;  %v483_v60 = vld [vmem:[%s2773_s25 + $0x370] sm:$0xff] }
  0x30   : > { %480 = vst [vmem:[%s2778_s26 + $0x1d0] sm:$0xff] %v479_v58  ;;  %482 = vst [vmem:[%s2778_s26 + $0x1d8] sm:$0xff] %v481_v59  ;;  %v485_v61 = vld [vmem:[%s2773_s25 + $0x378] sm:$0xff]  ;;  %v487_v62 = vld [vmem:[%s2773_s25 + $0x380] sm:$0xff] }
  0x31   : > { %484 = vst [vmem:[%s2778_s26 + $0x1e0] sm:$0xff] %v483_v60  ;;  %486 = vst [vmem:[%s2778_s26 + $0x1e8] sm:$0xff] %v485_v61  ;;  %v489_v63 = vld [vmem:[%s2773_s25 + $0x388] sm:$0xff]  ;;  %v491_v0 = vld [vmem:[%s2773_s25 + $0x390] sm:$0xff] }
  0x32   : > { %488 = vst [vmem:[%s2778_s26 + $0x1f0] sm:$0xff] %v487_v62  ;;  %v493_v1 = vld [vmem:[%s2773_s25 + $0x398] sm:$0xff]  ;;  %490 = vst [vmem:[%s2778_s26 + $0x1f8] sm:$0xff] %v489_v63  ;;  %v495_v2 = vld [vmem:[%s2773_s25 + $0x3a0] sm:$0xff] }
  0x33   : > { %492 = vst [vmem:[%s2778_s26 + $0x200] sm:$0xff] %v491_v0  ;;  %494 = vst [vmem:[%s2778_s26 + $0x208] sm:$0xff] %v493_v1  ;;  %v497_v3 = vld [vmem:[%s2773_s25 + $0x3a8] sm:$0xff]  ;;  %v499_v4 = vld [vmem:[%s2773_s25 + $0x3b0] sm:$0xff] }
  0x34   : > { %496 = vst [vmem:[%s2778_s26 + $0x210] sm:$0xff] %v495_v2  ;;  %498 = vst [vmem:[%s2778_s26 + $0x218] sm:$0xff] %v497_v3  ;;  %v501_v5 = vld [vmem:[%s2773_s25 + $0x3b8] sm:$0xff]  ;;  %v503_v6 = vld [vmem:[%s2773_s25 + $0x3c0] sm:$0xff] }
  0x35   : > { %500 = vst [vmem:[%s2778_s26 + $0x220] sm:$0xff] %v499_v4  ;;  %v505_v7 = vld [vmem:[%s2773_s25 + $0x3c8] sm:$0xff]  ;;  %502 = vst [vmem:[%s2778_s26 + $0x228] sm:$0xff] %v501_v5  ;;  %v507_v8 = vld [vmem:[%s2773_s25 + $0x3d0] sm:$0xff] }
  0x36   : > { %504 = vst [vmem:[%s2778_s26 + $0x230] sm:$0xff] %v503_v6  ;;  %506 = vst [vmem:[%s2778_s26 + $0x238] sm:$0xff] %v505_v7  ;;  %v509_v9 = vld [vmem:[%s2773_s25 + $0x3d8] sm:$0xff]  ;;  %v511_v10 = vld [vmem:[%s2773_s25 + $0x3e0] sm:$0xff] }
  0x37   : > { %508 = vst [vmem:[%s2778_s26 + $0x240] sm:$0xff] %v507_v8  ;;  %510 = vst [vmem:[%s2778_s26 + $0x248] sm:$0xff] %v509_v9  ;;  %v513_v11 = vld [vmem:[%s2773_s25 + $0x4b0] sm:$0xff]  ;;  %v515_v12 = vld [vmem:[%s2773_s25 + $0x4b8] sm:$0xff] }
  0x38   : > { %512 = vst [vmem:[%s2778_s26 + $0x250] sm:$0xff] %v511_v10  ;;  %v517_v13 = vld [vmem:[%s2773_s25 + $0x4c0] sm:$0xff]  ;;  %514 = vst [vmem:[%s2778_s26 + $0x258] sm:$0xff] %v513_v11  ;;  %v519_v14 = vld [vmem:[%s2773_s25 + $0x4c8] sm:$0xff] }
  0x39   : > { %516 = vst [vmem:[%s2778_s26 + $0x260] sm:$0xff] %v515_v12  ;;  %518 = vst [vmem:[%s2778_s26 + $0x268] sm:$0xff] %v517_v13  ;;  %v521_v15 = vld [vmem:[%s2773_s25 + $0x4d0] sm:$0xff]  ;;  %v523_v16 = vld [vmem:[%s2773_s25 + $0x4d8] sm:$0xff] }
  0x3a   : > { %520 = vst [vmem:[%s2778_s26 + $0x270] sm:$0xff] %v519_v14  ;;  %522 = vst [vmem:[%s2778_s26 + $0x278] sm:$0xff] %v521_v15  ;;  %v525_v17 = vld [vmem:[%s2773_s25 + $0x4e0] sm:$0xff]  ;;  %v527_v18 = vld [vmem:[%s2773_s25 + $0x4e8] sm:$0xff] }
  0x3b   : > { %524 = vst [vmem:[%s2778_s26 + $0x280] sm:$0xff] %v523_v16  ;;  %v529_v19 = vld [vmem:[%s2773_s25 + $0x4f0] sm:$0xff]  ;;  %526 = vst [vmem:[%s2778_s26 + $0x288] sm:$0xff] %v525_v17  ;;  %v531_v20 = vld [vmem:[%s2773_s25 + $0x4f8] sm:$0xff] }
  0x3c   : > { %528 = vst [vmem:[%s2778_s26 + $0x290] sm:$0xff] %v527_v18  ;;  %530 = vst [vmem:[%s2778_s26 + $0x298] sm:$0xff] %v529_v19  ;;  %v533_v21 = vld [vmem:[%s2773_s25 + $0x500] sm:$0xff]  ;;  %v535_v22 = vld [vmem:[%s2773_s25 + $0x508] sm:$0xff] }
  0x3d   : > { %532 = vst [vmem:[%s2778_s26 + $0x2a0] sm:$0xff] %v531_v20  ;;  %534 = vst [vmem:[%s2778_s26 + $0x2a8] sm:$0xff] %v533_v21  ;;  %v537_v23 = vld [vmem:[%s2773_s25 + $0x510] sm:$0xff]  ;;  %v539_v24 = vld [vmem:[%s2773_s25 + $0x518] sm:$0xff] }
  0x3e   : > { %536 = vst [vmem:[%s2778_s26 + $0x2b0] sm:$0xff] %v535_v22  ;;  %v541_v25 = vld [vmem:[%s2773_s25 + $0x520] sm:$0xff]  ;;  %538 = vst [vmem:[%s2778_s26 + $0x2b8] sm:$0xff] %v537_v23  ;;  %v543_v26 = vld [vmem:[%s2773_s25 + $0x528] sm:$0xff] }
  0x3f   : > { %540 = vst [vmem:[%s2778_s26 + $0x2c0] sm:$0xff] %v539_v24  ;;  %542 = vst [vmem:[%s2778_s26 + $0x2c8] sm:$0xff] %v541_v25  ;;  %v545_v27 = vld [vmem:[%s2773_s25 + $0x530] sm:$0xff]  ;;  %v547_v28 = vld [vmem:[%s2773_s25 + $0x538] sm:$0xff] }
  0x40   : > { %544 = vst [vmem:[%s2778_s26 + $0x2d0] sm:$0xff] %v543_v26  ;;  %546 = vst [vmem:[%s2778_s26 + $0x2d8] sm:$0xff] %v545_v27  ;;  %v549_v29 = vld [vmem:[%s2773_s25 + $0x540] sm:$0xff]  ;;  %v551_v30 = vld [vmem:[%s2773_s25 + $0x548] sm:$0xff] }
  0x41   : > { %548 = vst [vmem:[%s2778_s26 + $0x2e0] sm:$0xff] %v547_v28  ;;  %v553_v31 = vld [vmem:[%s2773_s25 + $0x550] sm:$0xff]  ;;  %550 = vst [vmem:[%s2778_s26 + $0x2e8] sm:$0xff] %v549_v29  ;;  %v555_v32 = vld [vmem:[%s2773_s25 + $0x558] sm:$0xff] }
  0x42   : > { %552 = vst [vmem:[%s2778_s26 + $0x2f0] sm:$0xff] %v551_v30  ;;  %554 = vst [vmem:[%s2778_s26 + $0x2f8] sm:$0xff] %v553_v31  ;;  %v557_v33 = vld [vmem:[%s2773_s25 + $0x560] sm:$0xff]  ;;  %v559_v34 = vld [vmem:[%s2773_s25 + $0x568] sm:$0xff] }
  0x43   : > { %556 = vst [vmem:[%s2778_s26 + $0x300] sm:$0xff] %v555_v32  ;;  %558 = vst [vmem:[%s2778_s26 + $0x308] sm:$0xff] %v557_v33  ;;  %v561_v35 = vld [vmem:[%s2773_s25 + $0x570] sm:$0xff] }
  0x44   : > { %560 = vst [vmem:[%s2778_s26 + $0x310] sm:$0xff] %v559_v34  ;;  %562 = vst [vmem:[%s2778_s26 + $0x318] sm:$0xff] %v561_v35 }
  0x45 PF: > { %p2000_p5 = scmp.ge.s32.totalorder %s2713_s14, 1  ;;  %p567_p6 = scmp.lt.s32.totalorder %s2713_s14, 3 }
  0x47   : > { %p568_p7 = pnand %p2000_p5, %p567_p6 }
  0x48   : > { %v604_v36 = vld [vmem:[%s3705_s1] sm:$0xff] (!%p568_p7)  ;;  %v605_v37 = vld [vmem:[%s3705_s1 + $0x8] sm:$0xff] (!%p568_p7)  ;;  %v606_v38 = vld [vmem:[%s3705_s1 + $0x10] sm:$0xff] (!%p568_p7)  ;;  %vm709_vm0 = vcmask (!%p568_p7), 1040384   ;;  %v2715_v39 = vmov (!%p568_p7), 0.0|0.0   ;;  %s574_s8 = sand.u32 (!%p568_p7), 1, %s2705_s12  }
  0x49   : > { %571 = sbr.rel (%p568_p7) target bundleno = 499 (0x1f3), region = 66  ;;  %2633 = vmatprep.subr.bf16.mxu0 (!%p568_p7), %v2715_v39  ;;  %2640 = vmatprep.subr.bf16.mxu1 (!%p568_p7), %v2715_v39  ;;  %v2634_v40 = vpack.c.bf16 (!%p568_p7), %v605_v37, %v604_v36  ;;  %v607_v41 = vld [vmem:[%s3705_s1 + $0x18] sm:$0x1] (!%p568_p7)  ;;  %vm2716_vm1 = vmmov (!%p568_p7), 0   ;;  %v2717_v42 = vmov (!%p568_p7), 0.0   ;;  %vm2718_vm2 = vmmov (!%p568_p7), 1  }
  0x4a   : > { %2309 = vmatprep.mubr.msk.f32.mxu0 (!%p568_p7), %vm2716_vm1, %v2717_v42  ;;  %2392 = vmatprep.mubr.msk.f32.mxu1 (!%p568_p7), %vm2716_vm1, %v2717_v42  ;;  %s2662_s9 = smul.u32 (!%p568_p7), 800, %s574_s8  ;;  %v2637_v43 = vpack.c.bf16 (!%p568_p7), %v607_v41, %v606_v38  ;;  %vm2997_vm3 = vmpackc.low (!%p568_p7), %vm709_vm0, %vm2718_vm2  ;;  %vm633_vm4 = vcmask (!%p568_p7), 203776  }
  0x4b   : > { %2635 = vmatpush3.bf16.msra.mxu0 (!%p568_p7), %v2634_v40  ;;  %2642 = vmatpush3.bf16.msra.mxu1 (!%p568_p7), %v2634_v40  ;;  %s598_s11 = smul.u32 (!%p568_p7), 25, %s1995_s15 }
  0x4c   : > { %2636 = vmatprep.subr.bf16.mxu0 (!%p568_p7), %v2715_v39  ;;  %2643 = vmatprep.subr.bf16.mxu1 (!%p568_p7), %v2715_v39  ;;  %s3005_s10 = scalar_lea.vmem (!%p568_p7), [#allocation2], %s2662_s9 }
  0x4d   : > { %v608_v45 = vld [vmem:[%s3005_s10] sm:$0xff] (!%p568_p7)  ;;  %v2028_v46 = vld [vmem:[%s3005_s10 + $0xc8] sm:$0xff] (!%p568_p7)  ;;  %v2029_v48 = vld [vmem:[%s3005_s10 + $0xd0] sm:$0xff] (!%p568_p7)  ;;  %p599_p8 = scmp.lt.s32.totalorder (!%p568_p7), %s598_s11, 49 }
  0x4e   : > { %v609_v47 = vld [vmem:[%s3005_s10 + $0x8] sm:$0xff] (!%p568_p7)  ;;  %v610_v49 = vld [vmem:[%s3005_s10 + $0x10] sm:$0xff] (!%p568_p7)  ;;  %v2030_v50 = vld [vmem:[%s3005_s10 + $0xd8] sm:$0xff] (!%p568_p7) }
  0x4f   : > { %2639 = vmatpush3.bf16.msk.msra.mxu0 (!%p568_p7), %vm2997_vm3, %v2637_v43  ;;  %2646 = vmatpush3.bf16.msk.msra.mxu1 (!%p568_p7), %vm2997_vm3, %v2637_v43  ;;  %v611_v51 = vld [vmem:[%s3005_s10 + $0x18] sm:$0xff] (!%p568_p7)  ;;  %v2031_v52 = vld [vmem:[%s3005_s10 + $0xe0] sm:$0xff] (!%p568_p7)  ;;  %v2032_v54 = vld [vmem:[%s3005_s10 + $0xe8] sm:$0xff] (!%p568_p7) }
  0x50   : > { %2647 = vmatprep.subr.bf16.mxu0 %v2715_v39  ;;  %2654 = vmatprep.subr.bf16.mxu1 %v2715_v39  ;;  %v612_v53 = vld [vmem:[%s3005_s10 + $0x20] sm:$0xff]  ;;  %v613_v55 = vld [vmem:[%s3005_s10 + $0x28] sm:$0xff]  ;;  %v2033_v56 = vld [vmem:[%s3005_s10 + $0xf0] sm:$0xff]  ;;  %s3738_s11 = smov (!%p599_p8, %s598_s11), 49 }
  0x51   : > { %v614_v57 = vld [vmem:[%s3005_s10 + $0x30] sm:$0xff]  ;;  %v2034_v58 = vld [vmem:[%s3005_s10 + $0xf8] sm:$0xff]  ;;  %v2035_v60 = vld [vmem:[%s3005_s10 + $0x100] sm:$0xff]  ;;  %s2001_s15 = sshll.u32 %s3738_s11, 3 }
  0x52   : > { %2310 = vmatmul.mubr.msk.f32.vlgmr.msra.gmra.mrb[0].mxu0 %vm633_vm4, %v608_v45  ;;  %2393 = vmatmul.mubr.msk.f32.vlgmr.msra.gmra.mrb[0].mxu1 %vm633_vm4, %v2028_v46  ;;  %v615_v59 = vld [vmem:[%s3005_s10 + $0x38] sm:$0xff]  ;;  %v616_v61 = vld [vmem:[%s3005_s10 + $0x40] sm:$0xff]  ;;  %v2036_v62 = vld [vmem:[%s3005_s10 + $0x108] sm:$0xff]  ;;  %s3571_s20 = scalar_lea.vmem %s3707_s3, %s2001_s15 }
  0x53   : > { %2649 = vmatpush3.bf16.msra.mxu0 %v2634_v40  ;;  %2656 = vmatpush3.bf16.msra.mxu1 %v2634_v40  ;;  %v617_v63 = vld [vmem:[%s3005_s10 + $0x48] sm:$0xff]  ;;  %v2037_v0 = vld [vmem:[%s3005_s10 + $0x110] sm:$0xff]  ;;  %v2038_v2 = vld [vmem:[%s3005_s10 + $0x118] sm:$0xff] }
  0x54   : > { %2312 = vmatprep.mubr.msk.f32.mxu0 %vm2716_vm1, %v2717_v42  ;;  %2395 = vmatprep.mubr.msk.f32.mxu1 %vm2716_vm1, %v2717_v42  ;;  %v618_v1 = vld [vmem:[%s3005_s10 + $0x50] sm:$0xff]  ;;  %v619_v3 = vld [vmem:[%s3005_s10 + $0x58] sm:$0xff]  ;;  %v2039_v4 = vld [vmem:[%s3005_s10 + $0x120] sm:$0xff] }
  0x55   : > { %2650 = vmatprep.subr.bf16.mxu0 %v2715_v39  ;;  %2657 = vmatprep.subr.bf16.mxu1 %v2715_v39  ;;  %v620_v5 = vld [vmem:[%s3005_s10 + $0x60] sm:$0xff]  ;;  %v2040_v6 = vld [vmem:[%s3005_s10 + $0x128] sm:$0xff]  ;;  %v2041_v8 = vld [vmem:[%s3005_s10 + $0x130] sm:$0xff] }
  0x56   : > { %2313 = vmatmul.mubr.msk.f32.gmra.mrb[2].mxu0 %vm633_vm4, %v609_v47  ;;  %2396 = vmatmul.mubr.msk.f32.gmra.mrb[2].mxu1 %vm633_vm4, %v2029_v48  ;;  %v621_v7 = vld [vmem:[%s3005_s10 + $0x68] sm:$0xff]  ;;  %v622_v9 = vld [vmem:[%s3005_s10 + $0x70] sm:$0xff]  ;;  %v2042_v10 = vld [vmem:[%s3005_s10 + $0x138] sm:$0xff] }
  0x57   : > { %2315 = vmatprep.mubr.msk.f32.mxu0 %vm2716_vm1, %v2717_v42  ;;  %2398 = vmatprep.mubr.msk.f32.mxu1 %vm2716_vm1, %v2717_v42  ;;  %v623_v11 = vld [vmem:[%s3005_s10 + $0x78] sm:$0xff]  ;;  %v2043_v12 = vld [vmem:[%s3005_s10 + $0x140] sm:$0xff]  ;;  %v2044_v14 = vld [vmem:[%s3005_s10 + $0x148] sm:$0xff] }
  0x58   : > { %2653 = vmatpush3.bf16.msk.msra.mxu0 %vm2997_vm3, %v2637_v43  ;;  %2660 = vmatpush3.bf16.msk.msra.mxu1 %vm2997_vm3, %v2637_v43  ;;  %v624_v13 = vld [vmem:[%s3005_s10 + $0x80] sm:$0xff]  ;;  %v625_v15 = vld [vmem:[%s3005_s10 + $0x88] sm:$0xff]  ;;  %v2045_v16 = vld [vmem:[%s3005_s10 + $0x150] sm:$0xff] }
  0x59   : > { %v626_v17 = vld [vmem:[%s3005_s10 + $0x90] sm:$0xff]  ;;  %v2046_v18 = vld [vmem:[%s3005_s10 + $0x158] sm:$0xff]  ;;  %v2047_v20 = vld [vmem:[%s3005_s10 + $0x160] sm:$0xff] }
  0x5a   : > { %2316 = vmatmul.mubr.msk.f32.gmra.mrb[4].mxu0 %vm633_vm4, %v610_v49  ;;  %2399 = vmatmul.mubr.msk.f32.gmra.mrb[4].mxu1 %vm633_vm4, %v2030_v50  ;;  %v627_v19 = vld [vmem:[%s3005_s10 + $0x98] sm:$0xff]  ;;  %v628_v21 = vld [vmem:[%s3005_s10 + $0xa0] sm:$0xff]  ;;  %v2048_v22 = vld [vmem:[%s3005_s10 + $0x168] sm:$0xff] }
  0x5b   : > { %2318 = vmatprep.mubr.msk.f32.mxu0 %vm2716_vm1, %v2717_v42  ;;  %2401 = vmatprep.mubr.msk.f32.mxu1 %vm2716_vm1, %v2717_v42  ;;  %v629_v23 = vld [vmem:[%s3005_s10 + $0xa8] sm:$0xff]  ;;  %v2049_v24 = vld [vmem:[%s3005_s10 + $0x170] sm:$0xff]  ;;  %v2050_v26 = vld [vmem:[%s3005_s10 + $0x178] sm:$0xff] }
  0x5c   : > { %v630_v25 = vld [vmem:[%s3005_s10 + $0xb0] sm:$0xff]  ;;  %v631_v27 = vld [vmem:[%s3005_s10 + $0xb8] sm:$0xff]  ;;  %v2051_v28 = vld [vmem:[%s3005_s10 + $0x180] sm:$0xff] }
  0x5d   : > { %v632_v29 = vld [vmem:[%s3005_s10 + $0xc0] sm:$0xff]  ;;  %v2052_v30 = vld [vmem:[%s3005_s10 + $0x188] sm:$0xff]  ;;  %v2079_v31 = vld [vmem:[%s3005_s10 + $0x190] sm:$0xff] }
  0x5e   : > { %2319 = vmatmul.mubr.msk.f32.gmra.mrb[6].mxu0 %vm633_vm4, %v611_v51  ;;  %2402 = vmatmul.mubr.msk.f32.gmra.mrb[6].mxu1 %vm633_vm4, %v2031_v52  ;;  %v2130_v32 = vld [vmem:[%s3005_s10 + $0x258] sm:$0xff]  ;;  %v2131_v34 = vld [vmem:[%s3005_s10 + $0x260] sm:$0xff]  ;;  %v2132_v36 = vld [vmem:[%s3005_s10 + $0x268] sm:$0xff] }
  0x5f   : > { %2321 = vmatprep.mubr.msk.f32.mxu0 %vm2716_vm1, %v2717_v42  ;;  %2404 = vmatprep.mubr.msk.f32.mxu1 %vm2716_vm1, %v2717_v42  ;;  %v2080_v33 = vld [vmem:[%s3005_s10 + $0x198] sm:$0xff]  ;;  %v2081_v35 = vld [vmem:[%s3005_s10 + $0x1a0] sm:$0xff]  ;;  %v2082_v37 = vld [vmem:[%s3005_s10 + $0x1a8] sm:$0xff] }
  0x60   : > { %v2133_v38 = vld [vmem:[%s3005_s10 + $0x270] sm:$0xff]  ;;  %v2134_v40 = vld [vmem:[%s3005_s10 + $0x278] sm:$0xff]  ;;  %v2135_v43 = vld [vmem:[%s3005_s10 + $0x280] sm:$0xff] }
  0x61   : > { %v2083_v39 = vld [vmem:[%s3005_s10 + $0x1b0] sm:$0xff]  ;;  %v2084_v41 = vld [vmem:[%s3005_s10 + $0x1b8] sm:$0xff]  ;;  %v2085_v44 = vld [vmem:[%s3005_s10 + $0x1c0] sm:$0xff] }
  0x62   : > { %2322 = vmatmul.mubr.msk.f32.gmra.mrb[8].mxu0 %vm633_vm4, %v612_v53  ;;  %2405 = vmatmul.mubr.msk.f32.gmra.mrb[8].mxu1 %vm633_vm4, %v2032_v54  ;;  %v2136_v45 = vld [vmem:[%s3005_s10 + $0x288] sm:$0xff]  ;;  %v2137_v47 = vld [vmem:[%s3005_s10 + $0x290] sm:$0xff]  ;;  %v2138_v49 = vld [vmem:[%s3005_s10 + $0x298] sm:$0xff] }
  0x63   : > { %2324 = vmatprep.mubr.msk.f32.mxu0 %vm2716_vm1, %v2717_v42  ;;  %2407 = vmatprep.mubr.msk.f32.mxu1 %vm2716_vm1, %v2717_v42  ;;  %v2086_v46 = vld [vmem:[%s3005_s10 + $0x1c8] sm:$0xff]  ;;  %v2087_v48 = vld [vmem:[%s3005_s10 + $0x1d0] sm:$0xff]  ;;  %v2088_v50 = vld [vmem:[%s3005_s10 + $0x1d8] sm:$0xff] }
  0x64   : > { %v2139_v51 = vld [vmem:[%s3005_s10 + $0x2a0] sm:$0xff]  ;;  %v2140_v53 = vld [vmem:[%s3005_s10 + $0x2a8] sm:$0xff] }
  0x65   : > { %v2089_v52 = vld [vmem:[%s3005_s10 + $0x1e0] sm:$0xff]  ;;  %v2090_v54 = vld [vmem:[%s3005_s10 + $0x1e8] sm:$0xff] }
  0x66   : > { %2325 = vmatmul.mubr.msk.f32.gmra.mrb[10].mxu0 %vm633_vm4, %v613_v55  ;;  %2408 = vmatmul.mubr.msk.f32.gmra.mrb[10].mxu1 %vm633_vm4, %v2033_v56  ;;  %v2141_v55 = vld [vmem:[%s3005_s10 + $0x2b0] sm:$0xff] }
  0x67   : > { %2327 = vmatprep.mubr.msk.f32.mxu0 %vm2716_vm1, %v2717_v42  ;;  %2410 = vmatprep.mubr.msk.f32.mxu1 %vm2716_vm1, %v2717_v42  ;;  %v2091_v56 = vld [vmem:[%s3005_s10 + $0x1f0] sm:$0xff] }
  0x6a   : > { %2328 = vmatmul.mubr.msk.f32.gmra.mrb[12].mxu0 %vm633_vm4, %v614_v57  ;;  %2411 = vmatmul.mubr.msk.f32.gmra.mrb[12].mxu1 %vm633_vm4, %v2034_v58  ;;  %v2142_v57 = vld [vmem:[%s3005_s10 + $0x2b8] sm:$0xff] }
  0x6b   : > { %2330 = vmatprep.mubr.msk.f32.mxu0 %vm2716_vm1, %v2717_v42  ;;  %2413 = vmatprep.mubr.msk.f32.mxu1 %vm2716_vm1, %v2717_v42  ;;  %v2092_v58 = vld [vmem:[%s3005_s10 + $0x1f8] sm:$0xff] }
  0x6e   : > { %2331 = vmatmul.mubr.msk.f32.gmra.mrb[14].mxu0 %vm633_vm4, %v615_v59  ;;  %2414 = vmatmul.mubr.msk.f32.gmra.mrb[14].mxu1 %vm633_vm4, %v2035_v60  ;;  %v2143_v59 = vld [vmem:[%s3005_s10 + $0x2c0] sm:$0xff] }
  0x6f   : > { %2333 = vmatprep.mubr.msk.f32.mxu0 %vm2716_vm1, %v2717_v42  ;;  %2416 = vmatprep.mubr.msk.f32.mxu1 %vm2716_vm1, %v2717_v42  ;;  %v2093_v60 = vld [vmem:[%s3005_s10 + $0x200] sm:$0xff] }
  0x72   : > { %2334 = vmatmul.mubr.msk.f32.gmra.mrb[16].mxu0 %vm633_vm4, %v616_v61  ;;  %2417 = vmatmul.mubr.msk.f32.gmra.mrb[16].mxu1 %vm633_vm4, %v2036_v62  ;;  %v2144_v61 = vld [vmem:[%s3005_s10 + $0x2c8] sm:$0xff] }
  0x73   : > { %2336 = vmatprep.mubr.msk.f32.mxu0 %vm2716_vm1, %v2717_v42  ;;  %2419 = vmatprep.mubr.msk.f32.mxu1 %vm2716_vm1, %v2717_v42  ;;  %v2094_v62 = vld [vmem:[%s3005_s10 + $0x208] sm:$0xff] }
  0x76   : > { %2337 = vmatmul.mubr.msk.f32.gmra.mrb[18].mxu0 %vm633_vm4, %v617_v63  ;;  %2420 = vmatmul.mubr.msk.f32.gmra.mrb[18].mxu1 %vm633_vm4, %v2037_v0  ;;  %v2145_v63 = vld [vmem:[%s3005_s10 + $0x2d0] sm:$0xff] }
  0x77   : > { %2339 = vmatprep.mubr.msk.f32.mxu0 %vm2716_vm1, %v2717_v42  ;;  %2422 = vmatprep.mubr.msk.f32.mxu1 %vm2716_vm1, %v2717_v42  ;;  %v2095_v0 = vld [vmem:[%s3005_s10 + $0x210] sm:$0xff] }
  0x7a   : > { %2340 = vmatmul.mubr.msk.f32.gmra.mrb[20].mxu0 %vm633_vm4, %v618_v1  ;;  %2423 = vmatmul.mubr.msk.f32.gmra.mrb[20].mxu1 %vm633_vm4, %v2038_v2  ;;  %v2146_v1 = vld [vmem:[%s3005_s10 + $0x2d8] sm:$0xff] }
  0x7b   : > { %2342 = vmatprep.mubr.msk.f32.mxu0 %vm2716_vm1, %v2717_v42  ;;  %2425 = vmatprep.mubr.msk.f32.mxu1 %vm2716_vm1, %v2717_v42  ;;  %v2096_v2 = vld [vmem:[%s3005_s10 + $0x218] sm:$0xff] }
  0x7e   : > { %2343 = vmatmul.mubr.msk.f32.gmra.mrb[22].mxu0 %vm633_vm4, %v619_v3  ;;  %2426 = vmatmul.mubr.msk.f32.gmra.mrb[22].mxu1 %vm633_vm4, %v2039_v4  ;;  %v2147_v3 = vld [vmem:[%s3005_s10 + $0x2e0] sm:$0xff] }
  0x7f   : > { %2345 = vmatprep.mubr.msk.f32.mxu0 %vm2716_vm1, %v2717_v42  ;;  %2428 = vmatprep.mubr.msk.f32.mxu1 %vm2716_vm1, %v2717_v42  ;;  %v2097_v4 = vld [vmem:[%s3005_s10 + $0x220] sm:$0xff] }
  0x82   : > { %2346 = vmatmul.mubr.msk.f32.gmra.mrb[24].mxu0 %vm633_vm4, %v620_v5  ;;  %2429 = vmatmul.mubr.msk.f32.gmra.mrb[24].mxu1 %vm633_vm4, %v2040_v6  ;;  %v2148_v5 = vld [vmem:[%s3005_s10 + $0x2e8] sm:$0xff] }
  0x83   : > { %2348 = vmatprep.mubr.msk.f32.mxu0 %vm2716_vm1, %v2717_v42  ;;  %2431 = vmatprep.mubr.msk.f32.mxu1 %vm2716_vm1, %v2717_v42  ;;  %v2098_v6 = vld [vmem:[%s3005_s10 + $0x228] sm:$0xff] }
  0x86   : > { %2349 = vmatmul.mubr.msk.f32.gmra.mrb[26].mxu0 %vm633_vm4, %v621_v7  ;;  %2432 = vmatmul.mubr.msk.f32.gmra.mrb[26].mxu1 %vm633_vm4, %v2041_v8  ;;  %v2149_v7 = vld [vmem:[%s3005_s10 + $0x2f0] sm:$0xff] }
  0x87   : > { %2351 = vmatprep.mubr.msk.f32.mxu0 %vm2716_vm1, %v2717_v42  ;;  %2434 = vmatprep.mubr.msk.f32.mxu1 %vm2716_vm1, %v2717_v42  ;;  %v2099_v8 = vld [vmem:[%s3005_s10 + $0x230] sm:$0xff] }
  0x8a   : > { %2352 = vmatmul.mubr.msk.f32.gmra.mrb[28].mxu0 %vm633_vm4, %v622_v9  ;;  %2435 = vmatmul.mubr.msk.f32.gmra.mrb[28].mxu1 %vm633_vm4, %v2042_v10  ;;  %v2150_v9 = vld [vmem:[%s3005_s10 + $0x2f8] sm:$0xff] }
  0x8b   : > { %2354 = vmatprep.mubr.msk.f32.mxu0 %vm2716_vm1, %v2717_v42  ;;  %2437 = vmatprep.mubr.msk.f32.mxu1 %vm2716_vm1, %v2717_v42  ;;  %v2100_v10 = vld [vmem:[%s3005_s10 + $0x238] sm:$0xff] }
  0x8e   : > { %2355 = vmatmul.mubr.msk.f32.gmra.mrb[30].mxu0 %vm633_vm4, %v623_v11  ;;  %2438 = vmatmul.mubr.msk.f32.gmra.mrb[30].mxu1 %vm633_vm4, %v2043_v12  ;;  %v2151_v11 = vld [vmem:[%s3005_s10 + $0x300] sm:$0xff] }
  0x8f   : > { %2357 = vmatprep.mubr.msk.f32.mxu0 %vm2716_vm1, %v2717_v42  ;;  %2440 = vmatprep.mubr.msk.f32.mxu1 %vm2716_vm1, %v2717_v42  ;;  %v2101_v12 = vld [vmem:[%s3005_s10 + $0x240] sm:$0xff] }
  0x92   : > { %2358 = vmatmul.mubr.msk.f32.gmra.mrb[32].mxu0 %vm633_vm4, %v624_v13  ;;  %2441 = vmatmul.mubr.msk.f32.gmra.mrb[32].mxu1 %vm633_vm4, %v2044_v14  ;;  %v2152_v13 = vld [vmem:[%s3005_s10 + $0x308] sm:$0xff] }
  0x93   : > { %2360 = vmatprep.mubr.msk.f32.mxu0 %vm2716_vm1, %v2717_v42  ;;  %2443 = vmatprep.mubr.msk.f32.mxu1 %vm2716_vm1, %v2717_v42  ;;  %v2102_v14 = vld [vmem:[%s3005_s10 + $0x248] sm:$0xff] }
  0x96   : > { %2361 = vmatmul.mubr.msk.f32.gmra.mrb[34].mxu0 %vm633_vm4, %v625_v15  ;;  %2444 = vmatmul.mubr.msk.f32.gmra.mrb[34].mxu1 %vm633_vm4, %v2045_v16  ;;  %v2153_v15 = vld [vmem:[%s3005_s10 + $0x310] sm:$0xff] }
  0x97   : > { %2363 = vmatprep.mubr.msk.f32.mxu0 %vm2716_vm1, %v2717_v42  ;;  %2446 = vmatprep.mubr.msk.f32.mxu1 %vm2716_vm1, %v2717_v42  ;;  %v2103_v16 = vld [vmem:[%s3005_s10 + $0x250] sm:$0xff] }
  0x9a   : > { %2364 = vmatmul.mubr.msk.f32.gmra.mrb[36].mxu0 %vm633_vm4, %v626_v17  ;;  %2447 = vmatmul.mubr.msk.f32.gmra.mrb[36].mxu1 %vm633_vm4, %v2046_v18  ;;  %v2154_v17 = vld [vmem:[%s3005_s10 + $0x318] sm:$0xff] }
  0x9b   : > { %2366 = vmatprep.mubr.msk.f32.mxu0 %vm2716_vm1, %v2717_v42  ;;  %2449 = vmatprep.mubr.msk.f32.mxu1 %vm2716_vm1, %v2717_v42 }
  0x9e   : > { %2367 = vmatmul.mubr.msk.f32.gmra.mrb[38].mxu0 %vm633_vm4, %v627_v19  ;;  %2450 = vmatmul.mubr.msk.f32.gmra.mrb[38].mxu1 %vm633_vm4, %v2047_v20 }
  0x9f   : > { %2369 = vmatprep.mubr.msk.f32.mxu0 %vm2716_vm1, %v2717_v42  ;;  %2452 = vmatprep.mubr.msk.f32.mxu1 %vm2716_vm1, %v2717_v42 }
  0xa2   : > { %2370 = vmatmul.mubr.msk.f32.gmra.mrb[40].mxu0 %vm633_vm4, %v628_v21  ;;  %2453 = vmatmul.mubr.msk.f32.gmra.mrb[40].mxu1 %vm633_vm4, %v2048_v22 }
  0xa3   : > { %2372 = vmatprep.mubr.msk.f32.mxu0 %vm2716_vm1, %v2717_v42  ;;  %2455 = vmatprep.mubr.msk.f32.mxu1 %vm2716_vm1, %v2717_v42 }
  0xa6   : > { %2373 = vmatmul.mubr.msk.f32.gmra.mrb[42].mxu0 %vm633_vm4, %v629_v23  ;;  %2456 = vmatmul.mubr.msk.f32.gmra.mrb[42].mxu1 %vm633_vm4, %v2049_v24 }
  0xa7   : > { %2375 = vmatprep.mubr.msk.f32.mxu0 %vm2716_vm1, %v2717_v42  ;;  %2458 = vmatprep.mubr.msk.f32.mxu1 %vm2716_vm1, %v2717_v42 }
  0xaa   : > { %2376 = vmatmul.mubr.msk.f32.gmra.mrb[44].mxu0 %vm633_vm4, %v630_v25  ;;  %2459 = vmatmul.mubr.msk.f32.gmra.mrb[44].mxu1 %vm633_vm4, %v2050_v26 }
  0xab   : > { %2378 = vmatprep.mubr.msk.f32.mxu0 %vm2716_vm1, %v2717_v42  ;;  %2461 = vmatprep.mubr.msk.f32.mxu1 %vm2716_vm1, %v2717_v42 }
  0xae   : > { %2379 = vmatmul.mubr.msk.f32.gmra.mrb[46].mxu0 %vm633_vm4, %v631_v27  ;;  %2462 = vmatmul.mubr.msk.f32.gmra.mrb[46].mxu1 %vm633_vm4, %v2051_v28 }
  0xaf   : > { %2381 = vmatprep.mubr.msk.f32.mxu0 %vm2716_vm1, %v2717_v42  ;;  %2464 = vmatprep.mubr.msk.f32.mxu1 %vm2716_vm1, %v2717_v42 }
  0xb2   : > { %2382 = vmatmul.mubr.msk.f32.gmra.mrb[48].mxu0 %vm633_vm4, %v632_v29  ;;  %2465 = vmatmul.mubr.msk.f32.gmra.mrb[48].mxu1 %vm633_vm4, %v2052_v30 }
  0xb3   : > { %2475 = vmatprep.mubr.msk.f32.mxu0 %vm2716_vm1, %v2717_v42  ;;  %2558 = vmatprep.mubr.msk.f32.mxu1 %vm2716_vm1, %v2717_v42 }
  0xb6   : > { %2476 = vmatmul.mubr.msk.f32.vlgmr.msra.gmra.mrb[50].mxu0 %vm633_vm4, %v2079_v31  ;;  %2559 = vmatmul.mubr.msk.f32.vlgmr.msra.gmra.mrb[50].mxu1 %vm633_vm4, %v2130_v32 }
  0xb7   : > { %2478 = vmatprep.mubr.msk.f32.mxu0 %vm2716_vm1, %v2717_v42  ;;  %2561 = vmatprep.mubr.msk.f32.mxu1 %vm2716_vm1, %v2717_v42 }
  0xba   : > { %2479 = vmatmul.mubr.msk.f32.gmra.mrb[52].mxu0 %vm633_vm4, %v2080_v33  ;;  %2562 = vmatmul.mubr.msk.f32.gmra.mrb[52].mxu1 %vm633_vm4, %v2131_v34 }
  0xbb   : > { %2481 = vmatprep.mubr.msk.f32.mxu0 %vm2716_vm1, %v2717_v42  ;;  %2564 = vmatprep.mubr.msk.f32.mxu1 %vm2716_vm1, %v2717_v42 }
  0xbe   : > { %2482 = vmatmul.mubr.msk.f32.gmra.mrb[54].mxu0 %vm633_vm4, %v2081_v35  ;;  %2565 = vmatmul.mubr.msk.f32.gmra.mrb[54].mxu1 %vm633_vm4, %v2132_v36 }
  0xbf   : > { %2484 = vmatprep.mubr.msk.f32.mxu0 %vm2716_vm1, %v2717_v42  ;;  %2567 = vmatprep.mubr.msk.f32.mxu1 %vm2716_vm1, %v2717_v42 }
  0xc2   : > { %2485 = vmatmul.mubr.msk.f32.gmra.mrb[56].mxu0 %vm633_vm4, %v2082_v37  ;;  %2568 = vmatmul.mubr.msk.f32.gmra.mrb[56].mxu1 %vm633_vm4, %v2133_v38 }
  0xc3   : > { %2487 = vmatprep.mubr.msk.f32.mxu0 %vm2716_vm1, %v2717_v42  ;;  %2570 = vmatprep.mubr.msk.f32.mxu1 %vm2716_vm1, %v2717_v42 }
  0xc6   : > { %2488 = vmatmul.mubr.msk.f32.gmra.mrb[58].mxu0 %vm633_vm4, %v2083_v39  ;;  %2571 = vmatmul.mubr.msk.f32.gmra.mrb[58].mxu1 %vm633_vm4, %v2134_v40 }
  0xc7   : > { %2490 = vmatprep.mubr.msk.f32.mxu0 %vm2716_vm1, %v2717_v42  ;;  %2573 = vmatprep.mubr.msk.f32.mxu1 %vm2716_vm1, %v2717_v42 }
  0xca   : > { %2491 = vmatmul.mubr.msk.f32.gmra.mrb[60].mxu0 %vm633_vm4, %v2084_v41  ;;  %2574 = vmatmul.mubr.msk.f32.gmra.mrb[60].mxu1 %vm633_vm4, %v2135_v43 }
  0xcb   : > { %2493 = vmatprep.mubr.msk.f32.mxu0 %vm2716_vm1, %v2717_v42  ;;  %2576 = vmatprep.mubr.msk.f32.mxu1 %vm2716_vm1, %v2717_v42 }
  0xce   : > { %2494 = vmatmul.mubr.msk.f32.gmra.mrb[62].mxu0 %vm633_vm4, %v2085_v44  ;;  %2577 = vmatmul.mubr.msk.f32.gmra.mrb[62].mxu1 %vm633_vm4, %v2136_v45 }
  0xcf   : > { %2496 = vmatprep.mubr.msk.f32.mxu0 %vm2716_vm1, %v2717_v42  ;;  %2579 = vmatprep.mubr.msk.f32.mxu1 %vm2716_vm1, %v2717_v42 }
  0xd2   : > { %2497 = vmatmul.mubr.msk.f32.gmra.mrb[64].mxu0 %vm633_vm4, %v2086_v46  ;;  %2580 = vmatmul.mubr.msk.f32.gmra.mrb[64].mxu1 %vm633_vm4, %v2137_v47 }
  0xd3   : > { %2499 = vmatprep.mubr.msk.f32.mxu0 %vm2716_vm1, %v2717_v42  ;;  %2582 = vmatprep.mubr.msk.f32.mxu1 %vm2716_vm1, %v2717_v42 }
  0xd6   : > { %2500 = vmatmul.mubr.msk.f32.gmra.mrb[66].mxu0 %vm633_vm4, %v2087_v48  ;;  %2583 = vmatmul.mubr.msk.f32.gmra.mrb[66].mxu1 %vm633_vm4, %v2138_v49 }
  0xd7   : > { %2502 = vmatprep.mubr.msk.f32.mxu0 %vm2716_vm1, %v2717_v42  ;;  %2585 = vmatprep.mubr.msk.f32.mxu1 %vm2716_vm1, %v2717_v42 }
  0xda   : > { %2503 = vmatmul.mubr.msk.f32.gmra.mrb[68].mxu0 %vm633_vm4, %v2088_v50  ;;  %2586 = vmatmul.mubr.msk.f32.gmra.mrb[68].mxu1 %vm633_vm4, %v2139_v51 }
  0xdb   : > { %2505 = vmatprep.mubr.msk.f32.mxu0 %vm2716_vm1, %v2717_v42  ;;  %2588 = vmatprep.mubr.msk.f32.mxu1 %vm2716_vm1, %v2717_v42 }
  0xde   : > { %2506 = vmatmul.mubr.msk.f32.gmra.mrb[70].mxu0 %vm633_vm4, %v2089_v52  ;;  %2589 = vmatmul.mubr.msk.f32.gmra.mrb[70].mxu1 %vm633_vm4, %v2140_v53 }
  0xdf   : > { %2508 = vmatprep.mubr.msk.f32.mxu0 %vm2716_vm1, %v2717_v42  ;;  %2591 = vmatprep.mubr.msk.f32.mxu1 %vm2716_vm1, %v2717_v42 }
  0xe2   : > { %2509 = vmatmul.mubr.msk.f32.gmra.mrb[72].mxu0 %vm633_vm4, %v2090_v54  ;;  %2592 = vmatmul.mubr.msk.f32.gmra.mrb[72].mxu1 %vm633_vm4, %v2141_v55 }
  0xe3   : > { %2511 = vmatprep.mubr.msk.f32.mxu0 %vm2716_vm1, %v2717_v42  ;;  %2594 = vmatprep.mubr.msk.f32.mxu1 %vm2716_vm1, %v2717_v42 }
  0xe6   : > { %2512 = vmatmul.mubr.msk.f32.gmra.mrb[74].mxu0 %vm633_vm4, %v2091_v56  ;;  %2595 = vmatmul.mubr.msk.f32.gmra.mrb[74].mxu1 %vm633_vm4, %v2142_v57 }
  0xe7   : > { %2514 = vmatprep.mubr.msk.f32.mxu0 %vm2716_vm1, %v2717_v42  ;;  %2597 = vmatprep.mubr.msk.f32.mxu1 %vm2716_vm1, %v2717_v42 }
  0xea   : > { %2515 = vmatmul.mubr.msk.f32.gmra.mrb[76].mxu0 %vm633_vm4, %v2092_v58  ;;  %2598 = vmatmul.mubr.msk.f32.gmra.mrb[76].mxu1 %vm633_vm4, %v2143_v59 }
  0xeb   : > { %2517 = vmatprep.mubr.msk.f32.mxu0 %vm2716_vm1, %v2717_v42  ;;  %2600 = vmatprep.mubr.msk.f32.mxu1 %vm2716_vm1, %v2717_v42 }
  0xee   : > { %2518 = vmatmul.mubr.msk.f32.gmra.mrb[78].mxu0 %vm633_vm4, %v2093_v60  ;;  %2601 = vmatmul.mubr.msk.f32.gmra.mrb[78].mxu1 %vm633_vm4, %v2144_v61 }
  0xef   : > { %2520 = vmatprep.mubr.msk.f32.mxu0 %vm2716_vm1, %v2717_v42  ;;  %2603 = vmatprep.mubr.msk.f32.mxu1 %vm2716_vm1, %v2717_v42 }
  0xf2   : > { %2521 = vmatmul.mubr.msk.f32.gmra.mrb[80].mxu0 %vm633_vm4, %v2094_v62  ;;  %2604 = vmatmul.mubr.msk.f32.gmra.mrb[80].mxu1 %vm633_vm4, %v2145_v63 }
  0xf3   : > { %2523 = vmatprep.mubr.msk.f32.mxu0 %vm2716_vm1, %v2717_v42  ;;  %2606 = vmatprep.mubr.msk.f32.mxu1 %vm2716_vm1, %v2717_v42 }
  0xf6   : > { %2524 = vmatmul.mubr.msk.f32.gmra.mrb[82].mxu0 %vm633_vm4, %v2095_v0  ;;  %2607 = vmatmul.mubr.msk.f32.gmra.mrb[82].mxu1 %vm633_vm4, %v2146_v1 }
  0xf7   : > { %2526 = vmatprep.mubr.msk.f32.mxu0 %vm2716_vm1, %v2717_v42  ;;  %2609 = vmatprep.mubr.msk.f32.mxu1 %vm2716_vm1, %v2717_v42 }
  0xfa   : > { %2527 = vmatmul.mubr.msk.f32.gmra.mrb[84].mxu0 %vm633_vm4, %v2096_v2  ;;  %2610 = vmatmul.mubr.msk.f32.gmra.mrb[84].mxu1 %vm633_vm4, %v2147_v3 }
  0xfb   : > { %2529 = vmatprep.mubr.msk.f32.mxu0 %vm2716_vm1, %v2717_v42  ;;  %2612 = vmatprep.mubr.msk.f32.mxu1 %vm2716_vm1, %v2717_v42 }
  0xfe   : > { %2530 = vmatmul.mubr.msk.f32.gmra.mrb[86].mxu0 %vm633_vm4, %v2097_v4  ;;  %2613 = vmatmul.mubr.msk.f32.gmra.mrb[86].mxu1 %vm633_vm4, %v2148_v5 }
  0xff   : > { %2532 = vmatprep.mubr.msk.f32.mxu0 %vm2716_vm1, %v2717_v42  ;;  %2615 = vmatprep.mubr.msk.f32.mxu1 %vm2716_vm1, %v2717_v42 }
 0x102   : > { %2533 = vmatmul.mubr.msk.f32.gmra.mrb[88].mxu0 %vm633_vm4, %v2098_v6  ;;  %2616 = vmatmul.mubr.msk.f32.gmra.mrb[88].mxu1 %vm633_vm4, %v2149_v7 }
 0x103   : > { %2535 = vmatprep.mubr.msk.f32.mxu0 %vm2716_vm1, %v2717_v42  ;;  %2618 = vmatprep.mubr.msk.f32.mxu1 %vm2716_vm1, %v2717_v42 }
 0x106   : > { %2536 = vmatmul.mubr.msk.f32.gmra.mrb[90].mxu0 %vm633_vm4, %v2099_v8  ;;  %2619 = vmatmul.mubr.msk.f32.gmra.mrb[90].mxu1 %vm633_vm4, %v2150_v9 }
 0x107   : > { %2538 = vmatprep.mubr.msk.f32.mxu0 %vm2716_vm1, %v2717_v42  ;;  %2621 = vmatprep.mubr.msk.f32.mxu1 %vm2716_vm1, %v2717_v42 }
 0x10a   : > { %2539 = vmatmul.mubr.msk.f32.gmra.mrb[92].mxu0 %vm633_vm4, %v2100_v10  ;;  %2622 = vmatmul.mubr.msk.f32.gmra.mrb[92].mxu1 %vm633_vm4, %v2151_v11 }
 0x10b   : > { %2541 = vmatprep.mubr.msk.f32.mxu0 %vm2716_vm1, %v2717_v42  ;;  %2624 = vmatprep.mubr.msk.f32.mxu1 %vm2716_vm1, %v2717_v42 }
 0x10e   : > { %2542 = vmatmul.mubr.msk.f32.gmra.mrb[94].mxu0 %vm633_vm4, %v2101_v12  ;;  %2625 = vmatmul.mubr.msk.f32.gmra.mrb[94].mxu1 %vm633_vm4, %v2152_v13 }
 0x10f   : > { %2544 = vmatprep.mubr.msk.f32.mxu0 %vm2716_vm1, %v2717_v42  ;;  %2627 = vmatprep.mubr.msk.f32.mxu1 %vm2716_vm1, %v2717_v42 }
 0x112   : > { %2545 = vmatmul.mubr.msk.f32.gmra.mrb[96].mxu0 %vm633_vm4, %v2102_v14  ;;  %2628 = vmatmul.mubr.msk.f32.gmra.mrb[96].mxu1 %vm633_vm4, %v2153_v15 }
 0x113   : > { %2547 = vmatprep.mubr.msk.f32.mxu0 %vm2716_vm1, %v2717_v42  ;;  %2630 = vmatprep.mubr.msk.f32.mxu1 %vm2716_vm1, %v2717_v42 }
 0x116   : > { %2548 = vmatmul.mubr.msk.f32.gmra.mrb[98].mxu0 %vm633_vm4, %v2103_v16  ;;  %2631 = vmatmul.mubr.msk.f32.gmra.mrb[98].mxu1 %vm633_vm4, %v2154_v17 }
 0x125   : > { %v3407_v18 = vpop.f32.mrb[0].mxu0  ;;  %v3409_v19 = vpop.f32.mrb[0].mxu1 }
 0x126   : > { %v1776_v20 = vmax.f32 %v3407_v18, %v3409_v19  ;;  %v2311_v21 = vpop.f32.mrb[1].mxu0  ;;  %v2394_v22 = vpop.f32.mrb[1].mxu1 }
 0x129   : > { %v3413_v23 = vpop.f32.mrb[2].mxu0  ;;  %v3415_v24 = vpop.f32.mrb[2].mxu1 }
 0x12a   : > { %v2314_v25 = vpop.f32.mrb[3].mxu0  ;;  %v2397_v26 = vpop.f32.mrb[3].mxu1 }
 0x12d   : > { %v3419_v27 = vpop.f32.mrb[4].mxu0  ;;  %v3421_v28 = vpop.f32.mrb[4].mxu1 }
 0x12e   : > { %v2317_v30 = vpop.f32.mrb[5].mxu0  ;;  %v2400_v31 = vpop.f32.mrb[5].mxu1 }
 0x131   : > { %v3425_v32 = vpop.f32.mrb[6].mxu0  ;;  %v3427_v33 = vpop.f32.mrb[6].mxu1 }
 0x132   : > { %v2320_v35 = vpop.f32.mrb[7].mxu0  ;;  %v2403_v36 = vpop.f32.mrb[7].mxu1 }
 0x135   : > { %v3431_v37 = vpop.f32.mrb[8].mxu0  ;;  %v3433_v38 = vpop.f32.mrb[8].mxu1 }
 0x136   : > { %v2323_v40 = vpop.f32.mrb[9].mxu0  ;;  %v2406_v41 = vpop.f32.mrb[9].mxu1 }
 0x139   : > { %v3437_v43 = vpop.f32.mrb[10].mxu0  ;;  %v3439_v44 = vpop.f32.mrb[10].mxu1 }
 0x13a   : > { %v2326_v46 = vpop.f32.mrb[11].mxu0  ;;  %v2409_v47 = vpop.f32.mrb[11].mxu1 }
 0x13d   : > { %v3443_v48 = vpop.f32.mrb[12].mxu0  ;;  %v3445_v49 = vpop.f32.mrb[12].mxu1 }
 0x13e   : > { %v2329_v51 = vpop.f32.mrb[13].mxu0  ;;  %v2412_v52 = vpop.f32.mrb[13].mxu1 }
 0x141   : > { %v3449_v53 = vpop.f32.mrb[14].mxu0  ;;  %v3451_v54 = vpop.f32.mrb[14].mxu1 }
 0x142   : > { %v2332_v56 = vpop.f32.mrb[15].mxu0  ;;  %v2415_v57 = vpop.f32.mrb[15].mxu1 }
 0x145   : > { %v3455_v58 = vpop.f32.mrb[16].mxu0  ;;  %v3457_v59 = vpop.f32.mrb[16].mxu1 }
 0x146   : > { %v2335_v61 = vpop.f32.mrb[17].mxu0  ;;  %v2418_v62 = vpop.f32.mrb[17].mxu1 }
 0x149   : > { %v3461_v63 = vpop.f32.mrb[18].mxu0  ;;  %v3463_v0 = vpop.f32.mrb[18].mxu1 }
 0x14a   : > { %v2338_v2 = vpop.f32.mrb[19].mxu0  ;;  %v2421_v3 = vpop.f32.mrb[19].mxu1 }
 0x14d   : > { %v3467_v4 = vpop.f32.mrb[20].mxu0  ;;  %v3469_v5 = vpop.f32.mrb[20].mxu1 }
 0x14e   : > { %v2341_v7 = vpop.f32.mrb[21].mxu0  ;;  %v2424_v8 = vpop.f32.mrb[21].mxu1 }
 0x151   : > { %v3473_v9 = vpop.f32.mrb[22].mxu0  ;;  %v3475_v10 = vpop.f32.mrb[22].mxu1 }
 0x152   : > { %v2344_v12 = vpop.f32.mrb[23].mxu0  ;;  %v2427_v13 = vpop.f32.mrb[23].mxu1 }
 0x155   : > { %v3479_v14 = vpop.f32.mrb[24].mxu0  ;;  %v3481_v15 = vpop.f32.mrb[24].mxu1 }
 0x156   : > { %v2347_v17 = vpop.f32.mrb[25].mxu0  ;;  %v2430_v21 = vpop.f32.mrb[25].mxu1 }
 0x159   : > { %v3485_v22 = vpop.f32.mrb[26].mxu0  ;;  %v3487_v25 = vpop.f32.mrb[26].mxu1 }
 0x15a   : > { %v2350_v30 = vpop.f32.mrb[27].mxu0  ;;  %v2433_v31 = vpop.f32.mrb[27].mxu1 }
 0x15d   : > { %v3491_v35 = vpop.f32.mrb[28].mxu0  ;;  %v3493_v36 = vpop.f32.mrb[28].mxu1 }
 0x15e   : > { %v2353_v41 = vpop.f32.mrb[29].mxu0  ;;  %v2436_v46 = vpop.f32.mrb[29].mxu1 }
 0x161   : > { %v3497_v47 = vpop.f32.mrb[30].mxu0  ;;  %v3499_v51 = vpop.f32.mrb[30].mxu1 }
 0x162   : > { %v2356_v56 = vpop.f32.mrb[31].mxu0  ;;  %v2439_v57 = vpop.f32.mrb[31].mxu1 }
 0x165   : > { %v3503_v61 = vpop.f32.mrb[32].mxu0  ;;  %v3505_v62 = vpop.f32.mrb[32].mxu1 }
 0x166   : > { %v2359_v3 = vpop.f32.mrb[33].mxu0  ;;  %v2442_v7 = vpop.f32.mrb[33].mxu1 }
 0x169   : > { %v3509_v8 = vpop.f32.mrb[34].mxu0  ;;  %v3511_v12 = vpop.f32.mrb[34].mxu1 }
 0x16a   : > { %v2362_v17 = vpop.f32.mrb[35].mxu0  ;;  %v2445_v21 = vpop.f32.mrb[35].mxu1 }
 0x16d   : > { %v3515_v30 = vpop.f32.mrb[36].mxu0  ;;  %v3517_v31 = vpop.f32.mrb[36].mxu1 }
 0x16e   : > { %v2365_v46 = vpop.f32.mrb[37].mxu0  ;;  %v2448_v56 = vpop.f32.mrb[37].mxu1 }
 0x171   : > { %v3521_v57 = vpop.f32.mrb[38].mxu0  ;;  %v3523_v3 = vpop.f32.mrb[38].mxu1 }
 0x172   : > { %v2368_v2 = vpop.f32.mrb[39].mxu0  ;;  %v2451_v13 = vpop.f32.mrb[39].mxu1 }
 0x175   : > { %v3527_v17 = vpop.f32.mrb[40].mxu0  ;;  %v3529_v21 = vpop.f32.mrb[40].mxu1 }
 0x176   : > { %v2371_v41 = vpop.f32.mrb[41].mxu0  ;;  %v2454_v46 = vpop.f32.mrb[41].mxu1 }
 0x179   : > { %v3533_v56 = vpop.f32.mrb[42].mxu0  ;;  %v3535_v40 = vpop.f32.mrb[42].mxu1 }
 0x17a   : > { %v2374_v7 = vpop.f32.mrb[43].mxu0  ;;  %v2457_v2 = vpop.f32.mrb[43].mxu1 }
 0x17d   : > { %v3539_v13 = vpop.f32.mrb[44].mxu0  ;;  %v3541_v16 = vpop.f32.mrb[44].mxu1 }
 0x17e   : > { %v2377_v6 = vpop.f32.mrb[45].mxu0  ;;  %v2460_v52 = vpop.f32.mrb[45].mxu1 }
 0x181   : > { %v3547_v41 = vpop.f32.mrb[46].mxu0  ;;  %v3549_v46 = vpop.f32.mrb[46].mxu1 }
 0x182   : > { %v2380_v7 = vpop.f32.mrb[47].mxu0  ;;  %v2463_v2 = vpop.f32.mrb[47].mxu1 }
 0x183   : > { %v3562_v7 = vld [vmem:[%s3706_s2] ss:$0 sm:$0xff] }
 0x185   : > { %v3553_v1 = vpop.f32.mrb[48].mxu0  ;;  %v3555_v60 = vpop.f32.mrb[48].mxu1 }
 0x186   : > { %v2383_v52 = vpop.f32.mrb[49].mxu0  ;;  %v2466_v11 = vpop.f32.mrb[49].mxu1 }
 0x189   : > { %v1361_v55 = vpop.f32.mrb[50].mxu0  ;;  %v1652_v50 = vpop.f32.mrb[50].mxu1 }
 0x18a   : > { %v1801_v45 = vmax.f32 %v1361_v55, %v1652_v50  ;;  %v2477_v39 = vpop.f32.mrb[51].mxu0  ;;  %v2560_v34 = vpop.f32.mrb[51].mxu1 }
 0x18b   : > { %v3710_v39 = vmax.f32 %v3413_v23, %v3415_v24 }
 0x18c   : > { %v1826_v2 = vmax.f32 %v1776_v20, %v1801_v45 }
 0x18d   : > { %v1366_v26 = vpop.f32.mrb[52].mxu0  ;;  %v1657_v6 = vpop.f32.mrb[52].mxu1 }
 0x18e   : > { %v1858_v11 = vadd.f32 %v3562_v7, %v1826_v2  ;;  %v1802_v52 = vmax.f32 %v1366_v26, %v1657_v6  ;;  %v2480_v29 = vpop.f32.mrb[53].mxu0  ;;  %v2563_v42 = vpop.f32.mrb[53].mxu1  ;;  %v3711_v26 = vmax.f32 %v3419_v27, %v3421_v28 }
 0x190   : > { %v1883_v34 = vmax.f32 %v1858_v11, 0.0  ;;  %v1827_v18 = vmax.f32 %v3710_v39, %v1802_v52 }
 0x191   : > { %v1371_v19 = vpop.f32.mrb[54].mxu0  ;;  %v1662_v20 = vpop.f32.mrb[54].mxu1 }
 0x192   : > { %1908 = vst [vmem:[%s3571_s20] sm:$0xff] %v1883_v34  ;;  %v1859_v45 = vadd.f32 %v3562_v7, %v1827_v18  ;;  %v1803_v50 = vmax.f32 %v1371_v19, %v1662_v20  ;;  %v2483_v42 = vpop.f32.mrb[55].mxu0  ;;  %v2566_v29 = vpop.f32.mrb[55].mxu1  ;;  %v3712_v18 = vmax.f32 %v3425_v32, %v3427_v33 }
 0x194   : > { %v1884_v55 = vmax.f32 %v1859_v45, 0.0  ;;  %v1828_v6 = vmax.f32 %v3711_v26, %v1803_v50 }
 0x195   : > { %v1376_v2 = vpop.f32.mrb[56].mxu0  ;;  %v1667_v11 = vpop.f32.mrb[56].mxu1 }
 0x196   : > { %1909 = vst [vmem:[%s3571_s20 + $0x8] sm:$0xff] %v1884_v55  ;;  %v1860_v23 = vadd.f32 %v3562_v7, %v1828_v6  ;;  %v1804_v24 = vmax.f32 %v1376_v2, %v1667_v11  ;;  %v2486_v52 = vpop.f32.mrb[57].mxu0  ;;  %v2569_v34 = vpop.f32.mrb[57].mxu1  ;;  %v3713_v55 = vmax.f32 %v3431_v37, %v3433_v38 }
 0x197   : > { %v3714_v52 = vmax.f32 %v3437_v43, %v3439_v44 }
 0x198   : > { %v1885_v39 = vmax.f32 %v1860_v23, 0.0  ;;  %v1829_v19 = vmax.f32 %v3712_v18, %v1804_v24 }
 0x199   : > { %v1381_v20 = vpop.f32.mrb[58].mxu0  ;;  %v1672_v45 = vpop.f32.mrb[58].mxu1 }
 0x19a   : > { %1910 = vst [vmem:[%s3571_s20 + $0x10] sm:$0xff] %v1885_v39  ;;  %v1861_v27 = vadd.f32 %v3562_v7, %v1829_v19  ;;  %v1805_v28 = vmax.f32 %v1381_v20, %v1672_v45  ;;  %v2489_v50 = vpop.f32.mrb[59].mxu0  ;;  %v2572_v42 = vpop.f32.mrb[59].mxu1 }
 0x19c   : > { %v1886_v29 = vmax.f32 %v1861_v27, 0.0  ;;  %v1830_v26 = vmax.f32 %v3713_v55, %v1805_v28  ;;  %v3715_v27 = vmax.f32 %v3443_v48, %v3445_v49 }
 0x19d   : > { %v1386_v6 = vpop.f32.mrb[60].mxu0  ;;  %v1677_v2 = vpop.f32.mrb[60].mxu1 }
 0x19e   : > { %1911 = vst [vmem:[%s3571_s20 + $0x18] sm:$0xff] %v1886_v29  ;;  %v1862_v32 = vadd.f32 %v3562_v7, %v1830_v26  ;;  %v1806_v33 = vmax.f32 %v1386_v6, %v1677_v2  ;;  %v2492_v11 = vpop.f32.mrb[61].mxu0  ;;  %v2575_v23 = vpop.f32.mrb[61].mxu1  ;;  %v3716_v6 = vmax.f32 %v3449_v53, %v3451_v54 }
 0x1a0   : > { %v1887_v24 = vmax.f32 %v1862_v32, 0.0  ;;  %v1831_v34 = vmax.f32 %v3714_v52, %v1806_v33  ;;  %v3717_v52 = vmax.f32 %v3455_v58, %v3457_v59 }
 0x1a1   : > { %v1391_v39 = vpop.f32.mrb[62].mxu0  ;;  %v1682_v18 = vpop.f32.mrb[62].mxu1 }
 0x1a2   : > { %1912 = vst [vmem:[%s3571_s20 + $0x20] sm:$0xff] %v1887_v24  ;;  %v1863_v37 = vadd.f32 %v3562_v7, %v1831_v34  ;;  %v1807_v38 = vmax.f32 %v1391_v39, %v1682_v18  ;;  %v2495_v19 = vpop.f32.mrb[63].mxu0  ;;  %v2578_v20 = vpop.f32.mrb[63].mxu1 }
 0x1a3   : > { %v3718_v20 = vmax.f32 %v3461_v63, %v3463_v0 }
 0x1a4   : > { %v1888_v45 = vmax.f32 %v1863_v37, 0.0  ;;  %v1832_v28 = vmax.f32 %v3715_v27, %v1807_v38 }
 0x1a5   : > { %v1396_v50 = vpop.f32.mrb[64].mxu0  ;;  %v1687_v42 = vpop.f32.mrb[64].mxu1 }
 0x1a6   : > { %1913 = vst [vmem:[%s3571_s20 + $0x28] sm:$0xff] %v1888_v45  ;;  %v1864_v43 = vadd.f32 %v3562_v7, %v1832_v28  ;;  %v1808_v44 = vmax.f32 %v1396_v50, %v1687_v42  ;;  %v2498_v29 = vpop.f32.mrb[65].mxu0  ;;  %v2581_v55 = vpop.f32.mrb[65].mxu1 }
 0x1a8   : > { %v1889_v26 = vmax.f32 %v1864_v43, 0.0  ;;  %v1833_v2 = vmax.f32 %v3716_v6, %v1808_v44  ;;  %v3719_v44 = vmax.f32 %v3467_v4, %v3469_v5 }
 0x1a9   : > { %v1401_v32 = vpop.f32.mrb[66].mxu0  ;;  %v1692_v33 = vpop.f32.mrb[66].mxu1 }
 0x1aa   : > { %1914 = vst [vmem:[%s3571_s20 + $0x30] sm:$0xff] %v1889_v26  ;;  %v1865_v48 = vadd.f32 %v3562_v7, %v1833_v2  ;;  %v1809_v49 = vmax.f32 %v1401_v32, %v1692_v33  ;;  %v2501_v11 = vpop.f32.mrb[67].mxu0  ;;  %v2584_v23 = vpop.f32.mrb[67].mxu1  ;;  %v3720_v33 = vmax.f32 %v3473_v9, %v3475_v10 }
 0x1ac   : > { %v1890_v24 = vmax.f32 %v1865_v48, 0.0  ;;  %v1834_v34 = vmax.f32 %v3717_v52, %v1809_v49 }
 0x1ad   : > { %v1406_v39 = vpop.f32.mrb[68].mxu0  ;;  %v1697_v18 = vpop.f32.mrb[68].mxu1 }
 0x1ae   : > { %1915 = vst [vmem:[%s3571_s20 + $0x38] sm:$0xff] %v1890_v24  ;;  %v1866_v53 = vadd.f32 %v3562_v7, %v1834_v34  ;;  %v1810_v54 = vmax.f32 %v1406_v39, %v1697_v18  ;;  %v2504_v37 = vpop.f32.mrb[69].mxu0  ;;  %v2587_v38 = vpop.f32.mrb[69].mxu1  ;;  %v3721_v34 = vmax.f32 %v3479_v14, %v3481_v15 }
 0x1b0   : > { %v1891_v19 = vmax.f32 %v1866_v53, 0.0  ;;  %v1835_v45 = vmax.f32 %v3718_v20, %v1810_v54 }
 0x1b1   : > { %v1411_v27 = vpop.f32.mrb[70].mxu0  ;;  %v1702_v28 = vpop.f32.mrb[70].mxu1 }
 0x1b2   : > { %1916 = vst [vmem:[%s3571_s20 + $0x40] sm:$0xff] %v1891_v19  ;;  %v1867_v58 = vadd.f32 %v3562_v7, %v1835_v45  ;;  %v1811_v59 = vmax.f32 %v1411_v27, %v1702_v28  ;;  %v2507_v50 = vpop.f32.mrb[71].mxu0  ;;  %v2590_v42 = vpop.f32.mrb[71].mxu1  ;;  %v3722_v19 = vmax.f32 %v3485_v22, %v3487_v25 }
 0x1b3   : > { %v3723_v50 = vmax.f32 %v3491_v35, %v3493_v36 }
 0x1b4   : > { %v1892_v43 = vmax.f32 %v1867_v58, 0.0  ;;  %v1836_v29 = vmax.f32 %v3719_v44, %v1811_v59 }
 0x1b5   : > { %v1416_v55 = vpop.f32.mrb[72].mxu0  ;;  %v1707_v26 = vpop.f32.mrb[72].mxu1 }
 0x1b6   : > { %1917 = vst [vmem:[%s3571_s20 + $0x48] sm:$0xff] %v1892_v43  ;;  %v1868_v63 = vadd.f32 %v3562_v7, %v1836_v29  ;;  %v1812_v0 = vmax.f32 %v1416_v55, %v1707_v26  ;;  %v2510_v6 = vpop.f32.mrb[73].mxu0  ;;  %v2593_v2 = vpop.f32.mrb[73].mxu1 }
 0x1b8   : > { %v1893_v32 = vmax.f32 %v1868_v63, 0.0  ;;  %v1837_v48 = vmax.f32 %v3720_v33, %v1812_v0  ;;  %v3724_v63 = vmax.f32 %v3497_v47, %v3499_v51 }
 0x1b9   : > { %v1421_v49 = vpop.f32.mrb[74].mxu0  ;;  %v1712_v11 = vpop.f32.mrb[74].mxu1 }
 0x1ba   : > { %1918 = vst [vmem:[%s3571_s20 + $0x50] sm:$0xff] %v1893_v32  ;;  %v1869_v4 = vadd.f32 %v3562_v7, %v1837_v48  ;;  %v1813_v5 = vmax.f32 %v1421_v49, %v1712_v11  ;;  %v2513_v23 = vpop.f32.mrb[75].mxu0  ;;  %v2596_v24 = vpop.f32.mrb[75].mxu1  ;;  %v3725_v49 = vmax.f32 %v3503_v61, %v3505_v62 }
 0x1bc   : > { %v1894_v52 = vmax.f32 %v1869_v4, 0.0  ;;  %v1838_v39 = vmax.f32 %v3721_v34, %v1813_v5  ;;  %v3726_v34 = vmax.f32 %v3509_v8, %v3511_v12 }
 0x1bd   : > { %v1426_v18 = vpop.f32.mrb[76].mxu0  ;;  %v1717_v53 = vpop.f32.mrb[76].mxu1 }
 0x1be   : > { %1919 = vst [vmem:[%s3571_s20 + $0x58] sm:$0xff] %v1894_v52  ;;  %v1870_v9 = vadd.f32 %v3562_v7, %v1838_v39  ;;  %v1814_v10 = vmax.f32 %v1426_v18, %v1717_v53  ;;  %v2516_v54 = vpop.f32.mrb[77].mxu0  ;;  %v2599_v37 = vpop.f32.mrb[77].mxu1 }
 0x1bf   : > { %v3727_v37 = vmax.f32 %v3515_v30, %v3517_v31 }
 0x1c0   : > { %v1895_v38 = vmax.f32 %v1870_v9, 0.0  ;;  %v1839_v20 = vmax.f32 %v3722_v19, %v1814_v10 }
 0x1c1   : > { %v1431_v45 = vpop.f32.mrb[78].mxu0  ;;  %v1722_v27 = vpop.f32.mrb[78].mxu1 }
 0x1c2   : > { %1920 = vst [vmem:[%s3571_s20 + $0x60] sm:$0xff] %v1895_v38  ;;  %v1871_v14 = vadd.f32 %v3562_v7, %v1839_v20  ;;  %v1815_v15 = vmax.f32 %v1431_v45, %v1722_v27  ;;  %v2519_v28 = vpop.f32.mrb[79].mxu0  ;;  %v2602_v58 = vpop.f32.mrb[79].mxu1 }
 0x1c4   : > { %v1896_v59 = vmax.f32 %v1871_v14, 0.0  ;;  %v1840_v42 = vmax.f32 %v3723_v50, %v1815_v15  ;;  %v3728_v15 = vmax.f32 %v3521_v57, %v3523_v3 }
 0x1c5   : > { %v1436_v43 = vpop.f32.mrb[80].mxu0  ;;  %v1727_v44 = vpop.f32.mrb[80].mxu1 }
 0x1c6   : > { %1921 = vst [vmem:[%s3571_s20 + $0x68] sm:$0xff] %v1896_v59  ;;  %v1872_v22 = vadd.f32 %v3562_v7, %v1840_v42  ;;  %v1816_v25 = vmax.f32 %v1436_v43, %v1727_v44  ;;  %v2522_v29 = vpop.f32.mrb[81].mxu0  ;;  %v2605_v55 = vpop.f32.mrb[81].mxu1  ;;  %v3729_v44 = vmax.f32 %v3527_v17, %v3529_v21 }
 0x1c8   : > { %v1897_v26 = vmax.f32 %v1872_v22, 0.0  ;;  %v1841_v0 = vmax.f32 %v3724_v63, %v1816_v25 }
 0x1c9   : > { %v1441_v6 = vpop.f32.mrb[82].mxu0  ;;  %v1732_v2 = vpop.f32.mrb[82].mxu1 }
 0x1ca   : > { %1922 = vst [vmem:[%s3571_s20 + $0x70] sm:$0xff] %v1897_v26  ;;  %v1873_v35 = vadd.f32 %v3562_v7, %v1841_v0  ;;  %v1817_v36 = vmax.f32 %v1441_v6, %v1732_v2  ;;  %v2525_v32 = vpop.f32.mrb[83].mxu0  ;;  %v2608_v33 = vpop.f32.mrb[83].mxu1  ;;  %v3730_v0 = vmax.f32 %v3533_v56, %v3535_v40 }
 0x1cc   : > { %v1898_v48 = vmax.f32 %v1873_v35, 0.0  ;;  %v1842_v11 = vmax.f32 %v3725_v49, %v1817_v36 }
 0x1cd   : > { %v1446_v4 = vpop.f32.mrb[84].mxu0  ;;  %v1737_v5 = vpop.f32.mrb[84].mxu1 }
 0x1ce   : > { %1923 = vst [vmem:[%s3571_s20 + $0x78] sm:$0xff] %v1898_v48  ;;  %v1874_v47 = vadd.f32 %v3562_v7, %v1842_v11  ;;  %v1818_v51 = vmax.f32 %v1446_v4, %v1737_v5  ;;  %v2528_v23 = vpop.f32.mrb[85].mxu0  ;;  %v2611_v24 = vpop.f32.mrb[85].mxu1  ;;  %v3731_v48 = vmax.f32 %v3539_v13, %v3541_v16 }
 0x1cf   : > { %v3732_v23 = vmax.f32 %v3547_v41, %v3549_v46 }
 0x1d0   : > { %v1899_v52 = vmax.f32 %v1874_v47, 0.0  ;;  %v1843_v39 = vmax.f32 %v3726_v34, %v1818_v51 }
 0x1d1   : > { %v1451_v18 = vpop.f32.mrb[86].mxu0  ;;  %v1742_v53 = vpop.f32.mrb[86].mxu1 }
 0x1d2   : > { %1924 = vst [vmem:[%s3571_s20 + $0x80] sm:$0xff] %v1899_v52  ;;  %v1875_v61 = vadd.f32 %v3562_v7, %v1843_v39  ;;  %v1819_v62 = vmax.f32 %v1451_v18, %v1742_v53  ;;  %v2531_v9 = vpop.f32.mrb[87].mxu0  ;;  %v2614_v10 = vpop.f32.mrb[87].mxu1 }
 0x1d4   : > { %v1900_v54 = vmax.f32 %v1875_v61, 0.0  ;;  %v1844_v38 = vmax.f32 %v3727_v37, %v1819_v62  ;;  %v3733_v61 = vmax.f32 %v3553_v1, %v3555_v60 }
 0x1d5   : > { %v1456_v19 = vpop.f32.mrb[88].mxu0  ;;  %v1747_v20 = vpop.f32.mrb[88].mxu1 }
 0x1d6   : > { %1925 = vst [vmem:[%s3571_s20 + $0x88] sm:$0xff] %v1900_v54  ;;  %v1876_v8 = vadd.f32 %v3562_v7, %v1844_v38  ;;  %v1820_v12 = vmax.f32 %v1456_v19, %v1747_v20  ;;  %v2534_v45 = vpop.f32.mrb[89].mxu0  ;;  %v2617_v27 = vpop.f32.mrb[89].mxu1 }
 0x1d8   : > { %v1901_v14 = vmax.f32 %v1876_v8, 0.0  ;;  %v1845_v28 = vmax.f32 %v3728_v15, %v1820_v12 }
 0x1d9   : > { %v1461_v58 = vpop.f32.mrb[90].mxu0  ;;  %v1752_v59 = vpop.f32.mrb[90].mxu1 }
 0x1da   : > { %1926 = vst [vmem:[%s3571_s20 + $0x90] sm:$0xff] %v1901_v14  ;;  %v1877_v30 = vadd.f32 %v3562_v7, %v1845_v28  ;;  %v1821_v31 = vmax.f32 %v1461_v58, %v1752_v59  ;;  %v2537_v50 = vpop.f32.mrb[91].mxu0  ;;  %v2620_v42 = vpop.f32.mrb[91].mxu1 }
 0x1dc   : > { %v1902_v43 = vmax.f32 %v1877_v30, 0.0  ;;  %v1846_v22 = vmax.f32 %v3729_v44, %v1821_v31 }
 0x1dd   : > { %v1466_v25 = vpop.f32.mrb[92].mxu0  ;;  %v1757_v29 = vpop.f32.mrb[92].mxu1 }
 0x1de   : > { %1927 = vst [vmem:[%s3571_s20 + $0x98] sm:$0xff] %v1902_v43  ;;  %v1878_v57 = vadd.f32 %v3562_v7, %v1846_v22  ;;  %v1822_v3 = vmax.f32 %v1466_v25, %v1757_v29  ;;  %v2540_v55 = vpop.f32.mrb[93].mxu0  ;;  %v2623_v26 = vpop.f32.mrb[93].mxu1 }
 0x1e0   : > { %v1903_v63 = vmax.f32 %v1878_v57, 0.0  ;;  %v1847_v6 = vmax.f32 %v3730_v0, %v1822_v3 }
 0x1e1   : > { %v1471_v2 = vpop.f32.mrb[94].mxu0  ;;  %v1762_v35 = vpop.f32.mrb[94].mxu1 }
 0x1e2   : > { %1928 = vst [vmem:[%s3571_s20 + $0xa0] sm:$0xff] %v1903_v63  ;;  %v1879_v17 = vadd.f32 %v3562_v7, %v1847_v6  ;;  %v1823_v21 = vmax.f32 %v1471_v2, %v1762_v35  ;;  %v2543_v36 = vpop.f32.mrb[95].mxu0  ;;  %v2626_v32 = vpop.f32.mrb[95].mxu1 }
 0x1e4   : > { %v1904_v33 = vmax.f32 %v1879_v17, 0.0  ;;  %v1848_v49 = vmax.f32 %v3731_v48, %v1823_v21 }
 0x1e5   : > { %v1476_v11 = vpop.f32.mrb[96].mxu0  ;;  %v1767_v4 = vpop.f32.mrb[96].mxu1 }
 0x1e6   : > { %1929 = vst [vmem:[%s3571_s20 + $0xa8] sm:$0xff] %v1904_v33  ;;  %v1880_v40 = vadd.f32 %v3562_v7, %v1848_v49  ;;  %v1824_v56 = vmax.f32 %v1476_v11, %v1767_v4  ;;  %v2546_v5 = vpop.f32.mrb[97].mxu0  ;;  %v2629_v47 = vpop.f32.mrb[97].mxu1 }
 0x1e8   : > { %v1905_v51 = vmax.f32 %v1880_v40, 0.0  ;;  %v1849_v24 = vmax.f32 %v3732_v23, %v1824_v56 }
 0x1e9   : > { %v1481_v52 = vpop.f32.mrb[98].mxu0  ;;  %v1772_v34 = vpop.f32.mrb[98].mxu1 }
 0x1ea   : > { %1930 = vst [vmem:[%s3571_s20 + $0xb0] sm:$0xff] %v1905_v51  ;;  %v1881_v16 = vadd.f32 %v3562_v7, %v1849_v24  ;;  %v1825_v13 = vmax.f32 %v1481_v52, %v1772_v34  ;;  %v2549_v39 = vpop.f32.mrb[99].mxu0  ;;  %v2632_v18 = vpop.f32.mrb[99].mxu1 }
 0x1ec   : > { %v1906_v53 = vmax.f32 %v1881_v16, 0.0  ;;  %v1850_v62 = vmax.f32 %v3733_v61, %v1825_v13 }
 0x1ee   : > { %1931 = vst [vmem:[%s3571_s20 + $0xb8] sm:$0xff] %v1906_v53  ;;  %v1882_v9 = vadd.f32 %v3562_v7, %v1850_v62 }
 0x1f0   : > { %v1907_v10 = vmax.f32 %v1882_v9, 0.0 }
 0x1f2   : > { %1932 = vst [vmem:[%s3571_s20 + $0xc0] sm:$0xff] %v1907_v10 }
 0x1f3 PF: > { %p10_p9 = scmp.ge.s32.totalorder %s2756_s16, 4   ;;  %s3734_s12 = smov %s2709_s13 }
 0x1f4   : > { %s3735_s13 = smov %s2765_s19  ;;  %s3736_s14 = smov %s2756_s16 }
 0x1f5   :  { %12 = sbr.rel (!%p10_p9) target bundleno = 2 (0x2), region = 108 }

// kernel: cnn_forward.4
= control target key start
LH: loop header
LB: loop body
LE: loop exit
PB: predicated region body
PF: predicated region fallthrough
CT: control target
= control target key end

     0   :  { %s2241_s12 = smov 0   ;;  %s2243_s13 = smov 0   ;;  %s3107_s0 = inlined_call_operand.vmem [shape: f32[4,112,400], index: 0, kind: input, shape index: {}]   ;;  %s3108_s1 = inlined_call_operand.vmem [shape: f32[400,128], index: 1, kind: input, shape index: {}]   ;;  %s3109_s2 = inlined_call_operand.vmem [shape: f32[1,128], index: 2, kind: input, shape index: {}]   ;;  %s3110_s3 = inlined_call_operand.vmem [shape: f32[112,128], index: 3, kind: output, shape index: {}]  }
   0x1   :  { %s2245_s14 = smov 0  }
   0x2 LB: > { %s1577_s15 = sadd.s32 4294967295, %s2218_s14   ;;  %s2258_s16 = sadd.s32 1, %s2218_s14   ;;  %s2218_s14 = sphi %s2245_s14, %s3113_s14   ;;  %s2214_s13 = sphi %s2243_s13, %s3112_s13   ;;  %s2210_s12 = sphi %s2241_s12, %s3111_s12  }
   0x3   : > { %s17_s17 = ssub.s32 %s2218_s14, %s2258_s16  ;;  %s20_s18 = sadd.s32 1, %s2214_s13 }
   0x4   : > { %p18_p0 = scmp.eq.s32.totalorder %s17_s17, 0  ;;  %p27_p1 = scmp.ne.s32.totalorder %s2214_s13, %s2210_s12 }
   0x5   : > { %p28_p2 = scmp.eq.s32.totalorder %s2218_s14, 0  ;;  %p1580_p4 = scmp.ge.s32.totalorder %s2218_s14, 2 }
   0x6   : > { %s2267_s19 = scalar_select %p18_p0, %s2214_s13, %s20_s18  }
   0x7   : > { %p29_p3 = por %p28_p2, %p27_p1  ;;  %127 = sbr.rel (%p1580_p4) target bundleno = 75 (0x4b), region = 24 }
   0xe   : > { %130 = sbr.rel (!%p29_p3) target bundleno = 75 (0x4b), region = 28  ;;  %s132_s20 = sand.u32 (%p29_p3), 1, %s2214_s13  }
   0xf   : > { %s1702_s21 = smul.u32 (%p29_p3), 224, %s2218_s14 }
  0x10   : > { %s2169_s22 = smul.u32 (%p29_p3), 896, %s132_s20 }
  0x11   : > { %s2275_s25 = scalar_lea.vmem (%p29_p3), %s3107_s0, %s1702_s21 }
  0x12   : > { %v151_v0 = vld [vmem:[%s2275_s25] sm:$0xff] (%p29_p3)  ;;  %v153_v1 = vld [vmem:[%s2275_s25 + $0x8] sm:$0xff] (%p29_p3)  ;;  %v155_v2 = vld [vmem:[%s2275_s25 + $0x10] sm:$0xff] (%p29_p3)  ;;  %s2280_s26 = scalar_lea.vmem (%p29_p3), [#allocation2], %s2169_s22 }
  0x13   : > { %152 = vst [vmem:[%s2280_s26] sm:$0xff] (%p29_p3), %v151_v0  ;;  %154 = vst [vmem:[%s2280_s26 + $0x8] sm:$0xff] (%p29_p3), %v153_v1  ;;  %v157_v3 = vld [vmem:[%s2275_s25 + $0x18] sm:$0xff] (%p29_p3)  ;;  %v159_v4 = vld [vmem:[%s2275_s25 + $0x20] sm:$0xff] (%p29_p3) }
  0x14   : > { %156 = vst [vmem:[%s2280_s26 + $0x10] sm:$0xff] (%p29_p3), %v155_v2  ;;  %v161_v5 = vld [vmem:[%s2275_s25 + $0x28] sm:$0xff] (%p29_p3)  ;;  %158 = vst [vmem:[%s2280_s26 + $0x18] sm:$0xff] (%p29_p3), %v157_v3  ;;  %v163_v6 = vld [vmem:[%s2275_s25 + $0x30] sm:$0xff] (%p29_p3) }
  0x15   : > { %160 = vst [vmem:[%s2280_s26 + $0x20] sm:$0xff] %v159_v4  ;;  %162 = vst [vmem:[%s2280_s26 + $0x28] sm:$0xff] %v161_v5  ;;  %v165_v7 = vld [vmem:[%s2275_s25 + $0x38] sm:$0xff]  ;;  %v167_v8 = vld [vmem:[%s2275_s25 + $0x40] sm:$0xff] }
  0x16   : > { %164 = vst [vmem:[%s2280_s26 + $0x30] sm:$0xff] %v163_v6  ;;  %166 = vst [vmem:[%s2280_s26 + $0x38] sm:$0xff] %v165_v7  ;;  %v169_v9 = vld [vmem:[%s2275_s25 + $0x48] sm:$0xff]  ;;  %v171_v10 = vld [vmem:[%s2275_s25 + $0x50] sm:$0xff] }
  0x17   : > { %168 = vst [vmem:[%s2280_s26 + $0x40] sm:$0xff] %v167_v8  ;;  %v173_v11 = vld [vmem:[%s2275_s25 + $0x58] sm:$0xff]  ;;  %170 = vst [vmem:[%s2280_s26 + $0x48] sm:$0xff] %v169_v9  ;;  %v175_v12 = vld [vmem:[%s2275_s25 + $0x60] sm:$0xff] }
  0x18   : > { %172 = vst [vmem:[%s2280_s26 + $0x50] sm:$0xff] %v171_v10  ;;  %174 = vst [vmem:[%s2280_s26 + $0x58] sm:$0xff] %v173_v11  ;;  %v177_v13 = vld [vmem:[%s2275_s25 + $0x68] sm:$0xff]  ;;  %v179_v14 = vld [vmem:[%s2275_s25 + $0x70] sm:$0xff] }
  0x19   : > { %176 = vst [vmem:[%s2280_s26 + $0x60] sm:$0xff] %v175_v12  ;;  %178 = vst [vmem:[%s2280_s26 + $0x68] sm:$0xff] %v177_v13  ;;  %v181_v15 = vld [vmem:[%s2275_s25 + $0x78] sm:$0xff]  ;;  %v183_v16 = vld [vmem:[%s2275_s25 + $0x80] sm:$0xff] }
  0x1a   : > { %180 = vst [vmem:[%s2280_s26 + $0x70] sm:$0xff] %v179_v14  ;;  %v185_v17 = vld [vmem:[%s2275_s25 + $0x88] sm:$0xff]  ;;  %182 = vst [vmem:[%s2280_s26 + $0x78] sm:$0xff] %v181_v15  ;;  %v187_v18 = vld [vmem:[%s2275_s25 + $0x90] sm:$0xff] }
  0x1b   : > { %184 = vst [vmem:[%s2280_s26 + $0x80] sm:$0xff] %v183_v16  ;;  %186 = vst [vmem:[%s2280_s26 + $0x88] sm:$0xff] %v185_v17  ;;  %v189_v19 = vld [vmem:[%s2275_s25 + $0x98] sm:$0xff]  ;;  %v191_v20 = vld [vmem:[%s2275_s25 + $0xa0] sm:$0xff] }
  0x1c   : > { %188 = vst [vmem:[%s2280_s26 + $0x90] sm:$0xff] %v187_v18  ;;  %190 = vst [vmem:[%s2280_s26 + $0x98] sm:$0xff] %v189_v19  ;;  %v193_v21 = vld [vmem:[%s2275_s25 + $0xa8] sm:$0xff]  ;;  %v195_v22 = vld [vmem:[%s2275_s25 + $0xb0] sm:$0xff] }
  0x1d   : > { %192 = vst [vmem:[%s2280_s26 + $0xa0] sm:$0xff] %v191_v20  ;;  %v197_v23 = vld [vmem:[%s2275_s25 + $0xb8] sm:$0xff]  ;;  %194 = vst [vmem:[%s2280_s26 + $0xa8] sm:$0xff] %v193_v21  ;;  %v199_v24 = vld [vmem:[%s2275_s25 + $0xc0] sm:$0xff] }
  0x1e   : > { %196 = vst [vmem:[%s2280_s26 + $0xb0] sm:$0xff] %v195_v22  ;;  %198 = vst [vmem:[%s2280_s26 + $0xb8] sm:$0xff] %v197_v23  ;;  %v201_v25 = vld [vmem:[%s2275_s25 + $0xc8] sm:$0xff]  ;;  %v203_v26 = vld [vmem:[%s2275_s25 + $0xd0] sm:$0xff] }
  0x1f   : > { %200 = vst [vmem:[%s2280_s26 + $0xc0] sm:$0xff] %v199_v24  ;;  %202 = vst [vmem:[%s2280_s26 + $0xc8] sm:$0xff] %v201_v25  ;;  %v205_v27 = vld [vmem:[%s2275_s25 + $0xd8] sm:$0xff]  ;;  %v207_v28 = vld [vmem:[%s2275_s25 + $0x1c0] sm:$0xff] }
  0x20   : > { %204 = vst [vmem:[%s2280_s26 + $0xd0] sm:$0xff] %v203_v26  ;;  %v209_v29 = vld [vmem:[%s2275_s25 + $0x1c8] sm:$0xff]  ;;  %206 = vst [vmem:[%s2280_s26 + $0xd8] sm:$0xff] %v205_v27  ;;  %v211_v30 = vld [vmem:[%s2275_s25 + $0x1d0] sm:$0xff] }
  0x21   : > { %208 = vst [vmem:[%s2280_s26 + $0xe0] sm:$0xff] %v207_v28  ;;  %210 = vst [vmem:[%s2280_s26 + $0xe8] sm:$0xff] %v209_v29  ;;  %v213_v31 = vld [vmem:[%s2275_s25 + $0x1d8] sm:$0xff]  ;;  %v215_v32 = vld [vmem:[%s2275_s25 + $0x1e0] sm:$0xff] }
  0x22   : > { %212 = vst [vmem:[%s2280_s26 + $0xf0] sm:$0xff] %v211_v30  ;;  %214 = vst [vmem:[%s2280_s26 + $0xf8] sm:$0xff] %v213_v31  ;;  %v217_v33 = vld [vmem:[%s2275_s25 + $0x1e8] sm:$0xff]  ;;  %v219_v34 = vld [vmem:[%s2275_s25 + $0x1f0] sm:$0xff] }
  0x23   : > { %216 = vst [vmem:[%s2280_s26 + $0x100] sm:$0xff] %v215_v32  ;;  %v221_v35 = vld [vmem:[%s2275_s25 + $0x1f8] sm:$0xff]  ;;  %218 = vst [vmem:[%s2280_s26 + $0x108] sm:$0xff] %v217_v33  ;;  %v223_v36 = vld [vmem:[%s2275_s25 + $0x200] sm:$0xff] }
  0x24   : > { %220 = vst [vmem:[%s2280_s26 + $0x110] sm:$0xff] %v219_v34  ;;  %222 = vst [vmem:[%s2280_s26 + $0x118] sm:$0xff] %v221_v35  ;;  %v225_v37 = vld [vmem:[%s2275_s25 + $0x208] sm:$0xff]  ;;  %v227_v38 = vld [vmem:[%s2275_s25 + $0x210] sm:$0xff] }
  0x25   : > { %224 = vst [vmem:[%s2280_s26 + $0x120] sm:$0xff] %v223_v36  ;;  %226 = vst [vmem:[%s2280_s26 + $0x128] sm:$0xff] %v225_v37  ;;  %v229_v39 = vld [vmem:[%s2275_s25 + $0x218] sm:$0xff]  ;;  %v231_v40 = vld [vmem:[%s2275_s25 + $0x220] sm:$0xff] }
  0x26   : > { %228 = vst [vmem:[%s2280_s26 + $0x130] sm:$0xff] %v227_v38  ;;  %v233_v41 = vld [vmem:[%s2275_s25 + $0x228] sm:$0xff]  ;;  %230 = vst [vmem:[%s2280_s26 + $0x138] sm:$0xff] %v229_v39  ;;  %v235_v42 = vld [vmem:[%s2275_s25 + $0x230] sm:$0xff] }
  0x27   : > { %232 = vst [vmem:[%s2280_s26 + $0x140] sm:$0xff] %v231_v40  ;;  %234 = vst [vmem:[%s2280_s26 + $0x148] sm:$0xff] %v233_v41  ;;  %v237_v43 = vld [vmem:[%s2275_s25 + $0x238] sm:$0xff]  ;;  %v239_v44 = vld [vmem:[%s2275_s25 + $0x240] sm:$0xff] }
  0x28   : > { %236 = vst [vmem:[%s2280_s26 + $0x150] sm:$0xff] %v235_v42  ;;  %238 = vst [vmem:[%s2280_s26 + $0x158] sm:$0xff] %v237_v43  ;;  %v241_v45 = vld [vmem:[%s2275_s25 + $0x248] sm:$0xff]  ;;  %v243_v46 = vld [vmem:[%s2275_s25 + $0x250] sm:$0xff] }
  0x29   : > { %240 = vst [vmem:[%s2280_s26 + $0x160] sm:$0xff] %v239_v44  ;;  %v245_v47 = vld [vmem:[%s2275_s25 + $0x258] sm:$0xff]  ;;  %242 = vst [vmem:[%s2280_s26 + $0x168] sm:$0xff] %v241_v45  ;;  %v247_v48 = vld [vmem:[%s2275_s25 + $0x260] sm:$0xff] }
  0x2a   : > { %244 = vst [vmem:[%s2280_s26 + $0x170] sm:$0xff] %v243_v46  ;;  %246 = vst [vmem:[%s2280_s26 + $0x178] sm:$0xff] %v245_v47  ;;  %v249_v49 = vld [vmem:[%s2275_s25 + $0x268] sm:$0xff]  ;;  %v251_v50 = vld [vmem:[%s2275_s25 + $0x270] sm:$0xff] }
  0x2b   : > { %248 = vst [vmem:[%s2280_s26 + $0x180] sm:$0xff] %v247_v48  ;;  %250 = vst [vmem:[%s2280_s26 + $0x188] sm:$0xff] %v249_v49  ;;  %v253_v51 = vld [vmem:[%s2275_s25 + $0x278] sm:$0xff]  ;;  %v255_v52 = vld [vmem:[%s2275_s25 + $0x280] sm:$0xff] }
  0x2c   : > { %252 = vst [vmem:[%s2280_s26 + $0x190] sm:$0xff] %v251_v50  ;;  %v257_v53 = vld [vmem:[%s2275_s25 + $0x288] sm:$0xff]  ;;  %254 = vst [vmem:[%s2280_s26 + $0x198] sm:$0xff] %v253_v51  ;;  %v259_v54 = vld [vmem:[%s2275_s25 + $0x290] sm:$0xff] }
  0x2d   : > { %256 = vst [vmem:[%s2280_s26 + $0x1a0] sm:$0xff] %v255_v52  ;;  %258 = vst [vmem:[%s2280_s26 + $0x1a8] sm:$0xff] %v257_v53  ;;  %v261_v55 = vld [vmem:[%s2275_s25 + $0x298] sm:$0xff]  ;;  %v263_v56 = vld [vmem:[%s2275_s25 + $0x380] sm:$0xff] }
  0x2e   : > { %260 = vst [vmem:[%s2280_s26 + $0x1b0] sm:$0xff] %v259_v54  ;;  %262 = vst [vmem:[%s2280_s26 + $0x1b8] sm:$0xff] %v261_v55  ;;  %v265_v57 = vld [vmem:[%s2275_s25 + $0x388] sm:$0xff]  ;;  %v267_v58 = vld [vmem:[%s2275_s25 + $0x390] sm:$0xff] }
  0x2f   : > { %264 = vst [vmem:[%s2280_s26 + $0x1c0] sm:$0xff] %v263_v56  ;;  %v269_v59 = vld [vmem:[%s2275_s25 + $0x398] sm:$0xff]  ;;  %266 = vst [vmem:[%s2280_s26 + $0x1c8] sm:$0xff] %v265_v57  ;;  %v271_v60 = vld [vmem:[%s2275_s25 + $0x3a0] sm:$0xff] }
  0x30   : > { %268 = vst [vmem:[%s2280_s26 + $0x1d0] sm:$0xff] %v267_v58  ;;  %270 = vst [vmem:[%s2280_s26 + $0x1d8] sm:$0xff] %v269_v59  ;;  %v273_v61 = vld [vmem:[%s2275_s25 + $0x3a8] sm:$0xff]  ;;  %v275_v62 = vld [vmem:[%s2275_s25 + $0x3b0] sm:$0xff] }
  0x31   : > { %272 = vst [vmem:[%s2280_s26 + $0x1e0] sm:$0xff] %v271_v60  ;;  %274 = vst [vmem:[%s2280_s26 + $0x1e8] sm:$0xff] %v273_v61  ;;  %v277_v63 = vld [vmem:[%s2275_s25 + $0x3b8] sm:$0xff]  ;;  %v279_v0 = vld [vmem:[%s2275_s25 + $0x3c0] sm:$0xff] }
  0x32   : > { %276 = vst [vmem:[%s2280_s26 + $0x1f0] sm:$0xff] %v275_v62  ;;  %v281_v1 = vld [vmem:[%s2275_s25 + $0x3c8] sm:$0xff]  ;;  %278 = vst [vmem:[%s2280_s26 + $0x1f8] sm:$0xff] %v277_v63  ;;  %v283_v2 = vld [vmem:[%s2275_s25 + $0x3d0] sm:$0xff] }
  0x33   : > { %280 = vst [vmem:[%s2280_s26 + $0x200] sm:$0xff] %v279_v0  ;;  %282 = vst [vmem:[%s2280_s26 + $0x208] sm:$0xff] %v281_v1  ;;  %v285_v3 = vld [vmem:[%s2275_s25 + $0x3d8] sm:$0xff]  ;;  %v287_v4 = vld [vmem:[%s2275_s25 + $0x3e0] sm:$0xff] }
  0x34   : > { %284 = vst [vmem:[%s2280_s26 + $0x210] sm:$0xff] %v283_v2  ;;  %286 = vst [vmem:[%s2280_s26 + $0x218] sm:$0xff] %v285_v3  ;;  %v289_v5 = vld [vmem:[%s2275_s25 + $0x3e8] sm:$0xff]  ;;  %v291_v6 = vld [vmem:[%s2275_s25 + $0x3f0] sm:$0xff] }
  0x35   : > { %288 = vst [vmem:[%s2280_s26 + $0x220] sm:$0xff] %v287_v4  ;;  %v293_v7 = vld [vmem:[%s2275_s25 + $0x3f8] sm:$0xff]  ;;  %290 = vst [vmem:[%s2280_s26 + $0x228] sm:$0xff] %v289_v5  ;;  %v295_v8 = vld [vmem:[%s2275_s25 + $0x400] sm:$0xff] }
  0x36   : > { %292 = vst [vmem:[%s2280_s26 + $0x230] sm:$0xff] %v291_v6  ;;  %294 = vst [vmem:[%s2280_s26 + $0x238] sm:$0xff] %v293_v7  ;;  %v297_v9 = vld [vmem:[%s2275_s25 + $0x408] sm:$0xff]  ;;  %v299_v10 = vld [vmem:[%s2275_s25 + $0x410] sm:$0xff] }
  0x37   : > { %296 = vst [vmem:[%s2280_s26 + $0x240] sm:$0xff] %v295_v8  ;;  %298 = vst [vmem:[%s2280_s26 + $0x248] sm:$0xff] %v297_v9  ;;  %v301_v11 = vld [vmem:[%s2275_s25 + $0x418] sm:$0xff]  ;;  %v303_v12 = vld [vmem:[%s2275_s25 + $0x420] sm:$0xff] }
  0x38   : > { %300 = vst [vmem:[%s2280_s26 + $0x250] sm:$0xff] %v299_v10  ;;  %v305_v13 = vld [vmem:[%s2275_s25 + $0x428] sm:$0xff]  ;;  %302 = vst [vmem:[%s2280_s26 + $0x258] sm:$0xff] %v301_v11  ;;  %v307_v14 = vld [vmem:[%s2275_s25 + $0x430] sm:$0xff] }
  0x39   : > { %304 = vst [vmem:[%s2280_s26 + $0x260] sm:$0xff] %v303_v12  ;;  %306 = vst [vmem:[%s2280_s26 + $0x268] sm:$0xff] %v305_v13  ;;  %v309_v15 = vld [vmem:[%s2275_s25 + $0x438] sm:$0xff]  ;;  %v311_v16 = vld [vmem:[%s2275_s25 + $0x440] sm:$0xff] }
  0x3a   : > { %308 = vst [vmem:[%s2280_s26 + $0x270] sm:$0xff] %v307_v14  ;;  %310 = vst [vmem:[%s2280_s26 + $0x278] sm:$0xff] %v309_v15  ;;  %v313_v17 = vld [vmem:[%s2275_s25 + $0x448] sm:$0xff]  ;;  %v315_v18 = vld [vmem:[%s2275_s25 + $0x450] sm:$0xff] }
  0x3b   : > { %312 = vst [vmem:[%s2280_s26 + $0x280] sm:$0xff] %v311_v16  ;;  %v317_v19 = vld [vmem:[%s2275_s25 + $0x458] sm:$0xff]  ;;  %314 = vst [vmem:[%s2280_s26 + $0x288] sm:$0xff] %v313_v17  ;;  %v319_v20 = vld [vmem:[%s2275_s25 + $0x540] sm:$0xff] }
  0x3c   : > { %316 = vst [vmem:[%s2280_s26 + $0x290] sm:$0xff] %v315_v18  ;;  %318 = vst [vmem:[%s2280_s26 + $0x298] sm:$0xff] %v317_v19  ;;  %v321_v21 = vld [vmem:[%s2275_s25 + $0x548] sm:$0xff]  ;;  %v323_v22 = vld [vmem:[%s2275_s25 + $0x550] sm:$0xff] }
  0x3d   : > { %320 = vst [vmem:[%s2280_s26 + $0x2a0] sm:$0xff] %v319_v20  ;;  %322 = vst [vmem:[%s2280_s26 + $0x2a8] sm:$0xff] %v321_v21  ;;  %v325_v23 = vld [vmem:[%s2275_s25 + $0x558] sm:$0xff]  ;;  %v327_v24 = vld [vmem:[%s2275_s25 + $0x560] sm:$0xff] }
  0x3e   : > { %324 = vst [vmem:[%s2280_s26 + $0x2b0] sm:$0xff] %v323_v22  ;;  %v329_v25 = vld [vmem:[%s2275_s25 + $0x568] sm:$0xff]  ;;  %326 = vst [vmem:[%s2280_s26 + $0x2b8] sm:$0xff] %v325_v23  ;;  %v331_v26 = vld [vmem:[%s2275_s25 + $0x570] sm:$0xff] }
  0x3f   : > { %328 = vst [vmem:[%s2280_s26 + $0x2c0] sm:$0xff] %v327_v24  ;;  %330 = vst [vmem:[%s2280_s26 + $0x2c8] sm:$0xff] %v329_v25  ;;  %v333_v27 = vld [vmem:[%s2275_s25 + $0x578] sm:$0xff]  ;;  %v335_v28 = vld [vmem:[%s2275_s25 + $0x580] sm:$0xff] }
  0x40   : > { %332 = vst [vmem:[%s2280_s26 + $0x2d0] sm:$0xff] %v331_v26  ;;  %334 = vst [vmem:[%s2280_s26 + $0x2d8] sm:$0xff] %v333_v27  ;;  %v337_v29 = vld [vmem:[%s2275_s25 + $0x588] sm:$0xff]  ;;  %v339_v30 = vld [vmem:[%s2275_s25 + $0x590] sm:$0xff] }
  0x41   : > { %336 = vst [vmem:[%s2280_s26 + $0x2e0] sm:$0xff] %v335_v28  ;;  %v341_v31 = vld [vmem:[%s2275_s25 + $0x598] sm:$0xff]  ;;  %338 = vst [vmem:[%s2280_s26 + $0x2e8] sm:$0xff] %v337_v29  ;;  %v343_v32 = vld [vmem:[%s2275_s25 + $0x5a0] sm:$0xff] }
  0x42   : > { %340 = vst [vmem:[%s2280_s26 + $0x2f0] sm:$0xff] %v339_v30  ;;  %342 = vst [vmem:[%s2280_s26 + $0x2f8] sm:$0xff] %v341_v31  ;;  %v345_v33 = vld [vmem:[%s2275_s25 + $0x5a8] sm:$0xff]  ;;  %v347_v34 = vld [vmem:[%s2275_s25 + $0x5b0] sm:$0xff] }
  0x43   : > { %344 = vst [vmem:[%s2280_s26 + $0x300] sm:$0xff] %v343_v32  ;;  %346 = vst [vmem:[%s2280_s26 + $0x308] sm:$0xff] %v345_v33  ;;  %v349_v35 = vld [vmem:[%s2275_s25 + $0x5b8] sm:$0xff]  ;;  %v351_v36 = vld [vmem:[%s2275_s25 + $0x5c0] sm:$0xff] }
  0x44   : > { %348 = vst [vmem:[%s2280_s26 + $0x310] sm:$0xff] %v347_v34  ;;  %v353_v37 = vld [vmem:[%s2275_s25 + $0x5c8] sm:$0xff]  ;;  %350 = vst [vmem:[%s2280_s26 + $0x318] sm:$0xff] %v349_v35  ;;  %v355_v38 = vld [vmem:[%s2275_s25 + $0x5d0] sm:$0xff] }
  0x45   : > { %352 = vst [vmem:[%s2280_s26 + $0x320] sm:$0xff] %v351_v36  ;;  %354 = vst [vmem:[%s2280_s26 + $0x328] sm:$0xff] %v353_v37  ;;  %v357_v39 = vld [vmem:[%s2275_s25 + $0x5d8] sm:$0xff]  ;;  %v359_v40 = vld [vmem:[%s2275_s25 + $0x5e0] sm:$0xff] }
  0x46   : > { %356 = vst [vmem:[%s2280_s26 + $0x330] sm:$0xff] %v355_v38  ;;  %358 = vst [vmem:[%s2280_s26 + $0x338] sm:$0xff] %v357_v39  ;;  %v361_v41 = vld [vmem:[%s2275_s25 + $0x5e8] sm:$0xff]  ;;  %v363_v42 = vld [vmem:[%s2275_s25 + $0x5f0] sm:$0xff] }
  0x47   : > { %360 = vst [vmem:[%s2280_s26 + $0x340] sm:$0xff] %v359_v40  ;;  %v365_v43 = vld [vmem:[%s2275_s25 + $0x5f8] sm:$0xff]  ;;  %362 = vst [vmem:[%s2280_s26 + $0x348] sm:$0xff] %v361_v41  ;;  %v367_v44 = vld [vmem:[%s2275_s25 + $0x600] sm:$0xff] }
  0x48   : > { %364 = vst [vmem:[%s2280_s26 + $0x350] sm:$0xff] %v363_v42  ;;  %366 = vst [vmem:[%s2280_s26 + $0x358] sm:$0xff] %v365_v43  ;;  %v369_v45 = vld [vmem:[%s2275_s25 + $0x608] sm:$0xff]  ;;  %v371_v46 = vld [vmem:[%s2275_s25 + $0x610] sm:$0xff] }
  0x49   : > { %368 = vst [vmem:[%s2280_s26 + $0x360] sm:$0xff] %v367_v44  ;;  %370 = vst [vmem:[%s2280_s26 + $0x368] sm:$0xff] %v369_v45  ;;  %v373_v47 = vld [vmem:[%s2275_s25 + $0x618] sm:$0xff] }
  0x4a   : > { %372 = vst [vmem:[%s2280_s26 + $0x370] sm:$0xff] %v371_v46  ;;  %374 = vst [vmem:[%s2280_s26 + $0x378] sm:$0xff] %v373_v47 }
  0x4b PF: > { %p1583_p5 = scmp.ge.s32.totalorder %s2218_s14, 1  ;;  %p379_p6 = scmp.lt.s32.totalorder %s2218_s14, 3 }
  0x4d   : > { %p380_p7 = pnand %p1583_p5, %p379_p6 }
  0x4e   : > { %v432_v48 = vld [vmem:[%s3108_s1 + $0x80] sm:$0xff] (!%p380_p7)  ;;  %v433_v49 = vld [vmem:[%s3108_s1 + $0x88] sm:$0xff] (!%p380_p7)  ;;  %v2220_v51 = vmov (!%p380_p7), 0.0|0.0   ;;  %v434_v58 = vld [vmem:[%s3108_s1 + $0x90] sm:$0xff] (!%p380_p7)  ;;  %s386_s25 = sand.u32 (!%p380_p7), 1, %s2210_s12   ;;  %vm494_vm0 = vcmask (!%p380_p7), 130048  }
  0x4f   : > { %383 = sbr.rel (%p380_p7) target bundleno = 469 (0x1d5), region = 51  ;;  %v448_v50 = vld [vmem:[%s3108_s1 + $0x100] sm:$0xff] (!%p380_p7)  ;;  %1947 = vmatprep.subr.bf16.mxu1 (!%p380_p7), %v2220_v51  ;;  %v2515_v52 = vpack.c.bf16 (!%p380_p7), %v433_v49, %v432_v48  ;;  %v449_v53 = vld [vmem:[%s3108_s1 + $0x108] sm:$0xff] (!%p380_p7)  ;;  %v435_v59 = vld [vmem:[%s3108_s1 + $0x98] sm:$0xff] (!%p380_p7) }
  0x50   : > { %v416_v54 = vld [vmem:[%s3108_s1] sm:$0xff] (!%p380_p7)  ;;  %v417_v55 = vld [vmem:[%s3108_s1 + $0x8] sm:$0xff] (!%p380_p7)  ;;  %v2526_v56 = vpack.c.bf16 (!%p380_p7), %v449_v53, %v448_v50  ;;  %v450_v60 = vld [vmem:[%s3108_s1 + $0x110] sm:$0xff] (!%p380_p7)  ;;  %v2540_v61 = vpack.c.bf16 (!%p380_p7), %v435_v59, %v434_v58  ;;  %s2170_s6 = smul.u32 (!%p380_p7), 896, %s386_s25 }
  0x51   : > { %v2528_v57 = vpack.c.bf16 (!%p380_p7), %v417_v55, %v416_v54  ;;  %1916 = vmatprep.subr.bf16.mxu0 (!%p380_p7), %v2515_v52  ;;  %v451_v62 = vld [vmem:[%s3108_s1 + $0x118] sm:$0xff] (!%p380_p7)  ;;  %v418_v63 = vld [vmem:[%s3108_s1 + $0x10] sm:$0xff] (!%p380_p7)  ;;  %v436_v3 = vld [vmem:[%s3108_s1 + $0xa0] sm:$0xff] (!%p380_p7) }
  0x52   : > { %v419_v0 = vld [vmem:[%s3108_s1 + $0x18] sm:$0xff] (!%p380_p7)  ;;  %1949 = vmatpush1.bf16.msra.mxu1 (!%p380_p7), %v2526_v56  ;;  %v2553_v1 = vpack.c.bf16 (!%p380_p7), %v451_v62, %v450_v60  ;;  %v437_v4 = vld [vmem:[%s3108_s1 + $0xa8] sm:$0xff] (!%p380_p7)  ;;  %v452_v5 = vld [vmem:[%s3108_s1 + $0x120] sm:$0xff] (!%p380_p7)  ;;  %s2654_s5 = scalar_lea.vmem (!%p380_p7), [#allocation2], %s2170_s6 }
  0x53   : > { %1918 = vmatpush3.bf16.msra.mxu0 (!%p380_p7), %v2528_v57  ;;  %v2555_v2 = vpack.c.bf16 (!%p380_p7), %v419_v0, %v418_v63  ;;  %1950 = vmatprep.subr.bf16.mxu1 (!%p380_p7), %v2220_v51  ;;  %v2568_v6 = vpack.c.bf16 (!%p380_p7), %v437_v4, %v436_v3  ;;  %v453_v7 = vld [vmem:[%s3108_s1 + $0x128] sm:$0xff] (!%p380_p7)  ;;  %v420_v8 = vld [vmem:[%s3108_s1 + $0x20] sm:$0xff] (!%p380_p7)  ;;  %v438_v10 = vld [vmem:[%s3108_s1 + $0xb0] sm:$0xff] (!%p380_p7) }
  0x54   : > { %1920 = vmatprep.subr.bf16.mxu0 (!%p380_p7), %v2540_v61  ;;  %v421_v9 = vld [vmem:[%s3108_s1 + $0x28] sm:$0xff] (!%p380_p7)  ;;  %v439_v11 = vld [vmem:[%s3108_s1 + $0xb8] sm:$0xff] (!%p380_p7)  ;;  %v2588_v12 = vpack.c.bf16 (!%p380_p7), %v453_v7, %v452_v5  ;;  %v454_v14 = vld [vmem:[%s3108_s1 + $0x130] sm:$0xff] (!%p380_p7) }
  0x55   : > { %v2590_v13 = vpack.c.bf16 (!%p380_p7), %v421_v9, %v420_v8  ;;  %v2597_v15 = vpack.c.bf16 (!%p380_p7), %v439_v11, %v438_v10  ;;  %v455_v16 = vld [vmem:[%s3108_s1 + $0x138] sm:$0xff] (!%p380_p7)  ;;  %v422_v17 = vld [vmem:[%s3108_s1 + $0x30] sm:$0xff] (!%p380_p7)  ;;  %v440_v19 = vld [vmem:[%s3108_s1 + $0xc0] sm:$0xff] (!%p380_p7) }
  0x56   : > { %1952 = vmatpush1.bf16.msra.mxu1 %v2553_v1  ;;  %v423_v18 = vld [vmem:[%s3108_s1 + $0x38] sm:$0xff]  ;;  %v441_v20 = vld [vmem:[%s3108_s1 + $0xc8] sm:$0xff]  ;;  %v2616_v21 = vpack.c.bf16 %v455_v16, %v454_v14  ;;  %v456_v23 = vld [vmem:[%s3108_s1 + $0x140] sm:$0xff] }
  0x57   : > { %1922 = vmatpush3.bf16.msra.mxu0 %v2555_v2  ;;  %1953 = vmatprep.subr.bf16.mxu1 %v2220_v51  ;;  %v2618_v22 = vpack.c.bf16 %v423_v18, %v422_v17  ;;  %v2625_v24 = vpack.c.bf16 %v441_v20, %v440_v19  ;;  %v457_v25 = vld [vmem:[%s3108_s1 + $0x148] sm:$0xff]  ;;  %v424_v26 = vld [vmem:[%s3108_s1 + $0x40] sm:$0xff]  ;;  %v442_v28 = vld [vmem:[%s3108_s1 + $0xd0] sm:$0xff] }
  0x58   : > { %1924 = vmatprep.subr.bf16.mxu0 %v2568_v6  ;;  %v425_v27 = vld [vmem:[%s3108_s1 + $0x48] sm:$0xff]  ;;  %v443_v29 = vld [vmem:[%s3108_s1 + $0xd8] sm:$0xff]  ;;  %v2644_v30 = vpack.c.bf16 %v457_v25, %v456_v23  ;;  %v458_v32 = vld [vmem:[%s3108_s1 + $0x150] sm:$0xff] }
  0x59   : > { %v2646_v31 = vpack.c.bf16 %v425_v27, %v424_v26  ;;  %v459_v33 = vld [vmem:[%s3108_s1 + $0x158] sm:$0xff]  ;;  %v467_v34 = vld [vmem:[%s2654_s5 + $0x8] sm:$0xff]  ;;  %v2659_v35 = vpack.c.bf16 %v443_v29, %v442_v28  ;;  %v426_v36 = vld [vmem:[%s3108_s1 + $0x50] sm:$0xff] }
  0x5a   : > { %1955 = vmatpush1.bf16.msra.mxu1 %v2588_v12  ;;  %v427_v37 = vld [vmem:[%s3108_s1 + $0x58] sm:$0xff]  ;;  %v444_v39 = vld [vmem:[%s3108_s1 + $0xe0] sm:$0xff]  ;;  %v445_v40 = vld [vmem:[%s3108_s1 + $0xe8] sm:$0xff]  ;;  %580 = vmatprep.mubr.f32.mxu0 %v467_v34  ;;  %v2677_v41 = vpack.c.bf16 %v459_v33, %v458_v32 }
  0x5b   : > { %1926 = vmatpush3.bf16.msra.mxu0 %v2590_v13  ;;  %1956 = vmatprep.subr.bf16.mxu1 %v2220_v51  ;;  %v469_v38 = vld [vmem:[%s2654_s5 + $0x18] sm:$0xff]  ;;  %v2679_v42 = vpack.c.bf16 %v427_v37, %v426_v36  ;;  %v460_v43 = vld [vmem:[%s3108_s1 + $0x160] sm:$0xff]  ;;  %v2686_v44 = vpack.c.bf16 %v445_v40, %v444_v39  ;;  %v461_v45 = vld [vmem:[%s3108_s1 + $0x168] sm:$0xff] }
  0x5c   : > { %1928 = vmatprep.subr.bf16.mxu0 %v2597_v15  ;;  %1585 = vmatprep.mubr.msk.f32.mxu1 %vm494_vm0, %v469_v38  ;;  %v428_v46 = vld [vmem:[%s3108_s1 + $0x60] sm:$0xff]  ;;  %v429_v47 = vld [vmem:[%s3108_s1 + $0x68] sm:$0xff]  ;;  %v446_v48 = vld [vmem:[%s3108_s1 + $0xf0] sm:$0xff]  ;;  %v2705_v50 = vpack.c.bf16 %v461_v45, %v460_v43 }
  0x5d   : > { %v447_v49 = vld [vmem:[%s3108_s1 + $0xf8] sm:$0xff]  ;;  %v2707_v53 = vpack.c.bf16 %v429_v47, %v428_v46  ;;  %v462_v54 = vld [vmem:[%s3108_s1 + $0x170] sm:$0xff]  ;;  %v464_v0 = vld [vmem:[%s3108_s1 + $0x180] sm:$0xff] }
  0x5e   : > { %1958 = vmatpush1.bf16.msra.mxu1 %v2616_v21  ;;  %v2714_v55 = vpack.c.bf16 %v447_v49, %v446_v48  ;;  %v463_v58 = vld [vmem:[%s3108_s1 + $0x178] sm:$0xff]  ;;  %v430_v59 = vld [vmem:[%s3108_s1 + $0x70] sm:$0xff]  ;;  %v465_v3 = vld [vmem:[%s3108_s1 + $0x188] sm:$0xff] }
  0x5f   : > { %1930 = vmatpush3.bf16.msra.mxu0 %v2618_v22  ;;  %1959 = vmatprep.subr.bf16.mxu1 %v2220_v51  ;;  %v431_v60 = vld [vmem:[%s3108_s1 + $0x78] sm:$0xff]  ;;  %v2727_v62 = vpack.c.bf16 %v463_v58, %v462_v54  ;;  %v466_v4 = vld [vmem:[%s2654_s5] sm:$0xff]  ;;  %v2742_v5 = vpack.c.bf16 %v465_v3, %v464_v0  ;;  %v471_v7 = vld [vmem:[%s2654_s5 + $0x28] sm:$0xff] }
  0x60   : > { %1932 = vmatprep.subr.bf16.mxu0 %v2625_v24  ;;  %v2729_v63 = vpack.c.bf16 %v431_v60, %v430_v59  ;;  %v468_v8 = vld [vmem:[%s2654_s5 + $0x10] sm:$0xff]  ;;  %v470_v9 = vld [vmem:[%s2654_s5 + $0x20] sm:$0xff]  ;;  %v473_v10 = vld [vmem:[%s2654_s5 + $0x38] sm:$0xff] }
  0x61   : > { %v475_v11 = vld [vmem:[%s2654_s5 + $0x48] sm:$0xff]  ;;  %v472_v14 = vld [vmem:[%s2654_s5 + $0x30] sm:$0xff]  ;;  %v474_v16 = vld [vmem:[%s2654_s5 + $0x40] sm:$0xff] }
  0x62   : > { %1961 = vmatpush1.bf16.msra.mxu1 %v2644_v30  ;;  %v477_v17 = vld [vmem:[%s2654_s5 + $0x58] sm:$0xff]  ;;  %v479_v18 = vld [vmem:[%s2654_s5 + $0x68] sm:$0xff]  ;;  %v476_v19 = vld [vmem:[%s2654_s5 + $0x50] sm:$0xff] }
  0x63   : > { %1934 = vmatpush3.bf16.msra.mxu0 %v2646_v31  ;;  %1962 = vmatprep.subr.bf16.mxu1 %v2220_v51  ;;  %v478_v20 = vld [vmem:[%s2654_s5 + $0x60] sm:$0xff]  ;;  %v481_v23 = vld [vmem:[%s2654_s5 + $0x78] sm:$0xff]  ;;  %v483_v25 = vld [vmem:[%s2654_s5 + $0x88] sm:$0xff] }
  0x64   : > { %1936 = vmatprep.subr.bf16.mxu0 %v2659_v35  ;;  %v480_v26 = vld [vmem:[%s2654_s5 + $0x70] sm:$0xff]  ;;  %v482_v27 = vld [vmem:[%s2654_s5 + $0x80] sm:$0xff]  ;;  %v485_v28 = vld [vmem:[%s2654_s5 + $0x98] sm:$0xff] }
  0x65   : > { %v487_v29 = vld [vmem:[%s2654_s5 + $0xa8] sm:$0xff]  ;;  %v484_v32 = vld [vmem:[%s2654_s5 + $0x90] sm:$0xff]  ;;  %v486_v33 = vld [vmem:[%s2654_s5 + $0xa0] sm:$0xff] }
  0x66   : > { %1964 = vmatpush1.bf16.msra.mxu1 %v2677_v41  ;;  %v489_v34 = vld [vmem:[%s2654_s5 + $0xb8] sm:$0xff]  ;;  %v491_v36 = vld [vmem:[%s2654_s5 + $0xc8] sm:$0xff]  ;;  %v488_v37 = vld [vmem:[%s2654_s5 + $0xb0] sm:$0xff] }
  0x67   : > { %1938 = vmatpush3.bf16.msra.mxu0 %v2679_v42  ;;  %1965 = vmatprep.subr.bf16.mxu1 %v2220_v51  ;;  %v490_v38 = vld [vmem:[%s2654_s5 + $0xc0] sm:$0xff]  ;;  %v493_v39 = vld [vmem:[%s2654_s5 + $0xd8] sm:$0xff]  ;;  %v1593_v40 = vld [vmem:[%s2654_s5 + $0xe8] sm:$0xff] }
  0x68   : > { %1940 = vmatprep.subr.bf16.mxu0 %v2686_v44  ;;  %v492_v43 = vld [vmem:[%s2654_s5 + $0xd0] sm:$0xff]  ;;  %v1595_v45 = vld [vmem:[%s2654_s5 + $0xf8] sm:$0xff]  ;;  %v1592_v46 = vld [vmem:[%s2654_s5 + $0xe0] sm:$0xff] }
  0x69   : > { %v1597_v47 = vld [vmem:[%s2654_s5 + $0x108] sm:$0xff]  ;;  %v1596_v48 = vld [vmem:[%s2654_s5 + $0x100] sm:$0xff]  ;;  %v1594_v54 = vld [vmem:[%s2654_s5 + $0xf0] sm:$0xff] }
  0x6a   : > { %1967 = vmatpush1.bf16.msra.mxu1 %v2705_v50  ;;  %v1601_v49 = vld [vmem:[%s2654_s5 + $0x128] sm:$0xff]  ;;  %v1600_v58 = vld [vmem:[%s2654_s5 + $0x120] sm:$0xff]  ;;  %v1599_v59 = vld [vmem:[%s2654_s5 + $0x118] sm:$0xff] }
  0x6b   : > { %1942 = vmatpush3.bf16.msra.mxu0 %v2707_v53  ;;  %1968 = vmatprep.subr.bf16.mxu1 %v2220_v51  ;;  %v1605_v60 = vld [vmem:[%s2654_s5 + $0x148] sm:$0xff]  ;;  %v1598_v0 = vld [vmem:[%s2654_s5 + $0x110] sm:$0xff]  ;;  %v1604_v3 = vld [vmem:[%s2654_s5 + $0x140] sm:$0xff] }
  0x6c   : > { %1944 = vmatprep.subr.bf16.mxu0 %v2714_v55 }
  0x6e   : > { %1970 = vmatpush1.bf16.msra.mxu1 %v2727_v62 }
  0x6f   : > { %1946 = vmatpush3.bf16.msra.mxu0 %v2729_v63  ;;  %1971 = vmatprep.subr.bf16.mxu1 %v2220_v51 }
  0x70   : > { %1975 = vmatprep.subr.bf16.mxu0 %v2515_v52 }
  0x72   : > { %581 = vmatmul.mubr.f32.vlgmr.msra.gmra.mrb[0].mxu0 %v466_v4  ;;  %1973 = vmatpush1.bf16.msra.mxu1 %v2742_v5  ;;  %v1603_v4 = vld [vmem:[%s2654_s5 + $0x138] sm:$0xff] }
  0x73   : > { %1977 = vmatpush3.bf16.msra.mxu0 %v2528_v57  ;;  %2006 = vmatprep.subr.bf16.mxu1 %v2220_v51 }
  0x74   : > { %1979 = vmatprep.subr.bf16.mxu0 %v2540_v61  ;;  %585 = vmatprep.mubr.f32.mxu0 %v471_v7  ;;  %v1609_v7 = vld [vmem:[%s2654_s5 + $0x168] sm:$0xff] }
  0x75   : > { %681 = vmatmul.mubr.f32.vlgmr.msra.gmra.mrb[0].mxu1 %v468_v8  ;;  %v1602_v8 = vld [vmem:[%s2654_s5 + $0x130] sm:$0xff] }
  0x76   : > { %586 = vmatmul.mubr.f32.gmra.mrb[2].mxu0 %v470_v9  ;;  %2008 = vmatpush1.bf16.msra.mxu1 %v2526_v56  ;;  %v1608_v9 = vld [vmem:[%s2654_s5 + $0x160] sm:$0xff] }
  0x77   : > { %1981 = vmatpush3.bf16.msra.mxu0 %v2555_v2  ;;  %2009 = vmatprep.subr.bf16.mxu1 %v2220_v51 }
  0x78   : > { %1983 = vmatprep.subr.bf16.mxu0 %v2568_v6  ;;  %1586 = vmatprep.mubr.msk.f32.mxu1 %vm494_vm0, %v473_v10  ;;  %v1607_v10 = vld [vmem:[%s2654_s5 + $0x158] sm:$0xff] }
  0x79   : > { %590 = vmatprep.mubr.f32.mxu0 %v475_v11  ;;  %686 = vmatmul.mubr.f32.gmra.mrb[2].mxu1 %v472_v14  ;;  %v1613_v11 = vld [vmem:[%s2654_s5 + $0x188] sm:$0xff]  ;;  %v1606_v14 = vld [vmem:[%s2654_s5 + $0x150] sm:$0xff] }
  0x7a   : > { %591 = vmatmul.mubr.f32.gmra.mrb[4].mxu0 %v474_v16  ;;  %2011 = vmatpush1.bf16.msra.mxu1 %v2553_v1  ;;  %v1612_v16 = vld [vmem:[%s2654_s5 + $0x180] sm:$0xff] }
  0x7b   : > { %1985 = vmatpush3.bf16.msra.mxu0 %v2590_v13  ;;  %2012 = vmatprep.subr.bf16.mxu1 %v2220_v51 }
  0x7c   : > { %1987 = vmatprep.subr.bf16.mxu0 %v2597_v15  ;;  %1587 = vmatprep.mubr.msk.f32.mxu1 %vm494_vm0, %v477_v17  ;;  %v1611_v17 = vld [vmem:[%s2654_s5 + $0x178] sm:$0xff] }
  0x7d   : > { %595 = vmatprep.mubr.f32.mxu0 %v479_v18  ;;  %691 = vmatmul.mubr.f32.gmra.mrb[4].mxu1 %v476_v19  ;;  %v1617_v18 = vld [vmem:[%s2654_s5 + $0x1a8] sm:$0xff]  ;;  %v1610_v19 = vld [vmem:[%s2654_s5 + $0x170] sm:$0xff] }
  0x7e   : > { %596 = vmatmul.mubr.f32.gmra.mrb[6].mxu0 %v478_v20  ;;  %2014 = vmatpush1.bf16.msra.mxu1 %v2588_v12  ;;  %v1616_v20 = vld [vmem:[%s2654_s5 + $0x1a0] sm:$0xff] }
  0x7f   : > { %1989 = vmatpush3.bf16.msra.mxu0 %v2618_v22  ;;  %2015 = vmatprep.subr.bf16.mxu1 %v2220_v51 }
  0x80   : > { %1991 = vmatprep.subr.bf16.mxu0 %v2625_v24  ;;  %1588 = vmatprep.mubr.msk.f32.mxu1 %vm494_vm0, %v481_v23  ;;  %v1615_v23 = vld [vmem:[%s2654_s5 + $0x198] sm:$0xff] }
  0x81   : > { %600 = vmatprep.mubr.f32.mxu0 %v483_v25  ;;  %696 = vmatmul.mubr.f32.gmra.mrb[6].mxu1 %v480_v26  ;;  %v1628_v25 = vld [vmem:[%s2654_s5 + $0x1c8] sm:$0xff]  ;;  %v1614_v26 = vld [vmem:[%s2654_s5 + $0x190] sm:$0xff] }
  0x82   : > { %601 = vmatmul.mubr.f32.gmra.mrb[8].mxu0 %v482_v27  ;;  %2017 = vmatpush1.bf16.msra.mxu1 %v2616_v21  ;;  %v1619_v27 = vld [vmem:[%s2654_s5 + $0x1b8] sm:$0xff] }
  0x83   : > { %1993 = vmatpush3.bf16.msra.mxu0 %v2646_v31  ;;  %2018 = vmatprep.subr.bf16.mxu1 %v2220_v51 }
  0x84   : > { %1995 = vmatprep.subr.bf16.mxu0 %v2659_v35  ;;  %1589 = vmatprep.mubr.msk.f32.mxu1 %vm494_vm0, %v485_v28  ;;  %v1618_v28 = vld [vmem:[%s2654_s5 + $0x1b0] sm:$0xff] }
  0x85   : > { %605 = vmatprep.mubr.f32.mxu0 %v487_v29  ;;  %701 = vmatmul.mubr.f32.gmra.mrb[8].mxu1 %v484_v32  ;;  %v1627_v29 = vld [vmem:[%s2654_s5 + $0x1c0] sm:$0xff]  ;;  %v1632_v32 = vld [vmem:[%s2654_s5 + $0x1e8] sm:$0xff] }
  0x86   : > { %606 = vmatmul.mubr.f32.gmra.mrb[10].mxu0 %v486_v33  ;;  %2020 = vmatpush1.bf16.msra.mxu1 %v2644_v30  ;;  %v1630_v33 = vld [vmem:[%s2654_s5 + $0x1d8] sm:$0xff] }
  0x87   : > { %1997 = vmatpush3.bf16.msra.mxu0 %v2679_v42  ;;  %2021 = vmatprep.subr.bf16.mxu1 %v2220_v51 }
  0x88   : > { %1999 = vmatprep.subr.bf16.mxu0 %v2686_v44  ;;  %1590 = vmatprep.mubr.msk.f32.mxu1 %vm494_vm0, %v489_v34  ;;  %v1631_v34 = vld [vmem:[%s2654_s5 + $0x1e0] sm:$0xff] }
  0x89   : > { %610 = vmatprep.mubr.f32.mxu0 %v491_v36  ;;  %706 = vmatmul.mubr.f32.gmra.mrb[10].mxu1 %v488_v37  ;;  %v1635_v36 = vld [vmem:[%s2654_s5 + $0x200] sm:$0xff] }
  0x8a   : > { %611 = vmatmul.mubr.f32.gmra.mrb[12].mxu0 %v490_v38  ;;  %2023 = vmatpush1.bf16.msra.mxu1 %v2677_v41  ;;  %v1639_v37 = vld [vmem:[%s2654_s5 + $0x220] sm:$0xff] }
  0x8b   : > { %2001 = vmatpush3.bf16.msra.mxu0 %v2707_v53  ;;  %2024 = vmatprep.subr.bf16.mxu1 %v2220_v51  ;;  %v1643_v38 = vld [vmem:[%s2654_s5 + $0x240] sm:$0xff] }
  0x8c   : > { %2003 = vmatprep.subr.bf16.mxu0 %v2714_v55  ;;  %1591 = vmatprep.mubr.msk.f32.mxu1 %vm494_vm0, %v493_v39  ;;  %v1648_v39 = vld [vmem:[%s2654_s5 + $0x268] sm:$0xff] }
  0x8d   : > { %830 = vmatprep.mubr.f32.mxu0 %v1593_v40  ;;  %711 = vmatmul.mubr.f32.gmra.mrb[12].mxu1 %v492_v43  ;;  %v1647_v40 = vld [vmem:[%s2654_s5 + $0x260] sm:$0xff]  ;;  %v1652_v43 = vld [vmem:[%s2654_s5 + $0x288] sm:$0xff] }
  0x8e   : > { %2026 = vmatpush1.bf16.msra.mxu1 %v2705_v50  ;;  %1620 = vmatprep.mubr.msk.f32.mxu1 %vm494_vm0, %v1595_v45  ;;  %v1651_v45 = vld [vmem:[%s2654_s5 + $0x280] sm:$0xff] }
  0x8f   : > { %2005 = vmatpush3.bf16.msra.mxu0 %v2729_v63  ;;  %2027 = vmatprep.subr.bf16.mxu1 %v2220_v51 }
  0x90   : > { %2034 = vmatprep.subr.bf16.mxu0 %v2515_v52 }
  0x92   : > { %831 = vmatmul.mubr.f32.vlgmr.msra.gmra.mrb[14].mxu0 %v1592_v46  ;;  %2029 = vmatpush1.bf16.msra.mxu1 %v2727_v62  ;;  %v1663_v46 = vld [vmem:[%s2654_s5 + $0x2a8] sm:$0xff] }
  0x93   : > { %2036 = vmatpush3.bf16.msra.mxu0 %v2528_v57  ;;  %2030 = vmatprep.subr.bf16.mxu1 %v2220_v51 }
  0x94   : > { %2038 = vmatprep.subr.bf16.mxu0 %v2540_v61  ;;  %835 = vmatprep.mubr.f32.mxu0 %v1597_v47  ;;  %v1649_v47 = vld [vmem:[%s2654_s5 + $0x270] sm:$0xff] }
  0x96   : > { %836 = vmatmul.mubr.f32.gmra.mrb[16].mxu0 %v1596_v48  ;;  %2032 = vmatpush1.bf16.msra.mxu1 %v2742_v5  ;;  %v1662_v48 = vld [vmem:[%s2654_s5 + $0x2a0] sm:$0xff] }
  0x97   : > { %2040 = vmatpush3.bf16.msra.mxu0 %v2555_v2  ;;  %2065 = vmatprep.subr.bf16.mxu1 %v2220_v51 }
  0x98   : > { %2042 = vmatprep.subr.bf16.mxu0 %v2568_v6  ;;  %840 = vmatprep.mubr.f32.mxu0 %v1601_v49  ;;  %v1666_v49 = vld [vmem:[%s2654_s5 + $0x2c0] sm:$0xff] }
  0x99   : > { %931 = vmatmul.mubr.f32.vlgmr.msra.gmra.mrb[14].mxu1 %v1594_v54  ;;  %v1671_v54 = vld [vmem:[%s2654_s5 + $0x2e8] sm:$0xff] }
  0x9a   : > { %841 = vmatmul.mubr.f32.gmra.mrb[18].mxu0 %v1600_v58  ;;  %2067 = vmatpush1.bf16.msra.mxu1 %v2526_v56  ;;  %v1669_v58 = vld [vmem:[%s2654_s5 + $0x2d8] sm:$0xff] }
  0x9b   : > { %2044 = vmatpush3.bf16.msra.mxu0 %v2590_v13  ;;  %1621 = vmatprep.mubr.msk.f32.mxu1 %vm494_vm0, %v1599_v59  ;;  %v1675_v59 = vld [vmem:[%s2654_s5 + $0x308] sm:$0xff] }
  0x9c   : > { %2068 = vmatprep.subr.bf16.mxu1 %v2220_v51  ;;  %2046 = vmatprep.subr.bf16.mxu0 %v2597_v15 }
  0x9d   : > { %845 = vmatprep.mubr.f32.mxu0 %v1605_v60  ;;  %936 = vmatmul.mubr.f32.gmra.mrb[16].mxu1 %v1598_v0  ;;  %v1674_v60 = vld [vmem:[%s2654_s5 + $0x300] sm:$0xff]  ;;  %v1668_v0 = vld [vmem:[%s2654_s5 + $0x2d0] sm:$0xff] }
  0x9e   : > { %846 = vmatmul.mubr.f32.gmra.mrb[20].mxu0 %v1604_v3  ;;  %2070 = vmatpush1.bf16.msra.mxu1 %v2553_v1  ;;  %v1678_v3 = vld [vmem:[%s2654_s5 + $0x320] sm:$0xff] }
  0x9f   : > { %2048 = vmatpush3.bf16.msra.mxu0 %v2618_v22  ;;  %1622 = vmatprep.mubr.msk.f32.mxu1 %vm494_vm0, %v1603_v4  ;;  %v1683_v4 = vld [vmem:[%s2654_s5 + $0x348] sm:$0xff] }
  0xa0   : > { %2071 = vmatprep.subr.bf16.mxu1 %v2220_v51  ;;  %2050 = vmatprep.subr.bf16.mxu0 %v2625_v24 }
  0xa1   : > { %850 = vmatprep.mubr.f32.mxu0 %v1609_v7  ;;  %941 = vmatmul.mubr.f32.gmra.mrb[18].mxu1 %v1602_v8  ;;  %v1672_v7 = vld [vmem:[%s2654_s5 + $0x2f0] sm:$0xff]  ;;  %v1677_v8 = vld [vmem:[%s2654_s5 + $0x318] sm:$0xff] }
  0xa2   : > { %851 = vmatmul.mubr.f32.gmra.mrb[22].mxu0 %v1608_v9  ;;  %2073 = vmatpush1.bf16.msra.mxu1 %v2588_v12  ;;  %v1687_v9 = vld [vmem:[%s2654_s5 + $0x368] sm:$0xff] }
  0xa3   : > { %2052 = vmatpush3.bf16.msra.mxu0 %v2646_v31  ;;  %1623 = vmatprep.mubr.msk.f32.mxu1 %vm494_vm0, %v1607_v10  ;;  %v1676_v10 = vld [vmem:[%s2654_s5 + $0x310] sm:$0xff] }
  0xa4   : > { %2074 = vmatprep.subr.bf16.mxu1 %v2220_v51  ;;  %2054 = vmatprep.subr.bf16.mxu0 %v2659_v35 }
  0xa5   : > { %855 = vmatprep.mubr.f32.mxu0 %v1613_v11  ;;  %946 = vmatmul.mubr.f32.gmra.mrb[20].mxu1 %v1606_v14  ;;  %v1681_v11 = vld [vmem:[%s2654_s5 + $0x338] sm:$0xff] }
  0xa6   : > { %856 = vmatmul.mubr.f32.gmra.mrb[24].mxu0 %v1612_v16  ;;  %2076 = vmatpush1.bf16.msra.mxu1 %v2616_v21  ;;  %v1665_v14 = vld [vmem:[%s2654_s5 + $0x2b8] sm:$0xff] }
  0xa7   : > { %2056 = vmatpush3.bf16.msra.mxu0 %v2679_v42  ;;  %1624 = vmatprep.mubr.msk.f32.mxu1 %vm494_vm0, %v1611_v17  ;;  %v1685_v16 = vld [vmem:[%s2654_s5 + $0x358] sm:$0xff]  ;;  %v1684_v17 = vld [vmem:[%s2654_s5 + $0x350] sm:$0xff] }
  0xa8   : > { %2077 = vmatprep.subr.bf16.mxu1 %v2220_v51  ;;  %2058 = vmatprep.subr.bf16.mxu0 %v2686_v44 }
  0xa9   : > { %860 = vmatprep.mubr.f32.mxu0 %v1617_v18  ;;  %951 = vmatmul.mubr.f32.gmra.mrb[22].mxu1 %v1610_v19  ;;  %v1689_v18 = vld [vmem:[%s2654_s5 + $0x378] sm:$0xff]  ;;  %v1664_v19 = vld [vmem:[%s2654_s5 + $0x2b0] sm:$0xff] }
  0xaa   : > { %861 = vmatmul.mubr.f32.gmra.mrb[26].mxu0 %v1616_v20  ;;  %2079 = vmatpush1.bf16.msra.mxu1 %v2644_v30 }
  0xab   : > { %2060 = vmatpush3.bf16.msra.mxu0 %v2707_v53  ;;  %1625 = vmatprep.mubr.msk.f32.mxu1 %vm494_vm0, %v1615_v23 }
  0xac   : > { %2080 = vmatprep.subr.bf16.mxu1 %v2220_v51  ;;  %2062 = vmatprep.subr.bf16.mxu0 %v2714_v55 }
  0xad   : > { %1080 = vmatprep.mubr.f32.mxu0 %v1628_v25  ;;  %956 = vmatmul.mubr.f32.gmra.mrb[24].mxu1 %v1614_v26 }
  0xae   : > { %2082 = vmatpush1.bf16.msra.mxu1 %v2677_v41  ;;  %1626 = vmatprep.mubr.msk.f32.mxu1 %vm494_vm0, %v1619_v27 }
  0xaf   : > { %2064 = vmatpush3.bf16.msra.mxu0 %v2729_v63  ;;  %2083 = vmatprep.subr.bf16.mxu1 %v2220_v51 }
  0xb0   : > { %2093 = vmatprep.subr.bf16.mxu0 %v2515_v52  ;;  %v1636_v52 = vld [vmem:[%s2654_s5 + $0x208] sm:$0xff] }
  0xb1   : > { %961 = vmatmul.mubr.f32.gmra.mrb[26].mxu1 %v1618_v28 }
  0xb2   : > { %1081 = vmatmul.mubr.f32.vlgmr.msra.gmra.mrb[28].mxu0 %v1627_v29  ;;  %2085 = vmatpush1.bf16.msra.mxu1 %v2705_v50 }
  0xb3   : > { %2095 = vmatpush3.bf16.msra.mxu0 %v2528_v57  ;;  %2086 = vmatprep.subr.bf16.mxu1 %v2220_v51  ;;  %v1640_v57 = vld [vmem:[%s2654_s5 + $0x228] sm:$0xff] }
  0xb4   : > { %2097 = vmatprep.subr.bf16.mxu0 %v2540_v61  ;;  %1085 = vmatprep.mubr.f32.mxu0 %v1632_v32  ;;  %v1629_v61 = vld [vmem:[%s2654_s5 + $0x1d0] sm:$0xff] }
  0xb5   : > { %1655 = vmatprep.mubr.msk.f32.mxu1 %vm494_vm0, %v1630_v33 }
  0xb6   : > { %1086 = vmatmul.mubr.f32.gmra.mrb[30].mxu0 %v1631_v34  ;;  %2088 = vmatpush1.bf16.msra.mxu1 %v2727_v62 }
  0xb7   : > { %2099 = vmatpush3.bf16.msra.mxu0 %v2555_v2  ;;  %2089 = vmatprep.subr.bf16.mxu1 %v2220_v51  ;;  %v1634_v2 = vld [vmem:[%s2654_s5 + $0x1f8] sm:$0xff] }
  0xb8   : > { %2101 = vmatprep.subr.bf16.mxu0 %v2568_v6  ;;  %1090 = vmatprep.mubr.f32.mxu0 %v1636_v52  ;;  %v1644_v6 = vld [vmem:[%s2654_s5 + $0x248] sm:$0xff] }
  0xba   : > { %1091 = vmatmul.mubr.f32.gmra.mrb[32].mxu0 %v1635_v36  ;;  %2091 = vmatpush1.bf16.msra.mxu1 %v2742_v5 }
  0xbb   : > { %2103 = vmatpush3.bf16.msra.mxu0 %v2590_v13  ;;  %2151 = vmatprep.subr.bf16.mxu1 %v2220_v51  ;;  %v1633_v13 = vld [vmem:[%s2654_s5 + $0x1f0] sm:$0xff] }
  0xbc   : > { %2105 = vmatprep.subr.bf16.mxu0 %v2597_v15  ;;  %1095 = vmatprep.mubr.f32.mxu0 %v1640_v57  ;;  %v1638_v15 = vld [vmem:[%s2654_s5 + $0x218] sm:$0xff] }
  0xbd   : > { %1181 = vmatmul.mubr.f32.vlgmr.msra.gmra.mrb[28].mxu1 %v1629_v61 }
  0xbe   : > { %1096 = vmatmul.mubr.f32.gmra.mrb[34].mxu0 %v1639_v37  ;;  %2160 = vmatpush1.bf16.msra.mxu1 %v2526_v56 }
  0xbf   : > { %2107 = vmatpush3.bf16.msra.mxu0 %v2618_v22  ;;  %1656 = vmatprep.mubr.msk.f32.mxu1 %vm494_vm0, %v1634_v2  ;;  %v1637_v22 = vld [vmem:[%s2654_s5 + $0x210] sm:$0xff] }
  0xc0   : > { %2152 = vmatprep.subr.bf16.mxu1 %v2220_v51  ;;  %2109 = vmatprep.subr.bf16.mxu0 %v2625_v24  ;;  %v1642_v24 = vld [vmem:[%s2654_s5 + $0x238] sm:$0xff] }
  0xc1   : > { %1100 = vmatprep.mubr.f32.mxu0 %v1644_v6  ;;  %1186 = vmatmul.mubr.f32.gmra.mrb[30].mxu1 %v1633_v13 }
  0xc2   : > { %1101 = vmatmul.mubr.f32.gmra.mrb[36].mxu0 %v1643_v38  ;;  %2161 = vmatpush1.bf16.msra.mxu1 %v2553_v1 }
  0xc3   : > { %2111 = vmatpush3.bf16.msra.mxu0 %v2646_v31  ;;  %1657 = vmatprep.mubr.msk.f32.mxu1 %vm494_vm0, %v1638_v15  ;;  %v1641_v31 = vld [vmem:[%s2654_s5 + $0x230] sm:$0xff] }
  0xc4   : > { %2153 = vmatprep.subr.bf16.mxu1 %v2220_v51  ;;  %2113 = vmatprep.subr.bf16.mxu0 %v2659_v35  ;;  %v1646_v35 = vld [vmem:[%s2654_s5 + $0x258] sm:$0xff] }
  0xc5   : > { %1105 = vmatprep.mubr.f32.mxu0 %v1648_v39  ;;  %1191 = vmatmul.mubr.f32.gmra.mrb[32].mxu1 %v1637_v22 }
  0xc6   : > { %1106 = vmatmul.mubr.f32.gmra.mrb[38].mxu0 %v1647_v40  ;;  %2162 = vmatpush1.bf16.msra.mxu1 %v2588_v12 }
  0xc7   : > { %2115 = vmatpush3.bf16.msra.mxu0 %v2679_v42  ;;  %1658 = vmatprep.mubr.msk.f32.mxu1 %vm494_vm0, %v1642_v24  ;;  %v1645_v42 = vld [vmem:[%s2654_s5 + $0x250] sm:$0xff] }
  0xc8   : > { %2154 = vmatprep.subr.bf16.mxu1 %v2220_v51  ;;  %2117 = vmatprep.subr.bf16.mxu0 %v2686_v44  ;;  %v1650_v44 = vld [vmem:[%s2654_s5 + $0x278] sm:$0xff] }
  0xc9   : > { %1110 = vmatprep.mubr.f32.mxu0 %v1652_v43  ;;  %1196 = vmatmul.mubr.f32.gmra.mrb[34].mxu1 %v1641_v31 }
  0xca   : > { %1111 = vmatmul.mubr.f32.gmra.mrb[40].mxu0 %v1651_v45  ;;  %2163 = vmatpush1.bf16.msra.mxu1 %v2616_v21 }
  0xcb   : > { %2119 = vmatpush3.bf16.msra.mxu0 %v2707_v53  ;;  %1659 = vmatprep.mubr.msk.f32.mxu1 %vm494_vm0, %v1646_v35  ;;  %v1654_v53 = vld [vmem:[%s2654_s5 + $0x298] sm:$0xff] }
  0xcc   : > { %2155 = vmatprep.subr.bf16.mxu1 %v2220_v51  ;;  %2121 = vmatprep.subr.bf16.mxu0 %v2714_v55  ;;  %v1667_v55 = vld [vmem:[%s2654_s5 + $0x2c8] sm:$0xff] }
  0xcd   : > { %1330 = vmatprep.mubr.f32.mxu0 %v1663_v46  ;;  %1201 = vmatmul.mubr.f32.gmra.mrb[36].mxu1 %v1645_v42 }
  0xce   : > { %2164 = vmatpush1.bf16.msra.mxu1 %v2644_v30  ;;  %1660 = vmatprep.mubr.msk.f32.mxu1 %vm494_vm0, %v1650_v44 }
  0xcf   : > { %2123 = vmatpush3.bf16.msra.mxu0 %v2729_v63  ;;  %2156 = vmatprep.subr.bf16.mxu1 %v2220_v51  ;;  %v1653_v63 = vld [vmem:[%s2654_s5 + $0x290] sm:$0xff] }
  0xd0   : > { %2124 = vmatprep.subr.bf16.mxu0 %v2220_v51 }
  0xd1   : > { %1206 = vmatmul.mubr.f32.gmra.mrb[38].mxu1 %v1649_v47 }
  0xd2   : > { %1331 = vmatmul.mubr.f32.vlgmr.msra.gmra.mrb[42].mxu0 %v1662_v48  ;;  %2165 = vmatpush1.bf16.msra.mxu1 %v2677_v41 }
  0xd3   : > { %2126 = vmatpush1.bf16.msra.mxu0 %v2526_v56  ;;  %1661 = vmatprep.mubr.msk.f32.mxu1 %vm494_vm0, %v1654_v53  ;;  %v1670_v56 = vld [vmem:[%s2654_s5 + $0x2e0] sm:$0xff] }
  0xd4   : > { %2157 = vmatprep.subr.bf16.mxu1 %v2220_v51  ;;  %2127 = vmatprep.subr.bf16.mxu0 %v2220_v51 }
  0xd5   : > { %1335 = vmatprep.mubr.f32.mxu0 %v1667_v55  ;;  %1211 = vmatmul.mubr.f32.gmra.mrb[40].mxu1 %v1653_v63 }
  0xd6   : > { %1336 = vmatmul.mubr.f32.gmra.mrb[44].mxu0 %v1666_v49  ;;  %2166 = vmatpush1.bf16.msra.mxu1 %v2705_v50 }
  0xd7   : > { %2129 = vmatpush1.bf16.msra.mxu0 %v2553_v1  ;;  %2158 = vmatprep.subr.bf16.mxu1 %v2220_v51  ;;  %v1679_v1 = vld [vmem:[%s2654_s5 + $0x328] sm:$0xff] }
  0xd8   : > { %2130 = vmatprep.subr.bf16.mxu0 %v2220_v51  ;;  %1340 = vmatprep.mubr.f32.mxu0 %v1671_v54 }
  0xd9   : > { %1691 = vmatprep.mubr.msk.f32.mxu1 %vm494_vm0, %v1669_v58 }
  0xda   : > { %1341 = vmatmul.mubr.f32.gmra.mrb[46].mxu0 %v1670_v56  ;;  %2167 = vmatpush1.bf16.msra.mxu1 %v2727_v62 }
  0xdb   : > { %2132 = vmatpush1.bf16.msra.mxu0 %v2588_v12  ;;  %2159 = vmatprep.subr.bf16.mxu1 %v2220_v51  ;;  %v1673_v12 = vld [vmem:[%s2654_s5 + $0x2f8] sm:$0xff] }
  0xdc   : > { %2133 = vmatprep.subr.bf16.mxu0 %v2220_v51  ;;  %1345 = vmatprep.mubr.f32.mxu0 %v1675_v59 }
  0xde   : > { %1346 = vmatmul.mubr.f32.gmra.mrb[48].mxu0 %v1674_v60  ;;  %2168 = vmatpush1.bf16.msra.mxu1 %v2742_v5 }
  0xdf   : > { %2135 = vmatpush1.bf16.msra.mxu0 %v2616_v21  ;;  %1350 = vmatprep.mubr.f32.mxu0 %v1679_v1  ;;  %v1682_v21 = vld [vmem:[%s2654_s5 + $0x340] sm:$0xff] }
  0xe0   : > { %2136 = vmatprep.subr.bf16.mxu0 %v2220_v51 }
  0xe1   : > { %1436 = vmatmul.mubr.f32.vlgmr.msra.gmra.mrb[42].mxu1 %v1668_v0 }
  0xe2   : > { %1351 = vmatmul.mubr.f32.gmra.mrb[50].mxu0 %v1678_v3  ;;  %1692 = vmatprep.mubr.msk.f32.mxu1 %vm494_vm0, %v1673_v12 }
  0xe3   : > { %2138 = vmatpush1.bf16.msra.mxu0 %v2644_v30  ;;  %1355 = vmatprep.mubr.f32.mxu0 %v1683_v4  ;;  %v1686_v30 = vld [vmem:[%s2654_s5 + $0x360] sm:$0xff] }
  0xe4   : > { %2139 = vmatprep.subr.bf16.mxu0 %v2220_v51 }
  0xe5   : > { %1441 = vmatmul.mubr.f32.gmra.mrb[44].mxu1 %v1672_v7 }
  0xe6   : > { %1356 = vmatmul.mubr.f32.gmra.mrb[52].mxu0 %v1682_v21  ;;  %1693 = vmatprep.mubr.msk.f32.mxu1 %vm494_vm0, %v1677_v8 }
  0xe7   : > { %2141 = vmatpush1.bf16.msra.mxu0 %v2677_v41  ;;  %1360 = vmatprep.mubr.f32.mxu0 %v1687_v9  ;;  %v1680_v41 = vld [vmem:[%s2654_s5 + $0x330] sm:$0xff] }
  0xe8   : > { %2142 = vmatprep.subr.bf16.mxu0 %v2220_v51 }
  0xe9   : > { %1446 = vmatmul.mubr.f32.gmra.mrb[46].mxu1 %v1676_v10 }
  0xea   : > { %1361 = vmatmul.mubr.f32.gmra.mrb[54].mxu0 %v1686_v30  ;;  %1694 = vmatprep.mubr.msk.f32.mxu1 %vm494_vm0, %v1681_v11 }
  0xeb   : > { %2144 = vmatpush1.bf16.msra.mxu0 %v2705_v50  ;;  %1690 = vmatprep.mubr.msk.f32.mxu0 %vm494_vm0, %v1665_v14  ;;  %v1688_v50 = vld [vmem:[%s2654_s5 + $0x370] sm:$0xff]  ;;  %s410_s5 = smul.u32 7, %s1577_s15 }
  0xec   : > { %2145 = vmatprep.subr.bf16.mxu0 %v2220_v51 }
  0xed   : > { %1451 = vmatmul.mubr.f32.gmra.mrb[48].mxu1 %v1680_v41  ;;  %p411_p8 = scmp.lt.s32.totalorder %s410_s5, 13 }
  0xee   : > { %1695 = vmatprep.mubr.msk.f32.mxu1 %vm494_vm0, %v1685_v16 }
  0xef   : > { %2147 = vmatpush1.bf16.msra.mxu0 %v2727_v62  ;;  %s3115_s5 = smov (!%p411_p8, %s410_s5), 13 }
  0xf0   : > { %2148 = vmatprep.subr.bf16.mxu0 %v2220_v51  ;;  %s1584_s14 = sshll.u32 %s3115_s5, 3 }
  0xf1   : > { %1456 = vmatmul.mubr.f32.gmra.mrb[50].mxu1 %v1684_v17  ;;  %s3065_s26 = scalar_lea.vmem %s3110_s3, %s1584_s14 }
  0xf2   : > { %1696 = vmatprep.mubr.msk.f32.mxu1 %vm494_vm0, %v1689_v18 }
  0xf3   : > { %2150 = vmatpush1.bf16.msra.mxu0 %v2742_v5 }
  0xf5   : > { %1461 = vmatmul.mubr.f32.gmra.mrb[52].mxu1 %v1688_v50 }
  0xf6   : > { %1431 = vmatmul.mubr.f32.vlgmr.msra.gmra.mrb[56].mxu0 %v1664_v19 }
 0x145   : > { %v1735_v20 = vpop.f32.mrb[0].mxu0 }
 0x146   : > { %v1736_v23 = vpop.f32.mrb[1].mxu0 }
 0x147   : > { %v1737_v25 = vadd.f32 %v1736_v23, %v1735_v20 }
 0x148   : > { %v682_v26 = vpop.f32.mrb[0].mxu1 }
 0x149   : > { %v1738_v62 = vpop.f32.mrb[2].mxu0  ;;  %v3002_v27 = vadd.f32 %v1737_v25, %v682_v26  ;;  %v684_v28 = vpop.f32.mrb[1].mxu1 }
 0x14a   : > { %v1739_v29 = vpop.f32.mrb[3].mxu0 }
 0x14b   : > { %v1740_v51 = vadd.f32 %v1739_v29, %v1738_v62 }
 0x14c   : > { %v687_v32 = vpop.f32.mrb[2].mxu1 }
 0x14d   : > { %v1741_v33 = vpop.f32.mrb[4].mxu0  ;;  %v3004_v34 = vadd.f32 %v1740_v51, %v687_v32  ;;  %v689_v52 = vpop.f32.mrb[3].mxu1 }
 0x14e   : > { %v1742_v5 = vpop.f32.mrb[5].mxu0 }
 0x14f   : > { %v1743_v36 = vadd.f32 %v1742_v5, %v1741_v33 }
 0x150   : > { %v692_v57 = vpop.f32.mrb[4].mxu1 }
 0x151   : > { %v1744_v61 = vpop.f32.mrb[6].mxu0  ;;  %v3006_v37 = vadd.f32 %v1743_v36, %v692_v57  ;;  %v694_v6 = vpop.f32.mrb[5].mxu1 }
 0x152   : > { %v1745_v2 = vpop.f32.mrb[7].mxu0 }
 0x153   : > { %v1746_v13 = vadd.f32 %v1745_v2, %v1744_v61 }
 0x154   : > { %v697_v38 = vpop.f32.mrb[6].mxu1 }
 0x155   : > { %v1747_v15 = vpop.f32.mrb[8].mxu0  ;;  %v3008_v39 = vadd.f32 %v1746_v13, %v697_v38  ;;  %v699_v40 = vpop.f32.mrb[7].mxu1 }
 0x156   : > { %v1748_v22 = vpop.f32.mrb[9].mxu0 }
 0x157   : > { %v1749_v24 = vadd.f32 %v1748_v22, %v1747_v15 }
 0x158   : > { %v702_v43 = vpop.f32.mrb[8].mxu1 }
 0x159   : > { %v1750_v31 = vpop.f32.mrb[10].mxu0  ;;  %v3010_v45 = vadd.f32 %v1749_v24, %v702_v43  ;;  %v704_v46 = vpop.f32.mrb[9].mxu1 }
 0x15a   : > { %v1751_v35 = vpop.f32.mrb[11].mxu0 }
 0x15b   : > { %v1752_v42 = vadd.f32 %v1751_v35, %v1750_v31 }
 0x15c   : > { %v707_v44 = vpop.f32.mrb[10].mxu1 }
 0x15d   : > { %v1753_v47 = vpop.f32.mrb[12].mxu0  ;;  %v3012_v48 = vadd.f32 %v1752_v42, %v707_v44  ;;  %v709_v55 = vpop.f32.mrb[11].mxu1 }
 0x15e   : > { %v1754_v53 = vpop.f32.mrb[13].mxu0 }
 0x15f   : > { %v1755_v63 = vadd.f32 %v1754_v53, %v1753_v47 }
 0x160   : > { %v712_v49 = vpop.f32.mrb[12].mxu1 }
 0x161   : > { %v3014_v54 = vadd.f32 %v1755_v63, %v712_v49  ;;  %v714_v58 = vpop.f32.mrb[13].mxu1 }
 0x165   : > { %v1788_v56 = vpop.f32.mrb[14].mxu0 }
 0x166   : > { %v1789_v59 = vpop.f32.mrb[15].mxu0 }
 0x167   : > { %v1790_v60 = vadd.f32 %v1789_v59, %v1788_v56 }
 0x169   : > { %v1791_v1 = vpop.f32.mrb[16].mxu0 }
 0x16a   : > { %v1792_v0 = vpop.f32.mrb[17].mxu0 }
 0x16b   : > { %v1793_v3 = vadd.f32 %v1792_v0, %v1791_v1 }
 0x16c   : > { %v932_v12 = vpop.f32.mrb[14].mxu1 }
 0x16d   : > { %v1794_v4 = vpop.f32.mrb[18].mxu0  ;;  %v3016_v7 = vadd.f32 %v1790_v60, %v932_v12  ;;  %v934_v21 = vpop.f32.mrb[15].mxu1 }
 0x16e   : > { %v1795_v8 = vpop.f32.mrb[19].mxu0 }
 0x16f   : > { %v1796_v9 = vadd.f32 %v1795_v8, %v1794_v4  ;;  %v1466_v10 = vmax.f32 %v3002_v27, %v3016_v7 }
 0x170   : > { %v937_v30 = vpop.f32.mrb[16].mxu1 }
 0x171   : > { %v1797_v11 = vpop.f32.mrb[20].mxu0  ;;  %v3020_v14 = vadd.f32 %v1793_v3, %v937_v30  ;;  %v939_v41 = vpop.f32.mrb[17].mxu1 }
 0x172   : > { %v1798_v16 = vpop.f32.mrb[21].mxu0 }
 0x173   : > { %v1799_v17 = vadd.f32 %v1798_v16, %v1797_v11  ;;  %v1467_v18 = vmax.f32 %v3004_v34, %v3020_v14 }
 0x174   : > { %v942_v50 = vpop.f32.mrb[18].mxu1 }
 0x175   : > { %v1800_v19 = vpop.f32.mrb[22].mxu0  ;;  %v3024_v20 = vadd.f32 %v1796_v9, %v942_v50  ;;  %v944_v23 = vpop.f32.mrb[19].mxu1 }
 0x176   : > { %v1801_v25 = vpop.f32.mrb[23].mxu0 }
 0x177   : > { %v1802_v26 = vadd.f32 %v1801_v25, %v1800_v19  ;;  %v1468_v62 = vmax.f32 %v3006_v37, %v3024_v20 }
 0x178   : > { %v947_v28 = vpop.f32.mrb[20].mxu1 }
 0x179   : > { %v1803_v29 = vpop.f32.mrb[24].mxu0  ;;  %v3028_v51 = vadd.f32 %v1799_v17, %v947_v28  ;;  %v949_v32 = vpop.f32.mrb[21].mxu1 }
 0x17a   : > { %v1804_v33 = vpop.f32.mrb[25].mxu0 }
 0x17b   : > { %v1805_v5 = vadd.f32 %v1804_v33, %v1803_v29  ;;  %v1469_v52 = vmax.f32 %v3008_v39, %v3028_v51 }
 0x17c   : > { %v952_v36 = vpop.f32.mrb[22].mxu1 }
 0x17d   : > { %v1806_v57 = vpop.f32.mrb[26].mxu0  ;;  %v3032_v61 = vadd.f32 %v1802_v26, %v952_v36  ;;  %v954_v2 = vpop.f32.mrb[23].mxu1 }
 0x17e   : > { %v1807_v6 = vpop.f32.mrb[27].mxu0 }
 0x17f   : > { %v1808_v13 = vadd.f32 %v1807_v6, %v1806_v57  ;;  %v1470_v38 = vmax.f32 %v3010_v45, %v3032_v61 }
 0x180   : > { %v957_v15 = vpop.f32.mrb[24].mxu1 }
 0x181   : > { %v3036_v22 = vadd.f32 %v1805_v5, %v957_v15  ;;  %v959_v40 = vpop.f32.mrb[25].mxu1 }
 0x183   : > { %v1471_v24 = vmax.f32 %v3012_v48, %v3036_v22 }
 0x184   : > { %v962_v43 = vpop.f32.mrb[26].mxu1 }
 0x185   : > { %v1841_v31 = vpop.f32.mrb[28].mxu0  ;;  %v3040_v35 = vadd.f32 %v1808_v13, %v962_v43  ;;  %v964_v42 = vpop.f32.mrb[27].mxu1 }
 0x186   : > { %v1842_v46 = vpop.f32.mrb[29].mxu0 }
 0x187   : > { %v1843_v44 = vadd.f32 %v1842_v46, %v1841_v31  ;;  %v1472_v47 = vmax.f32 %v3014_v54, %v3040_v35 }
 0x189   : > { %v1844_v53 = vpop.f32.mrb[30].mxu0 }
 0x18a   : > { %v1845_v55 = vpop.f32.mrb[31].mxu0 }
 0x18b   : > { %v1846_v63 = vadd.f32 %v1845_v55, %v1844_v53 }
 0x18d   : > { %v1847_v49 = vpop.f32.mrb[32].mxu0 }
 0x18e   : > { %v1848_v58 = vpop.f32.mrb[33].mxu0 }
 0x18f   : > { %v1849_v56 = vadd.f32 %v1848_v58, %v1847_v49 }
 0x190   : > { %v1182_v59 = vpop.f32.mrb[28].mxu1 }
 0x191   : > { %v1850_v60 = vpop.f32.mrb[34].mxu0  ;;  %v3044_v1 = vadd.f32 %v1843_v44, %v1182_v59  ;;  %v1184_v0 = vpop.f32.mrb[29].mxu1 }
 0x192   : > { %v1851_v3 = vpop.f32.mrb[35].mxu0 }
 0x193   : > { %v1852_v12 = vadd.f32 %v1851_v3, %v1850_v60 }
 0x194   : > { %v1187_v4 = vpop.f32.mrb[30].mxu1 }
 0x195   : > { %v1853_v21 = vpop.f32.mrb[36].mxu0  ;;  %v1188_v8 = vadd.f32 %v1846_v63, %v1187_v4  ;;  %v1189_v9 = vpop.f32.mrb[31].mxu1 }
 0x196   : > { %v1854_v30 = vpop.f32.mrb[37].mxu0 }
 0x197   : > { %v1855_v11 = vadd.f32 %v1854_v30, %v1853_v21 }
 0x198   : > { %v1192_v41 = vpop.f32.mrb[32].mxu1 }
 0x199   : > { %v1856_v16 = vpop.f32.mrb[38].mxu0  ;;  %v1193_v17 = vadd.f32 %v1849_v56, %v1192_v41  ;;  %v1194_v50 = vpop.f32.mrb[33].mxu1 }
 0x19a   : > { %v1857_v19 = vpop.f32.mrb[39].mxu0 }
 0x19b   : > { %v1858_v23 = vadd.f32 %v1857_v19, %v1856_v16 }
 0x19c   : > { %v1197_v25 = vpop.f32.mrb[34].mxu1 }
 0x19d   : > { %v1859_v26 = vpop.f32.mrb[40].mxu0  ;;  %v1198_v28 = vadd.f32 %v1852_v12, %v1197_v25  ;;  %v1199_v29 = vpop.f32.mrb[35].mxu1 }
 0x19e   : > { %v1860_v32 = vpop.f32.mrb[41].mxu0 }
 0x19f   : > { %v1861_v33 = vadd.f32 %v1860_v32, %v1859_v26 }
 0x1a0   : > { %v1202_v5 = vpop.f32.mrb[36].mxu1 }
 0x1a1   : > { %v3046_v36 = vadd.f32 %v1855_v11, %v1202_v5  ;;  %v1204_v57 = vpop.f32.mrb[37].mxu1  ;;  %v1697_v11 = vld [vmem:[%s3109_s2] ss:$0 sm:$0xff] }
 0x1a4   : > { %v1207_v2 = vpop.f32.mrb[38].mxu1 }
 0x1a5   : > { %v1894_v6 = vpop.f32.mrb[42].mxu0  ;;  %v3048_v13 = vadd.f32 %v1858_v23, %v1207_v2  ;;  %v1209_v40 = vpop.f32.mrb[39].mxu1 }
 0x1a6   : > { %v1895_v15 = vpop.f32.mrb[43].mxu0 }
 0x1a7   : > { %v3050_v43 = vadd.f32 %v1895_v15, %v1894_v6 }
 0x1a8   : > { %v1212_v31 = vpop.f32.mrb[40].mxu1 }
 0x1a9   : > { %v1897_v46 = vpop.f32.mrb[44].mxu0  ;;  %v3052_v42 = vadd.f32 %v1861_v33, %v1212_v31  ;;  %v1214_v44 = vpop.f32.mrb[41].mxu1 }
 0x1aa   : > { %v1898_v53 = vpop.f32.mrb[45].mxu0 }
 0x1ab   : > { %v1899_v55 = vadd.f32 %v1898_v53, %v1897_v46 }
 0x1ad   : > { %v1900_v63 = vpop.f32.mrb[46].mxu0 }
 0x1ae   : > { %v1901_v49 = vpop.f32.mrb[47].mxu0 }
 0x1af   : > { %v1902_v58 = vadd.f32 %v1901_v49, %v1900_v63 }
 0x1b1   : > { %v1903_v56 = vpop.f32.mrb[48].mxu0 }
 0x1b2   : > { %v1904_v59 = vpop.f32.mrb[49].mxu0 }
 0x1b3   : > { %v1905_v60 = vadd.f32 %v1904_v59, %v1903_v56 }
 0x1b4   : > { %v1437_v0 = vpop.f32.mrb[42].mxu1 }
 0x1b5   : > { %v1906_v3 = vpop.f32.mrb[50].mxu0  ;;  %v1438_v12 = vadd.f32 %v1899_v55, %v1437_v0  ;;  %v1439_v4 = vpop.f32.mrb[43].mxu1 }
 0x1b6   : > { %v1907_v21 = vpop.f32.mrb[51].mxu0 }
 0x1b7   : > { %v1908_v9 = vadd.f32 %v1907_v21, %v1906_v3  ;;  %v1474_v30 = vmax.f32 %v1188_v8, %v1438_v12 }
 0x1b8   : > { %v1442_v41 = vpop.f32.mrb[44].mxu1 }
 0x1b9   : > { %v1909_v16 = vpop.f32.mrb[52].mxu0  ;;  %v1481_v50 = vmax.f32 %v1467_v18, %v1474_v30  ;;  %v1443_v19 = vadd.f32 %v1902_v58, %v1442_v41  ;;  %v1444_v23 = vpop.f32.mrb[45].mxu1 }
 0x1ba   : > { %v1910_v25 = vpop.f32.mrb[53].mxu0 }
 0x1bb   : > { %v1911_v26 = vadd.f32 %v1910_v25, %v1909_v16  ;;  %v1495_v29 = vadd.f32 %v1697_v11, %v1481_v50  ;;  %v1475_v32 = vmax.f32 %v1193_v17, %v1443_v19 }
 0x1bc   : > { %v1447_v8 = vpop.f32.mrb[46].mxu1 }
 0x1bd   : > { %v1912_v33 = vpop.f32.mrb[54].mxu0  ;;  %v1502_v5 = vmax.f32 %v1495_v29, 0.0  ;;  %v1482_v34 = vmax.f32 %v1468_v62, %v1475_v32  ;;  %v1448_v14 = vadd.f32 %v1905_v60, %v1447_v8  ;;  %v1449_v18 = vpop.f32.mrb[47].mxu1 }
 0x1be   : > { %v1913_v57 = vpop.f32.mrb[55].mxu0 }
 0x1bf   : > { %v1914_v2 = vadd.f32 %v1913_v57, %v1912_v33  ;;  %1509 = vst [vmem:[%s3065_s26 + $0x8] sm:$0xff] %v1502_v5  ;;  %v1496_v17 = vadd.f32 %v1697_v11, %v1482_v34  ;;  %v1476_v6 = vmax.f32 %v1198_v28, %v1448_v14 }
 0x1c0   : > { %v1452_v15 = vpop.f32.mrb[48].mxu1 }
 0x1c1   : > { %v1503_v40 = vmax.f32 %v1496_v17, 0.0  ;;  %v1483_v31 = vmax.f32 %v1469_v52, %v1476_v6  ;;  %v1453_v46 = vadd.f32 %v1908_v9, %v1452_v15  ;;  %v1454_v44 = vpop.f32.mrb[49].mxu1 }
 0x1c3   : > { %1510 = vst [vmem:[%s3065_s26 + $0x10] sm:$0xff] %v1503_v40  ;;  %v1497_v53 = vadd.f32 %v1697_v11, %v1483_v31  ;;  %v1477_v37 = vmax.f32 %v3046_v36, %v1453_v46 }
 0x1c4   : > { %v1457_v20 = vpop.f32.mrb[50].mxu1 }
 0x1c5   : > { %v1504_v62 = vmax.f32 %v1497_v53, 0.0  ;;  %v1484_v55 = vmax.f32 %v1470_v38, %v1477_v37  ;;  %v1458_v28 = vadd.f32 %v1911_v26, %v1457_v20  ;;  %v1459_v63 = vpop.f32.mrb[51].mxu1 }
 0x1c7   : > { %1511 = vst [vmem:[%s3065_s26 + $0x18] sm:$0xff] %v1504_v62  ;;  %v1498_v49 = vadd.f32 %v1697_v11, %v1484_v55  ;;  %v1478_v39 = vmax.f32 %v3048_v13, %v1458_v28 }
 0x1c8   : > { %v1462_v51 = vpop.f32.mrb[52].mxu1 }
 0x1c9   : > { %v1432_v52 = vpop.f32.mrb[56].mxu0  ;;  %v1505_v58 = vmax.f32 %v1498_v49, 0.0  ;;  %v1485_v36 = vmax.f32 %v1471_v24, %v1478_v39  ;;  %v1463_v56 = vadd.f32 %v1914_v2, %v1462_v51  ;;  %v1464_v45 = vpop.f32.mrb[53].mxu1 }
 0x1ca   : > { %v1433_v59 = vadd.f32 %v3050_v43, %v1432_v52  ;;  %v1434_v61 = vpop.f32.mrb[57].mxu0 }
 0x1cb   : > { %1512 = vst [vmem:[%s3065_s26 + $0x20] sm:$0xff] %v1505_v58  ;;  %v1499_v38 = vadd.f32 %v1697_v11, %v1485_v36  ;;  %v1479_v60 = vmax.f32 %v3052_v42, %v1463_v56 }
 0x1cc   : > { %v1473_v13 = vmax.f32 %v3044_v1, %v1433_v59 }
 0x1cd   : > { %v1506_v0 = vmax.f32 %v1499_v38, 0.0  ;;  %v1486_v3 = vmax.f32 %v1472_v47, %v1479_v60 }
 0x1ce   : > { %v1480_v48 = vmax.f32 %v1466_v10, %v1473_v13 }
 0x1cf   : > { %1513 = vst [vmem:[%s3065_s26 + $0x28] sm:$0xff] %v1506_v0  ;;  %v1500_v22 = vadd.f32 %v1697_v11, %v1486_v3 }
 0x1d0   : > { %v1494_v24 = vadd.f32 %v1697_v11, %v1480_v48 }
 0x1d1   : > { %v1507_v43 = vmax.f32 %v1500_v22, 0.0 }
 0x1d2   : > { %v1501_v12 = vmax.f32 %v1494_v24, 0.0 }
 0x1d3   : > { %1514 = vst [vmem:[%s3065_s26 + $0x30] sm:$0xff] %v1507_v43 }
 0x1d4   : > { %1508 = vst [vmem:[%s3065_s26] sm:$0xff] %v1501_v12 }
 0x1d5 PF: > { %p10_p9 = scmp.ge.s32.totalorder %s2258_s16, 4   ;;  %s3111_s12 = smov %s2214_s13 }
 0x1d6   : > { %s3112_s13 = smov %s2267_s19  ;;  %s3113_s14 = smov %s2258_s16 }
 0x1d7   :  { %12 = sbr.rel (!%p10_p9) target bundleno = 2 (0x2), region = 93 }

// kernel: cnn_forward.5
= control target key start
LH: loop header
LB: loop body
LE: loop exit
PB: predicated region body
PF: predicated region fallthrough
CT: control target
= control target key end

     0   :  { %v1263_v43 = vmov 1983009808   ;;  %v230_v45 = vlaneseq  ;;  %s1931_s0 = inlined_call_operand.vmem [shape: f32[2,1568], index: 0, kind: input, shape index: {}]   ;;  %s1932_s1 = inlined_call_operand.vmem [shape: f32[1568,128], index: 1, kind: input, shape index: {}]   ;;  %s1933_s2 = inlined_call_operand.vmem [shape: f32[1,128], index: 2, kind: input, shape index: {}]   ;;  %s1934_s3 = inlined_call_operand.hbm [shape: f32[2,128], index: 3, kind: output, shape index: {}]  }
   0x1   :  { %v35_v0 = vld [vmem:[%s1932_s1 + $0x80] sm:$0xff]  ;;  %v36_v1 = vld [vmem:[%s1932_s1 + $0x88] sm:$0xff]  ;;  %v37_v11 = vld [vmem:[%s1932_s1 + $0x90] sm:$0xff]  ;;  %v228_v44 = vunpack.c.l.s4 %v1263_v43 }
   0x2   :  { %v19_v2 = vld [vmem:[%s1932_s1] sm:$0xff]  ;;  %v1033_v3 = vpack.c.bf16 %v36_v1, %v35_v0  ;;  %v20_v4 = vld [vmem:[%s1932_s1 + $0x8] sm:$0xff]  ;;  %v38_v13 = vld [vmem:[%s1932_s1 + $0x98] sm:$0xff]  ;;  %v231_v60 = vshrl.u32 %v230_v45, 7 }
   0x3   :  { %v67_v5 = vld [vmem:[%s1932_s1 + $0x180] sm:$0xff]  ;;  %v68_v6 = vld [vmem:[%s1932_s1 + $0x188] sm:$0xff]  ;;  %v1035_v7 = vpack.c.bf16 %v20_v4, %v19_v2  ;;  %v21_v14 = vld [vmem:[%s1932_s1 + $0x10] sm:$0xff]  ;;  %v1037_v16 = vpack.c.bf16 %v38_v13, %v37_v11  ;;  %v229_v59 = vunpack.c.0.s8 %v228_v44 }
   0x4   :  { %v1065_v8 = vpack.c.bf16 %v68_v6, %v67_v5  ;;  %v51_v9 = vld [vmem:[%s1932_s1 + $0x100] sm:$0xff]  ;;  %v52_v10 = vld [vmem:[%s1932_s1 + $0x108] sm:$0xff]  ;;  %1034 = vmatprep.subr.bf16.mxu0 %v1033_v3  ;;  %v22_v15 = vld [vmem:[%s1932_s1 + $0x18] sm:$0xff] }
   0x5   :  { %v1067_v12 = vpack.c.bf16 %v52_v10, %v51_v9  ;;  %1036 = vmatpush3.bf16.msra.mxu0 %v1035_v7  ;;  %v1039_v17 = vpack.c.bf16 %v22_v15, %v21_v14  ;;  %v69_v18 = vld [vmem:[%s1932_s1 + $0x190] sm:$0xff]  ;;  %v70_v19 = vld [vmem:[%s1932_s1 + $0x198] sm:$0xff]  ;;  %v39_v23 = vld [vmem:[%s1932_s1 + $0xa0] sm:$0xff]  ;;  %v1432_v10 = vsub.s32 %v229_v59, %v231_v60 }
   0x6   :  { %1066 = vmatprep.subr.bf16.mxu1 %v1065_v8  ;;  %v53_v20 = vld [vmem:[%s1932_s1 + $0x110] sm:$0xff]  ;;  %v1069_v21 = vpack.c.bf16 %v70_v19, %v69_v18  ;;  %v54_v22 = vld [vmem:[%s1932_s1 + $0x118] sm:$0xff]  ;;  %v40_v24 = vld [vmem:[%s1932_s1 + $0xa8] sm:$0xff]  ;;  %1038 = vmatprep.subr.bf16.mxu0 %v1037_v16 }
   0x7   :  { %1068 = vmatpush3.bf16.msra.mxu1 %v1067_v12  ;;  %v1071_v25 = vpack.c.bf16 %v54_v22, %v53_v20  ;;  %v1041_v26 = vpack.c.bf16 %v40_v24, %v39_v23  ;;  %v23_v27 = vld [vmem:[%s1932_s1 + $0x20] sm:$0xff]  ;;  %v24_v28 = vld [vmem:[%s1932_s1 + $0x28] sm:$0xff]  ;;  %v41_v35 = vld [vmem:[%s1932_s1 + $0xb0] sm:$0xff] }
   0x8   :  { %v71_v29 = vld [vmem:[%s1932_s1 + $0x1a0] sm:$0xff]  ;;  %1070 = vmatprep.subr.bf16.mxu1 %v1069_v21  ;;  %v72_v30 = vld [vmem:[%s1932_s1 + $0x1a8] sm:$0xff]  ;;  %v1043_v33 = vpack.c.bf16 %v24_v28, %v23_v27  ;;  %v42_v36 = vld [vmem:[%s1932_s1 + $0xb8] sm:$0xff] }
   0x9   :  { %v55_v31 = vld [vmem:[%s1932_s1 + $0x120] sm:$0xff]  ;;  %v56_v32 = vld [vmem:[%s1932_s1 + $0x128] sm:$0xff]  ;;  %1040 = vmatpush3.bf16.msra.mxu0 %v1039_v17  ;;  %v1073_v34 = vpack.c.bf16 %v72_v30, %v71_v29  ;;  %v25_v37 = vld [vmem:[%s1932_s1 + $0x30] sm:$0xff]  ;;  %v1045_v39 = vpack.c.bf16 %v42_v36, %v41_v35 }
   0xa   :  { %1042 = vmatprep.subr.bf16.mxu0 %v1041_v26  ;;  %v1075_v38 = vpack.c.bf16 %v56_v32, %v55_v31  ;;  %v26_v40 = vld [vmem:[%s1932_s1 + $0x38] sm:$0xff]  ;;  %v73_v41 = vld [vmem:[%s1932_s1 + $0x1b0] sm:$0xff]  ;;  %v43_v49 = vld [vmem:[%s1932_s1 + $0xc0] sm:$0xff] }
   0xb   :  { %1072 = vmatpush3.bf16.msra.mxu1 %v1071_v25  ;;  %v74_v42 = vld [vmem:[%s1932_s1 + $0x1b8] sm:$0xff]  ;;  %v57_v47 = vld [vmem:[%s1932_s1 + $0x130] sm:$0xff]  ;;  %v44_v50 = vld [vmem:[%s1932_s1 + $0xc8] sm:$0xff]  ;;  %v1047_v51 = vpack.c.bf16 %v26_v40, %v25_v37 }
   0xc   :  { %1074 = vmatprep.subr.bf16.mxu1 %v1073_v34  ;;  %v1077_v46 = vpack.c.bf16 %v74_v42, %v73_v41  ;;  %v58_v48 = vld [vmem:[%s1932_s1 + $0x138] sm:$0xff]  ;;  %v75_v52 = vld [vmem:[%s1932_s1 + $0x1c0] sm:$0xff]  ;;  %v76_v53 = vld [vmem:[%s1932_s1 + $0x1c8] sm:$0xff]  ;;  %v1049_v55 = vpack.c.bf16 %v44_v50, %v43_v49 }
   0xd   :  { %1044 = vmatpush3.bf16.msra.mxu0 %v1043_v33  ;;  %v1079_v54 = vpack.c.bf16 %v58_v48, %v57_v47  ;;  %v27_v56 = vld [vmem:[%s1932_s1 + $0x40] sm:$0xff]  ;;  %v28_v57 = vld [vmem:[%s1932_s1 + $0x48] sm:$0xff]  ;;  %v1081_v61 = vpack.c.bf16 %v76_v53, %v75_v52  ;;  %v45_v63 = vld [vmem:[%s1932_s1 + $0xd0] sm:$0xff] }
   0xe   :  { %1046 = vmatprep.subr.bf16.mxu0 %v1045_v39  ;;  %v59_v58 = vld [vmem:[%s1932_s1 + $0x140] sm:$0xff]  ;;  %v60_v62 = vld [vmem:[%s1932_s1 + $0x148] sm:$0xff]  ;;  %v46_v0 = vld [vmem:[%s1932_s1 + $0xd8] sm:$0xff]  ;;  %v1051_v3 = vpack.c.bf16 %v28_v57, %v27_v56 }
   0xf   :  { %1076 = vmatpush3.bf16.msra.mxu1 %v1075_v38  ;;  %v77_v1 = vld [vmem:[%s1932_s1 + $0x1d0] sm:$0xff]  ;;  %v78_v2 = vld [vmem:[%s1932_s1 + $0x1d8] sm:$0xff]  ;;  %v1083_v5 = vpack.c.bf16 %v60_v62, %v59_v58  ;;  %v1053_v6 = vpack.c.bf16 %v46_v0, %v45_v63  ;;  %v47_v12 = vld [vmem:[%s1932_s1 + $0xe0] sm:$0xff] }
  0x10   :  { %1078 = vmatprep.subr.bf16.mxu1 %v1077_v46  ;;  %v29_v4 = vld [vmem:[%s1932_s1 + $0x50] sm:$0xff]  ;;  %v30_v7 = vld [vmem:[%s1932_s1 + $0x58] sm:$0xff]  ;;  %v1085_v11 = vpack.c.bf16 %v78_v2, %v77_v1  ;;  %v48_v13 = vld [vmem:[%s1932_s1 + $0xe8] sm:$0xff] }
  0x11   :  { %1048 = vmatpush3.bf16.msra.mxu0 %v1047_v51  ;;  %v61_v8 = vld [vmem:[%s1932_s1 + $0x150] sm:$0xff]  ;;  %v62_v9 = vld [vmem:[%s1932_s1 + $0x158] sm:$0xff]  ;;  %v79_v14 = vld [vmem:[%s1932_s1 + $0x1e0] sm:$0xff]  ;;  %v1055_v16 = vpack.c.bf16 %v30_v7, %v29_v4  ;;  %v1057_v19 = vpack.c.bf16 %v48_v13, %v47_v12 }
  0x12   :  { %1050 = vmatprep.subr.bf16.mxu0 %v1049_v55  ;;  %v80_v15 = vld [vmem:[%s1932_s1 + $0x1e8] sm:$0xff]  ;;  %v1087_v17 = vpack.c.bf16 %v62_v9, %v61_v8  ;;  %v15_v18 = vld [vmem:[%s1931_s0] sm:$0xff]  ;;  %v49_v27 = vld [vmem:[%s1932_s1 + $0xf0] sm:$0xff] }
  0x13   :  { %1080 = vmatpush3.bf16.msra.mxu1 %v1079_v54  ;;  %v31_v20 = vld [vmem:[%s1932_s1 + $0x60] sm:$0xff]  ;;  %v32_v21 = vld [vmem:[%s1932_s1 + $0x68] sm:$0xff]  ;;  %v233_v23 = vrot.slane %v15_v18, %v1432_v10  ;;  %v226_v24 = vcombine.high %v15_v18, %v15_v18  ;;  %v1089_v25 = vpack.c.bf16 %v80_v15, %v79_v14  ;;  %v50_v28 = vld [vmem:[%s1932_s1 + $0xf8] sm:$0xff] }
  0x14   :  { %1082 = vmatprep.subr.bf16.mxu1 %v1081_v61  ;;  %v63_v22 = vld [vmem:[%s1932_s1 + $0x160] sm:$0xff]  ;;  %v64_v26 = vld [vmem:[%s1932_s1 + $0x168] sm:$0xff]  ;;  %v81_v29 = vld [vmem:[%s1932_s1 + $0x1f0] sm:$0xff]  ;;  %v1059_v33 = vpack.c.bf16 %v32_v21, %v31_v20  ;;  %v1061_v35 = vpack.c.bf16 %v50_v28, %v49_v27 }
  0x15   :  { %1052 = vmatpush3.bf16.msra.mxu0 %v1051_v3  ;;  %v82_v30 = vld [vmem:[%s1932_s1 + $0x1f8] sm:$0xff]  ;;  %v241_v31 = vcombine.high %v233_v23, %v233_v23  ;;  %v240_v32 = vrot.slane %v226_v24, %v1432_v10  ;;  %v1091_v34 = vpack.c.bf16 %v64_v26, %v63_v22  ;;  %v33_v36 = vld [vmem:[%s1932_s1 + $0x70] sm:$0xff]  ;;  %v99_v42 = vld [vmem:[%s1932_s1 + $0x280] sm:$0xff] }
  0x16   :  { %1054 = vmatprep.subr.bf16.mxu0 %v1053_v6  ;;  %v34_v37 = vld [vmem:[%s1932_s1 + $0x78] sm:$0xff]  ;;  %v65_v38 = vld [vmem:[%s1932_s1 + $0x170] sm:$0xff]  ;;  %v1093_v40 = vpack.c.bf16 %v82_v30, %v81_v29  ;;  %v100_v43 = vld [vmem:[%s1932_s1 + $0x288] sm:$0xff] }
  0x17   :  { %1084 = vmatpush3.bf16.msra.mxu1 %v1083_v5  ;;  %v242_v39 = vcombine.high %v240_v32, %v240_v32  ;;  %363 = vmatprep.mubr.f32.mxu0 %v241_v31  ;;  %v66_v41 = vld [vmem:[%s1932_s1 + $0x178] sm:$0xff]  ;;  %v131_v44 = vld [vmem:[%s1932_s1 + $0x380] sm:$0xff]  ;;  %v132_v45 = vld [vmem:[%s1932_s1 + $0x388] sm:$0xff]  ;;  %v1063_v46 = vpack.c.bf16 %v34_v37, %v33_v36  ;;  %v1097_v48 = vpack.c.bf16 %v100_v43, %v99_v42 }
  0x18   :  { %1086 = vmatprep.subr.bf16.mxu1 %v1085_v11  ;;  %v1095_v47 = vpack.c.bf16 %v66_v41, %v65_v38  ;;  %v83_v49 = vld [vmem:[%s1932_s1 + $0x200] sm:$0xff]  ;;  %v84_v50 = vld [vmem:[%s1932_s1 + $0x208] sm:$0xff]  ;;  %v1129_v52 = vpack.c.bf16 %v132_v45, %v131_v44  ;;  %v101_v54 = vld [vmem:[%s1932_s1 + $0x290] sm:$0xff] }
  0x19   :  { %1056 = vmatpush3.bf16.msra.mxu0 %v1055_v16  ;;  %433 = vmatprep.mubr.f32.mxu1 %v242_v39  ;;  %v115_v51 = vld [vmem:[%s1932_s1 + $0x300] sm:$0xff]  ;;  %v116_v53 = vld [vmem:[%s1932_s1 + $0x308] sm:$0xff]  ;;  %v102_v55 = vld [vmem:[%s1932_s1 + $0x298] sm:$0xff]  ;;  %v1099_v58 = vpack.c.bf16 %v84_v50, %v83_v49 }
  0x1a   :  { %1058 = vmatprep.subr.bf16.mxu0 %v1057_v19  ;;  %v133_v56 = vld [vmem:[%s1932_s1 + $0x390] sm:$0xff]  ;;  %v134_v57 = vld [vmem:[%s1932_s1 + $0x398] sm:$0xff]  ;;  %v1131_v59 = vpack.c.bf16 %v116_v53, %v115_v51  ;;  %v1101_v60 = vpack.c.bf16 %v102_v55, %v101_v54  ;;  %v103_v2 = vld [vmem:[%s1932_s1 + $0x2a0] sm:$0xff] }
  0x1b   :  { %1088 = vmatpush3.bf16.msra.mxu1 %v1087_v17  ;;  %v85_v61 = vld [vmem:[%s1932_s1 + $0x210] sm:$0xff]  ;;  %v86_v62 = vld [vmem:[%s1932_s1 + $0x218] sm:$0xff]  ;;  %v1133_v0 = vpack.c.bf16 %v134_v57, %v133_v56  ;;  %v104_v3 = vld [vmem:[%s1932_s1 + $0x2a8] sm:$0xff] }
  0x1c   :  { %1090 = vmatprep.subr.bf16.mxu1 %v1089_v25  ;;  %v117_v63 = vld [vmem:[%s1932_s1 + $0x310] sm:$0xff]  ;;  %v118_v1 = vld [vmem:[%s1932_s1 + $0x318] sm:$0xff]  ;;  %v135_v4 = vld [vmem:[%s1932_s1 + $0x3a0] sm:$0xff]  ;;  %v1103_v6 = vpack.c.bf16 %v86_v62, %v85_v61  ;;  %v1105_v8 = vpack.c.bf16 %v104_v3, %v103_v2 }
  0x1d   :  { %1060 = vmatpush3.bf16.msra.mxu0 %v1059_v33  ;;  %v136_v5 = vld [vmem:[%s1932_s1 + $0x3a8] sm:$0xff]  ;;  %v1135_v7 = vpack.c.bf16 %v118_v1, %v117_v63  ;;  %v87_v9 = vld [vmem:[%s1932_s1 + $0x220] sm:$0xff]  ;;  %v105_v15 = vld [vmem:[%s1932_s1 + $0x2b0] sm:$0xff] }
  0x1e   :  { %1062 = vmatprep.subr.bf16.mxu0 %v1061_v35  ;;  %v88_v11 = vld [vmem:[%s1932_s1 + $0x228] sm:$0xff]  ;;  %v119_v12 = vld [vmem:[%s1932_s1 + $0x320] sm:$0xff]  ;;  %v1137_v13 = vpack.c.bf16 %v136_v5, %v135_v4  ;;  %v106_v16 = vld [vmem:[%s1932_s1 + $0x2b8] sm:$0xff] }
  0x1f   :  { %1092 = vmatpush3.bf16.msra.mxu1 %v1091_v34  ;;  %v120_v14 = vld [vmem:[%s1932_s1 + $0x328] sm:$0xff]  ;;  %v137_v17 = vld [vmem:[%s1932_s1 + $0x3b0] sm:$0xff]  ;;  %v138_v18 = vld [vmem:[%s1932_s1 + $0x3b8] sm:$0xff]  ;;  %v1107_v19 = vpack.c.bf16 %v88_v11, %v87_v9  ;;  %v1109_v22 = vpack.c.bf16 %v106_v16, %v105_v15 }
  0x20   :  { %1094 = vmatprep.subr.bf16.mxu1 %v1093_v40  ;;  %v89_v20 = vld [vmem:[%s1932_s1 + $0x230] sm:$0xff]  ;;  %v1139_v21 = vpack.c.bf16 %v120_v14, %v119_v12  ;;  %v122_v25 = vld [vmem:[%s1932_s1 + $0x338] sm:$0xff]  ;;  %v1141_v26 = vpack.c.bf16 %v138_v18, %v137_v17  ;;  %v107_v27 = vld [vmem:[%s1932_s1 + $0x2c0] sm:$0xff] }
  0x21   :  { %1064 = vmatpush3.bf16.msra.mxu0 %v1063_v46  ;;  %v121_v24 = vld [vmem:[%s1932_s1 + $0x330] sm:$0xff]  ;;  %v108_v28 = vld [vmem:[%s1932_s1 + $0x2c8] sm:$0xff]  ;;  %v139_v30 = vld [vmem:[%s1932_s1 + $0x3c0] sm:$0xff] }
  0x22   :  { %1098 = vmatprep.subr.bf16.mxu0 %v1097_v48  ;;  %v16_v29 = vld [vmem:[%s1931_s0 + $0x8] sm:$0xff]  ;;  %v1143_v35 = vpack.c.bf16 %v122_v25, %v121_v24  ;;  %v1113_v36 = vpack.c.bf16 %v108_v28, %v107_v27  ;;  %v91_v37 = vld [vmem:[%s1932_s1 + $0x240] sm:$0xff]  ;;  %v109_v44 = vld [vmem:[%s1932_s1 + $0x2d0] sm:$0xff] }
  0x23   :  { %1096 = vmatpush3.bf16.msra.mxu1 %v1095_v47  ;;  %v140_v31 = vld [vmem:[%s1932_s1 + $0x3c8] sm:$0xff]  ;;  %v243_v33 = vcombine.high %v16_v29, %v16_v29  ;;  %v123_v39 = vld [vmem:[%s1932_s1 + $0x340] sm:$0xff]  ;;  %v110_v45 = vld [vmem:[%s1932_s1 + $0x2d8] sm:$0xff] }
  0x24   :  { %1130 = vmatprep.subr.bf16.mxu1 %v1129_v52  ;;  %364 = vmatmul.mubr.f32.vlgmr.msra.gmra.mrb[0].mxu0 %v233_v23  ;;  %v90_v23 = vld [vmem:[%s1932_s1 + $0x238] sm:$0xff]  ;;  %v92_v38 = vld [vmem:[%s1932_s1 + $0x248] sm:$0xff]  ;;  %v1145_v42 = vpack.c.bf16 %v140_v31, %v139_v30  ;;  %v141_v46 = vld [vmem:[%s1932_s1 + $0x3d0] sm:$0xff]  ;;  %v1117_v51 = vpack.c.bf16 %v110_v45, %v109_v44 }
  0x25   :  { %1100 = vmatpush3.bf16.msra.mxu0 %v1099_v58  ;;  %v1111_v34 = vpack.c.bf16 %v90_v23, %v89_v20  ;;  %v1613_v41 = vrot.slane %v243_v33, %v1432_v10  ;;  %v124_v43 = vld [vmem:[%s1932_s1 + $0x348] sm:$0xff]  ;;  %v142_v47 = vld [vmem:[%s1932_s1 + $0x3d8] sm:$0xff]  ;;  %v1115_v49 = vpack.c.bf16 %v92_v38, %v91_v37  ;;  %v93_v52 = vld [vmem:[%s1932_s1 + $0x250] sm:$0xff] }
  0x26   :  { %434 = vmatmul.mubr.f32.vlgmr.msra.gmra.mrb[0].mxu1 %v240_v32  ;;  %1102 = vmatprep.subr.bf16.mxu0 %v1101_v60  ;;  %v1599_v32 = vrot.slane %v16_v29, %v1432_v10  ;;  %v1147_v50 = vpack.c.bf16 %v124_v43, %v123_v39  ;;  %v94_v53 = vld [vmem:[%s1932_s1 + $0x258] sm:$0xff]  ;;  %v125_v54 = vld [vmem:[%s1932_s1 + $0x350] sm:$0xff]  ;;  %v1149_v55 = vpack.c.bf16 %v142_v47, %v141_v46  ;;  %v111_v57 = vld [vmem:[%s1932_s1 + $0x2e0] sm:$0xff] }
  0x27   :  { %1132 = vmatpush3.bf16.msra.mxu1 %v1131_v59  ;;  %v259_v48 = vcombine.high %v1613_v41, %v1613_v41  ;;  %v126_v56 = vld [vmem:[%s1932_s1 + $0x358] sm:$0xff]  ;;  %v112_v58 = vld [vmem:[%s1932_s1 + $0x2e8] sm:$0xff]  ;;  %v143_v59 = vld [vmem:[%s1932_s1 + $0x3e0] sm:$0xff]  ;;  %v1119_v61 = vpack.c.bf16 %v94_v53, %v93_v52 }
  0x28   :  { %1134 = vmatprep.subr.bf16.mxu1 %v1133_v0  ;;  %v258_v40 = vcombine.high %v1599_v32, %v1599_v32  ;;  %v144_v60 = vld [vmem:[%s1932_s1 + $0x3e8] sm:$0xff]  ;;  %v1151_v62 = vpack.c.bf16 %v126_v56, %v125_v54  ;;  %v1121_v63 = vpack.c.bf16 %v112_v58, %v111_v57  ;;  %v95_v0 = vld [vmem:[%s1932_s1 + $0x260] sm:$0xff]  ;;  %v113_v5 = vld [vmem:[%s1932_s1 + $0x2f0] sm:$0xff] }
  0x29   :  { %1104 = vmatpush3.bf16.msra.mxu0 %v1103_v6  ;;  %573 = vmatprep.mubr.f32.mxu1 %v259_v48  ;;  %v96_v1 = vld [vmem:[%s1932_s1 + $0x268] sm:$0xff]  ;;  %v127_v2 = vld [vmem:[%s1932_s1 + $0x360] sm:$0xff]  ;;  %v1153_v3 = vpack.c.bf16 %v144_v60, %v143_v59  ;;  %v114_v6 = vld [vmem:[%s1932_s1 + $0x2f8] sm:$0xff] }
  0x2a   :  { %1106 = vmatprep.subr.bf16.mxu0 %v1105_v8  ;;  %503 = vmatprep.mubr.f32.mxu0 %v258_v40  ;;  %v128_v4 = vld [vmem:[%s1932_s1 + $0x368] sm:$0xff]  ;;  %v146_v8 = vld [vmem:[%s1932_s1 + $0x3f8] sm:$0xff]  ;;  %v1123_v9 = vpack.c.bf16 %v96_v1, %v95_v0  ;;  %v1125_v12 = vpack.c.bf16 %v114_v6, %v113_v5  ;;  %v129_v15 = vld [vmem:[%s1932_s1 + $0x370] sm:$0xff] }
  0x2b   :  { %1136 = vmatpush3.bf16.msra.mxu1 %v1135_v7  ;;  %v145_v7 = vld [vmem:[%s1932_s1 + $0x3f0] sm:$0xff]  ;;  %v1155_v11 = vpack.c.bf16 %v128_v4, %v127_v2  ;;  %v98_v14 = vld [vmem:[%s1932_s1 + $0x278] sm:$0xff]  ;;  %v163_v18 = vld [vmem:[%s1932_s1 + $0x480] sm:$0xff] }
  0x2c   :  { %1138 = vmatprep.subr.bf16.mxu1 %v1137_v13  ;;  %v97_v13 = vld [vmem:[%s1932_s1 + $0x270] sm:$0xff]  ;;  %v1157_v16 = vpack.c.bf16 %v146_v8, %v145_v7  ;;  %v130_v17 = vld [vmem:[%s1932_s1 + $0x378] sm:$0xff]  ;;  %v195_v20 = vld [vmem:[%s1932_s1 + $0x580] sm:$0xff] }
  0x2d   :  { %1108 = vmatpush3.bf16.msra.mxu0 %v1107_v19  ;;  %v164_v19 = vld [vmem:[%s1932_s1 + $0x488] sm:$0xff]  ;;  %v147_v23 = vld [vmem:[%s1932_s1 + $0x400] sm:$0xff]  ;;  %v1159_v24 = vpack.c.bf16 %v130_v17, %v129_v15  ;;  %v165_v30 = vld [vmem:[%s1932_s1 + $0x490] sm:$0xff] }
  0x2e   :  { %1110 = vmatprep.subr.bf16.mxu0 %v1109_v22  ;;  %v1127_v22 = vpack.c.bf16 %v98_v14, %v97_v13  ;;  %v1161_v25 = vpack.c.bf16 %v164_v19, %v163_v18  ;;  %v179_v27 = vld [vmem:[%s1932_s1 + $0x500] sm:$0xff]  ;;  %v180_v28 = vld [vmem:[%s1932_s1 + $0x508] sm:$0xff]  ;;  %v166_v31 = vld [vmem:[%s1932_s1 + $0x498] sm:$0xff] }
  0x2f   :  { %1140 = vmatpush3.bf16.msra.mxu1 %v1139_v21  ;;  %v196_v21 = vld [vmem:[%s1932_s1 + $0x588] sm:$0xff]  ;;  %v197_v33 = vld [vmem:[%s1932_s1 + $0x590] sm:$0xff]  ;;  %v1165_v38 = vpack.c.bf16 %v166_v31, %v165_v30  ;;  %v150_v40 = vld [vmem:[%s1932_s1 + $0x418] sm:$0xff] }
  0x30   :  { %1142 = vmatprep.subr.bf16.mxu1 %v1141_v26  ;;  %v148_v26 = vld [vmem:[%s1932_s1 + $0x408] sm:$0xff]  ;;  %v1193_v29 = vpack.c.bf16 %v196_v21, %v195_v20  ;;  %v17_v37 = vld [vmem:[%s1931_s0 + $0x10] sm:$0xff]  ;;  %v182_v46 = vld [vmem:[%s1932_s1 + $0x518] sm:$0xff] }
  0x31   :  { %1112 = vmatpush3.bf16.msra.mxu0 %v1111_v34  ;;  %v198_v34 = vld [vmem:[%s1932_s1 + $0x598] sm:$0xff]  ;;  %v149_v39 = vld [vmem:[%s1932_s1 + $0x410] sm:$0xff]  ;;  %v1741_v43 = vrot.slane %v17_v37, %v1432_v10  ;;  %v260_v44 = vcombine.high %v17_v37, %v17_v37  ;;  %v167_v47 = vld [vmem:[%s1932_s1 + $0x4a0] sm:$0xff] }
  0x32   :  { %1114 = vmatprep.subr.bf16.mxu0 %v1113_v36  ;;  %v1195_v36 = vpack.c.bf16 %v180_v28, %v179_v27  ;;  %v1197_v45 = vpack.c.bf16 %v198_v34, %v197_v33  ;;  %v168_v48 = vld [vmem:[%s1932_s1 + $0x4a8] sm:$0xff] }
  0x33   :  { %1144 = vmatpush3.bf16.msra.mxu1 %v1143_v35  ;;  %v1163_v35 = vpack.c.bf16 %v148_v26, %v147_v23  ;;  %v1762_v52 = vrot.slane %v260_v44, %v1432_v10 }
  0x34   :  { %1146 = vmatprep.subr.bf16.mxu1 %v1145_v42  ;;  %v181_v42 = vld [vmem:[%s1932_s1 + $0x510] sm:$0xff] }
  0x35   :  { %1116 = vmatpush3.bf16.msra.mxu0 %v1115_v49  ;;  %v199_v49 = vld [vmem:[%s1932_s1 + $0x5a0] sm:$0xff] }
  0x36   :  { %1118 = vmatprep.subr.bf16.mxu0 %v1117_v51  ;;  %v275_v51 = vcombine.high %v1741_v43, %v1741_v43 }
  0x37   :  { %1148 = vmatpush3.bf16.msra.mxu1 %v1147_v50  ;;  %v200_v50 = vld [vmem:[%s1932_s1 + $0x5a8] sm:$0xff] }
  0x38   :  { %1150 = vmatprep.subr.bf16.mxu1 %v1149_v55 }
  0x39   :  { %1120 = vmatpush3.bf16.msra.mxu0 %v1119_v61 }
  0x3a   :  { %1122 = vmatprep.subr.bf16.mxu0 %v1121_v63 }
  0x3b   :  { %1152 = vmatpush3.bf16.msra.mxu1 %v1151_v62 }
  0x3c   :  { %1154 = vmatprep.subr.bf16.mxu1 %v1153_v3 }
  0x3d   :  { %1124 = vmatpush3.bf16.msra.mxu0 %v1123_v9 }
  0x3e   :  { %1126 = vmatprep.subr.bf16.mxu0 %v1125_v12 }
  0x3f   :  { %1156 = vmatpush3.bf16.msra.mxu1 %v1155_v11 }
  0x40   :  { %1158 = vmatprep.subr.bf16.mxu1 %v1157_v16 }
  0x41   :  { %1128 = vmatpush3.bf16.msra.mxu0 %v1127_v22 }
  0x42   :  { %1162 = vmatprep.subr.bf16.mxu0 %v1161_v25 }
  0x43   :  { %1160 = vmatpush3.bf16.msra.mxu1 %v1159_v24 }
  0x44   :  { %1194 = vmatprep.subr.bf16.mxu1 %v1193_v29  ;;  %504 = vmatmul.mubr.f32.vlgmr.msra.gmra.mrb[2].mxu0 %v1599_v32 }
  0x45   :  { %8 = vsyncpa [#allocation3], 0  ;;  %1164 = vmatpush3.bf16.msra.mxu0 %v1163_v35  ;;  %v1167_v53 = vpack.c.bf16 %v150_v40, %v149_v39  ;;  %v1199_v32 = vpack.c.bf16 %v182_v46, %v181_v42  ;;  %v1169_v54 = vpack.c.bf16 %v168_v48, %v167_v47  ;;  %v151_v55 = vld [vmem:[%s1932_s1 + $0x420] sm:$0xff]  ;;  %v152_v56 = vld [vmem:[%s1932_s1 + $0x428] sm:$0xff]  ;;  %v1201_v57 = vpack.c.bf16 %v200_v50, %v199_v49 }
  0x46   :  { %574 = vmatmul.mubr.f32.vlgmr.msra.gmra.mrb[2].mxu1 %v1613_v41  ;;  %1166 = vmatprep.subr.bf16.mxu0 %v1165_v38  ;;  %v183_v10 = vld [vmem:[%s1932_s1 + $0x520] sm:$0xff]  ;;  %v276_v41 = vcombine.high %v1762_v52, %v1762_v52  ;;  %v184_v58 = vld [vmem:[%s1932_s1 + $0x528] sm:$0xff]  ;;  %v169_v59 = vld [vmem:[%s1932_s1 + $0x4b0] sm:$0xff]  ;;  %v1171_v63 = vpack.c.bf16 %v152_v56, %v151_v55  ;;  %vm1265_vm0 = vmmov 0   ;;  %vm296_vm1 = vcmask 261120  }
  0x47   :  { %1196 = vmatpush3.bf16.msra.mxu1 %v1195_v36  ;;  %v170_v60 = vld [vmem:[%s1932_s1 + $0x4b8] sm:$0xff]  ;;  %643 = vmatprep.mubr.f32.mxu0 %v275_v51  ;;  %v201_v61 = vld [vmem:[%s1932_s1 + $0x5b0] sm:$0xff]  ;;  %v1203_v0 = vpack.c.bf16 %v184_v58, %v183_v10  ;;  %v171_v7 = vld [vmem:[%s1932_s1 + $0x4c0] sm:$0xff] }
  0x48   :  { %1198 = vmatprep.subr.bf16.mxu1 %v1197_v45  ;;  %v202_v62 = vld [vmem:[%s1932_s1 + $0x5b8] sm:$0xff]  ;;  %713 = vmatprep.mubr.f32.mxu1 %v276_v41  ;;  %v1173_v1 = vpack.c.bf16 %v170_v60, %v169_v59  ;;  %v153_v2 = vld [vmem:[%s1932_s1 + $0x430] sm:$0xff]  ;;  %v172_v8 = vld [vmem:[%s1932_s1 + $0x4c8] sm:$0xff] }
  0x49   :  { %1168 = vmatpush3.bf16.msra.mxu0 %v1167_v53  ;;  %v154_v3 = vld [vmem:[%s1932_s1 + $0x438] sm:$0xff]  ;;  %v185_v4 = vld [vmem:[%s1932_s1 + $0x530] sm:$0xff]  ;;  %v1205_v5 = vpack.c.bf16 %v202_v62, %v201_v61  ;;  %v203_v9 = vld [vmem:[%s1932_s1 + $0x5c0] sm:$0xff]  ;;  %v1177_v14 = vpack.c.bf16 %v172_v8, %v171_v7  ;;  %v1264_v62 = vmov 0.0|0.0  }
  0x4a   :  { %1170 = vmatprep.subr.bf16.mxu0 %v1169_v54  ;;  %v186_v6 = vld [vmem:[%s1932_s1 + $0x538] sm:$0xff]  ;;  %v204_v11 = vld [vmem:[%s1932_s1 + $0x5c8] sm:$0xff]  ;;  %v1175_v12 = vpack.c.bf16 %v154_v3, %v153_v2  ;;  %v155_v15 = vld [vmem:[%s1932_s1 + $0x440] sm:$0xff]  ;;  %v1266_v2 = vmov 0.0  }
  0x4b   :  { %1200 = vmatpush3.bf16.msra.mxu1 %v1199_v32  ;;  %v1207_v13 = vpack.c.bf16 %v186_v6, %v185_v4  ;;  %v156_v16 = vld [vmem:[%s1932_s1 + $0x448] sm:$0xff]  ;;  %v187_v17 = vld [vmem:[%s1932_s1 + $0x540] sm:$0xff]  ;;  %v1209_v18 = vpack.c.bf16 %v204_v11, %v203_v9  ;;  %v173_v20 = vld [vmem:[%s1932_s1 + $0x4d0] sm:$0xff] }
  0x4c   :  { %1202 = vmatprep.subr.bf16.mxu1 %v1201_v57  ;;  %v188_v19 = vld [vmem:[%s1932_s1 + $0x548] sm:$0xff]  ;;  %v174_v21 = vld [vmem:[%s1932_s1 + $0x4d8] sm:$0xff]  ;;  %v205_v22 = vld [vmem:[%s1932_s1 + $0x5d0] sm:$0xff]  ;;  %v1179_v24 = vpack.c.bf16 %v156_v16, %v155_v15 }
  0x4d   :  { %1172 = vmatpush3.bf16.msra.mxu0 %v1171_v63  ;;  %v206_v23 = vld [vmem:[%s1932_s1 + $0x5d8] sm:$0xff]  ;;  %v1211_v25 = vpack.c.bf16 %v188_v19, %v187_v17  ;;  %v1181_v26 = vpack.c.bf16 %v174_v21, %v173_v20  ;;  %v157_v27 = vld [vmem:[%s1932_s1 + $0x450] sm:$0xff]  ;;  %v175_v33 = vld [vmem:[%s1932_s1 + $0x4e0] sm:$0xff] }
  0x4e   :  { %1174 = vmatprep.subr.bf16.mxu0 %v1173_v1  ;;  %v158_v28 = vld [vmem:[%s1932_s1 + $0x458] sm:$0xff]  ;;  %v189_v29 = vld [vmem:[%s1932_s1 + $0x550] sm:$0xff]  ;;  %v1213_v30 = vpack.c.bf16 %v206_v23, %v205_v22  ;;  %v176_v34 = vld [vmem:[%s1932_s1 + $0x4e8] sm:$0xff] }
  0x4f   :  { %1204 = vmatpush3.bf16.msra.mxu1 %v1203_v0  ;;  %v190_v31 = vld [vmem:[%s1932_s1 + $0x558] sm:$0xff]  ;;  %v207_v35 = vld [vmem:[%s1932_s1 + $0x5e0] sm:$0xff]  ;;  %v208_v36 = vld [vmem:[%s1932_s1 + $0x5e8] sm:$0xff]  ;;  %v1183_v37 = vpack.c.bf16 %v158_v28, %v157_v27  ;;  %v1185_v39 = vpack.c.bf16 %v176_v34, %v175_v33 }
  0x50   :  { %1206 = vmatprep.subr.bf16.mxu1 %v1205_v5  ;;  %v1215_v38 = vpack.c.bf16 %v190_v31, %v189_v29  ;;  %v159_v40 = vld [vmem:[%s1932_s1 + $0x460] sm:$0xff]  ;;  %v160_v42 = vld [vmem:[%s1932_s1 + $0x468] sm:$0xff]  ;;  %v1217_v45 = vpack.c.bf16 %v208_v36, %v207_v35  ;;  %v177_v47 = vld [vmem:[%s1932_s1 + $0x4f0] sm:$0xff] }
  0x51   :  { %1176 = vmatpush3.bf16.msra.mxu0 %v1175_v12  ;;  %v191_v44 = vld [vmem:[%s1932_s1 + $0x560] sm:$0xff]  ;;  %v192_v46 = vld [vmem:[%s1932_s1 + $0x568] sm:$0xff]  ;;  %v178_v48 = vld [vmem:[%s1932_s1 + $0x4f8] sm:$0xff]  ;;  %v1187_v51 = vpack.c.bf16 %v160_v42, %v159_v40 }
  0x52   :  { %1178 = vmatprep.subr.bf16.mxu0 %v1177_v14  ;;  %v209_v49 = vld [vmem:[%s1932_s1 + $0x5f0] sm:$0xff]  ;;  %v210_v50 = vld [vmem:[%s1932_s1 + $0x5f8] sm:$0xff]  ;;  %v1219_v53 = vpack.c.bf16 %v192_v46, %v191_v44  ;;  %v1189_v32 = vpack.c.bf16 %v178_v48, %v177_v47  ;;  %v211_v59 = vld [vmem:[%s1932_s1 + $0x600] sm:$0xff] }
  0x53   :  { %1208 = vmatpush3.bf16.msra.mxu1 %v1207_v13  ;;  %v161_v54 = vld [vmem:[%s1932_s1 + $0x470] sm:$0xff]  ;;  %v162_v55 = vld [vmem:[%s1932_s1 + $0x478] sm:$0xff]  ;;  %v1221_v56 = vpack.c.bf16 %v210_v50, %v209_v49  ;;  %v212_v60 = vld [vmem:[%s1932_s1 + $0x608] sm:$0xff] }
  0x54   :  { %1210 = vmatprep.subr.bf16.mxu1 %v1209_v18  ;;  %v193_v10 = vld [vmem:[%s1932_s1 + $0x570] sm:$0xff]  ;;  %v194_v41 = vld [vmem:[%s1932_s1 + $0x578] sm:$0xff]  ;;  %v1191_v57 = vpack.c.bf16 %v162_v55, %v161_v54  ;;  %v1226_v61 = vpack.c.bf16 %v212_v60, %v211_v59 }
  0x55   :  { %1180 = vmatpush3.bf16.msra.mxu0 %v1179_v24  ;;  %v1223_v58 = vpack.c.bf16 %v194_v41, %v193_v10  ;;  %v213_v63 = vld [vmem:[%s1932_s1 + $0x610] sm:$0xff]  ;;  %v214_v0 = vld [vmem:[%s1932_s1 + $0x618] sm:$0xff] }
  0x56   :  { %1182 = vmatprep.subr.bf16.mxu0 %v1181_v26  ;;  %v1229_v1 = vpack.c.bf16 %v214_v0, %v213_v63  ;;  %v805_v3 = vld.sshfl [vmem:[%s1931_s0 + $0x18] sm:$0x3 pattern:$0x76325410]  ;;  %s1267_s0 = smov [#allocation2]  }
  0x57   :  { %1212 = vmatpush3.bf16.msra.mxu1 %v1211_v25 }
  0x58   :  { %1214 = vmatprep.subr.bf16.mxu1 %v1213_v30 }
  0x59   :  { %1184 = vmatpush3.bf16.msra.mxu0 %v1183_v37 }
  0x5a   :  { %1186 = vmatprep.subr.bf16.mxu0 %v1185_v39 }
  0x5b   :  { %1216 = vmatpush3.bf16.msra.mxu1 %v1215_v38 }
  0x5c   :  { %1218 = vmatprep.subr.bf16.mxu1 %v1217_v45 }
  0x5d   :  { %1188 = vmatpush3.bf16.msra.mxu0 %v1187_v51 }
  0x5e   :  { %1190 = vmatprep.subr.bf16.mxu0 %v1189_v32 }
  0x5f   :  { %1220 = vmatpush3.bf16.msra.mxu1 %v1219_v53 }
  0x60   :  { %1222 = vmatprep.subr.bf16.mxu1 %v1221_v56 }
  0x61   :  { %1192 = vmatpush3.bf16.msra.mxu0 %v1191_v57 }
  0x62   :  { %1225 = vmatprep.subr.bf16.mxu0 %v1264_v62 }
  0x63   :  { %1224 = vmatpush3.bf16.msra.mxu1 %v1223_v58 }
  0x64   :  { %644 = vmatmul.mubr.f32.vlgmr.msra.gmra.mrb[4].mxu0 %v1741_v43  ;;  %v804_v43 = vld [vmem:[%s1933_s2] ss:$0 sm:$0xff]  ;;  %s796_s2 = sshll.u32 %s1267_s0, 4  ;;  %s797_s2 = int_to_ptr.vmem [resolvable:$true] %s796_s2 }
  0x65   :  { %1227 = vmatpush3.bf16.msra.mxu0 %v1226_v61  ;;  %1030 = vmatprep.mubr.msk.f32.mxu0 %vm1265_vm0, %v1266_v2  ;;  %s1239_s8 = scalar_lea.vmem %s797_s2, 32  ;;  %p1244_p1 = scmp.lt.s32.totalorder %s797_s2, %s797_s2 }
  0x66   :  { %714 = vmatmul.mubr.f32.vlgmr.msra.gmra.mrb[4].mxu1 %v1762_v52  ;;  %1228 = vmatprep.subr.bf16.mxu0 %v1264_v62  ;;  %p1240_p0 = scmp.ne.s32.totalorder %s797_s2, %s1239_s8  ;;  %p1245_p2 = scmp.lt.s32.totalorder %s1239_s8, %s1239_s8 }
  0x68   :  { %p1246_p3 = por %p1245_p2, %p1244_p1 }
  0x69   :  { %1230 = vmatpush3.bf16.msra.mxu0 %v1229_v1 }
  0x6a   :  { %p1247_p4 = pnand %p1246_p3, %p1240_p0 }
  0x6c   :  { %1031 = vmatmul.mubr.msk.f32.vlgmr.msra.gmra.mrb[6].mxu0 %vm296_vm1, %v805_v3 }
  0xf7   :  { %v839_v4 = vpop.f32.mrb[0].mxu0 }
  0xf8   :  { %v840_v5 = vpop.f32.mrb[1].mxu0 }
  0xf9   :  { %v874_v6 = vpop.f32.mrb[0].mxu1  ;;  %v841_v52 = vadd.f32 %v840_v5, %v839_v4 }
  0xfa   :  { %v875_v7 = vpop.f32.mrb[1].mxu1 }
  0xfb   :  { %v876_v8 = vadd.f32 %v875_v7, %v874_v6  ;;  %v366_v9 = vadd.f32 %v841_v52, %v804_v43 }
  0xfd   :  { %v436_v11 = vadd.f32 %v876_v8, %v366_v9 }
 0x117   :  { %v909_v12 = vpop.f32.mrb[2].mxu0 }
 0x118   :  { %v910_v13 = vpop.f32.mrb[3].mxu0 }
 0x119   :  { %v944_v14 = vpop.f32.mrb[2].mxu1  ;;  %v911_v15 = vadd.f32 %v910_v13, %v909_v12 }
 0x11a   :  { %v945_v16 = vpop.f32.mrb[3].mxu1 }
 0x11b   :  { %v946_v17 = vadd.f32 %v945_v16, %v944_v14  ;;  %v506_v18 = vadd.f32 %v911_v15, %v436_v11 }
 0x11d   :  { %v576_v19 = vadd.f32 %v946_v17, %v506_v18 }
 0x137   :  { %v979_v20 = vpop.f32.mrb[4].mxu0 }
 0x138   :  { %v980_v21 = vpop.f32.mrb[5].mxu0 }
 0x139   :  { %v1014_v22 = vpop.f32.mrb[4].mxu1  ;;  %v981_v23 = vadd.f32 %v980_v21, %v979_v20 }
 0x13a   :  { %v1015_v24 = vpop.f32.mrb[5].mxu1 }
 0x13b   :  { %v1016_v25 = vadd.f32 %v1015_v24, %v1014_v22  ;;  %v646_v26 = vadd.f32 %v981_v23, %v576_v19 }
 0x13d   :  { %v716_v27 = vadd.f32 %v1016_v25, %v646_v26 }
 0x13f   :  { %v785_v28 = vpop.f32.mrb[6].mxu0 }
 0x140   :  { %v786_v29 = vadd.f32 %v785_v28, %v716_v27  ;;  %v1032_v30 = vpop.f32.mrb[7].mxu0 }
 0x142   :  { %789 = vst [vmem:[#allocation2] sm:$0x3] %v786_v29 }
 0x143   :  { %1250 = shalt.err (!%p1247_p4)
}
 0x144   :  { %s1251_s11 = scalar_lea.hbm %s1934_s3, 32 }
 0x145   :  { %p1252_p5 = scmp.ne.s32.totalorder %s1934_s3, %s1251_s11  ;;  %p1255_p6 = scmp.lt.u32.totalorder %s1251_s11, %s1934_s3 }
 0x147   :  { %p1257_p7 = pnand %p1255_p6, %p1252_p5 }
 0x149   :  { %1260 = shalt.err (!%p1257_p7)
}
 0x14a   :  { %799 = dma.vmem_to_hbm [thread:$0]  %s797_s2, 32, %s1934_s3, [#allocation3]  }
 0x14b   :  { %1261 = dma.done.wait [#allocation3], 32  }
 0x14c   :  { %1262 = vsyncadd [#allocation3], 4294967264 }
 0x14d   :  { %803 = vsyncpa [#allocation3], 1 }

</bundles_post_ra>
